<compile_context>
chip_gen: v7x
topology: tpu7x:2x2x1
jax: 0.10.0
libtpu: 0.0.40
codegen_flags: <defaults>
</compile_context>

<pallas_src>
import numpy as np
import jax
import jax.numpy as jnp
from jax.experimental import pallas as pl
from jax.experimental.pallas import tpu as pltpu

BN_EPS = 1e-5
LANES = 128
SUBLANES = 8

_VMEM_SPEC = pl.BlockSpec(memory_space=pltpu.MemorySpace.VMEM)


def _round_up(x, m):
    return (x + m - 1) // m * m


# --------------------------- fused Bottleneck kernel -------------------------

def bottleneck_forward(feats, nbr_idx, params):
    """Fused Bottleneck forward.

    feats:   [N, inc] float32
    nbr_idx: [N, 27]  int32 row index of each kernel-offset neighbor
             (-1 = offset not present in the sparse point set)
    params:  dict of per-layer weights / BN affine params (see __main__)
    """
    n_real, inc = feats.shape
    outc = params["w1"].shape[1]
    expansion = 4
    cd = outc * expansion                 # block output channels
    n_k = nbr_idx.shape[1]                # 27 kernel offsets

    assert outc <= LANES and cd <= LANES, "channel padding assumes C <= 128"

    # module: downsample is Identity when inc == outc*expansion (stride == 1)
    has_downsample = not (inc == cd)

    # pad N to a sublane multiple; padded rows are arranged to contribute
    # exactly zero to every BatchNorm statistic.
    n = _round_up(max(n_real, SUBLANES), SUBLANES)
    if n != n_real:
        feats = jnp.pad(feats, ((0, n - n_real), (0, 0)))
        nbr_idx = jnp.pad(nbr_idx, ((0, n - n_real), (0, 0)), constant_values=-1)

    cap = 2 * LANES if has_downsample else LANES   # stage-A width: [conv1 | downsample]
    k2p = _round_up(n_k * outc, LANES)             # conv2 contraction: 216 -> 256
    c2p = LANES                                    # conv2 output width (padded)
    c3p = LANES                                    # conv3 / downsample width (padded)

    f32, bf16 = jnp.float32, jnp.bfloat16

    # ---- pack / pad parameters (tiny, done once outside the kernel) --------
    # Stage A slab: conv1 weights in lanes [0, outc), downsample weights in
    # lanes [128, 128+cd). Zero gamma/beta on pad columns keeps them exactly 0.
    wa = jnp.zeros((inc, cap), f32).at[:, :outc].set(params["w1"])
    ga = jnp.zeros((1, cap), f32).at[0, :outc].set(params["g1"])
    ba = jnp.zeros((1, cap), f32).at[0, :outc].set(params["b1"])
    if has_downsample:
        wa = wa.at[:, LANES:LANES + cd].set(params["wd"])
        ga = ga.at[0, LANES:LANES + cd].set(params["gd"])
        ba = ba.at[0, LANES:LANES + cd].set(params["bd"])
    w2 = jnp.zeros((k2p, c2p), f32).at[:n_k * outc, :outc].set(params["w2"])
    g2 = jnp.zeros((1, c2p), f32).at[0, :outc].set(params["g2_"])
    b2 = jnp.zeros((1, c2p), f32).at[0, :outc].set(params["b2"])
    w3 = jnp.zeros((c2p, c3p), f32).at[:outc, :cd].set(params["w3"])
    g3 = jnp.zeros((1, c3p), f32).at[0, :cd].set(params["g3"])
    b3 = jnp.zeros((1, c3p), f32).at[0, :cd].set(params["b3"])

    wa_b, w2_b, w3_b = wa.astype(bf16), w2.astype(bf16), w3.astype(bf16)
    inv_n = 1.0 / n_real

    def kernel(x_ref, nbr_ref, wa_ref, w2_ref, w3_ref,
               ga_ref, ba_ref, g2_ref, b2_ref, g3_ref, b3_ref,
               o_ref, im2col_ref):

        def bn(y, gamma, beta):
            # training-mode BatchNorm1d: batch statistics, biased variance,
            # single pass (sum / sum-sq), folded into one scale + shift.
            s = jnp.sum(y, axis=0, keepdims=True)
            ss = jnp.sum(y * y, axis=0, keepdims=True)
            mean = s * inv_n
            var = ss * inv_n - mean * mean
            scale = gamma * jax.lax.rsqrt(var + BN_EPS)   # EUP rsqrt
            shift = beta - mean * scale
            return y * scale + shift

        x_f = x_ref[...]
        x_b = x_f.astype(bf16)

        # ---- stage A: conv1(ks=1) [+ downsample conv(ks=1)] in one matmul --
        ya = jnp.dot(x_b, wa_ref[...], preferred_element_type=f32)
        ya_n = bn(ya, ga_ref[...], ba_ref[...])
        h1_b = ya_n[:, :outc].astype(bf16)          # conv1+BN1 output (narrow)
        if has_downsample:
            resid = ya_n[:, LANES:]                  # downsample branch (128-wide)
        else:
            resid = jnp.pad(x_f, ((0, 0), (0, c3p - inc)))   # Identity residual

        # ---- stage B: sparse ks=3 conv, im2col gather fully in VMEM --------
        im2col_ref[...] = jnp.zeros_like(im2col_ref)
        col_ids = jax.lax.broadcasted_iota(jnp.int32, (n, n), 1)  # hoisted
        for k in range(n_k):                   # static unroll over 27 offsets
            idx = nbr_ref[:, k:k + 1]          # (n, 1); -1 -> all-zero row
            onehot = (idx == col_ids).astype(bf16)
            gk = jnp.dot(onehot, h1_b, preferred_element_type=f32)
            im2col_ref[:, k * outc:(k + 1) * outc] = gk.astype(bf16)  # exact
        h2 = jnp.dot(im2col_ref[...], w2_ref[...],
                     preferred_element_type=f32)   # single wide-K matmul
        h2_n = bn(h2, g2_ref[...], b2_ref[...])

        # keep sublane-pad rows exactly zero so BN3 stats stay clean
        if n != n_real:
            row_mask = (jax.lax.broadcasted_iota(jnp.int32, (n, 1), 0)
                        < n_real).astype(f32)
            h2_n = h2_n * row_mask

        # ---- stage C: conv3(ks=1) + BN3 ------------------------------------
        h3 = jnp.dot(h2_n.astype(bf16), w3_ref[...], preferred_element_type=f32)
        h3_n = bn(h3, g3_ref[...], b3_ref[...])

        # ---- residual add + ReLU (lane-dense 128-wide store) ---------------
        o_ref[...] = jnp.maximum(h3_n + resid, 0.0)

    out_pad = pl.pallas_call(
        kernel,
        out_shape=jax.ShapeDtypeStruct((n, c3p), f32),
        in_specs=[_VMEM_SPEC] * 11,
        out_specs=_VMEM_SPEC,
        scratch_shapes=[pltpu.VMEM((n, k2p), bf16)],   # im2col buffer (bf16)
    )(feats, nbr_idx, wa_b, w2_b, w3_b, ga, ba, g2, b2, g3, b3)

    # TODO(synk): for large point clouds, tile over N with a cross-tile
    # two-pass BN (global sum / sum-sq reduction) instead of this
    # whole-point-set-in-VMEM design (required to preserve full-batch BN
    # semantics once N no longer fits VMEM, esp. v7x's 64 MiB).
    return out_pad[:n_real, :cd]


# ----------------------------- pure-JAX reference ----------------------------

def bottleneck_reference(feats, nbr_idx, params):
    """Unfused f32 reference (same math) used only for validation."""
    def bn(y, g, b):
        m = jnp.mean(y, axis=0, keepdims=True)
        v = jnp.mean((y - m) ** 2, axis=0, keepdims=True)
        return (y - m) * jax.lax.rsqrt(v + BN_EPS) * g + b

    n = feats.shape[0]
    h1 = bn(feats @ params["w1"], params["g1"], params["b1"])
    valid = nbr_idx >= 0
    gathered = jnp.where(valid[:, :, None], h1[jnp.maximum(nbr_idx, 0)], 0.0)
    h2 = bn(gathered.reshape(n, -1) @ params["w2"], params["g2_"], params["b2"])
    h3 = bn(h2 @ params["w3"], params["g3"], params["b3"])
    cd = params["w3"].shape[1]
    if feats.shape[1] == cd:
        hd = feats
    else:
        hd = bn(feats @ params["wd"], params["gd"], params["bd"])
    return jnp.maximum(h3 + hd, 0.0)


# ------------------------------ glue / setup ---------------------------------

def build_neighbor_map(coords, dilation=1):
    """coords: [N,3] int numpy. Returns [N,27] int32 neighbor index map,
    -1 where the shifted coordinate is not present in the sparse point set.
    Reproduces the torchsparse kernel-map for kernel_size=3, stride=1."""
    # TODO(synk): stride>1 sparse coordinate downsampling (coord re-hash) not
    # implemented; this script exercises the stride=1 path only.
    lut = {tuple(c): i for i, c in enumerate(coords.tolist())}
    offsets = [(dx, dy, dz) for dx in (-1, 0, 1)
               for dy in (-1, 0, 1) for dz in (-1, 0, 1)]
    nbr = np.full((coords.shape[0], len(offsets)), -1, dtype=np.int32)
    for i, c in enumerate(coords.tolist()):
        for k, off in enumerate(offsets):
            key = (c[0] + off[0] * dilation,
                   c[1] + off[1] * dilation,
                   c[2] + off[2] * dilation)
            nbr[i, k] = lut.get(key, -1)
    return nbr


if __name__ == "__main__":
    key = jax.random.PRNGKey(0)

    # Small, module-consistent shapes: N sparse points, inc -> outc*4 channels.
    N = 64
    inc, outc = 16, 8
    expansion = 4          # Bottleneck.expansion
    ks = 3
    K = ks ** 3            # 27 kernel offsets

    keys = jax.random.split(key, 16)

    # deterministic unique voxel coordinates in a 6^3 grid
    grid = 6
    flat = jax.random.choice(keys[0], grid ** 3, shape=(N,), replace=False)
    coords = np.stack(
        np.unravel_index(np.asarray(flat), (grid, grid, grid)), axis=1
    ).astype(np.int32)
    nbr_idx = jnp.asarray(build_neighbor_map(coords, dilation=1), dtype=jnp.int32)

    feats = jax.random.normal(keys[1], (N, inc), dtype=jnp.float32)

    def winit(k, shape, fan_in):
        return (jax.random.normal(k, shape, dtype=jnp.float32)
                / np.sqrt(fan_in)).astype(jnp.float32)

    params = dict(
        # net: conv1(inc->outc, ks=1, bias=False) + bn1
        w1=winit(keys[2], (inc, outc), inc),
        g1=(1.0 + 0.1 * jax.random.normal(keys[3], (outc,))).astype(jnp.float32),
        b1=(0.1 * jax.random.normal(keys[4], (outc,))).astype(jnp.float32),
        # net: conv2(outc->outc, ks=3, bias=False) + bn2 (all 27 offsets)
        w2=winit(keys[5], (K * outc, outc), K * outc),
        g2_=(1.0 + 0.1 * jax.random.normal(keys[6], (outc,))).astype(jnp.float32),
        b2=(0.1 * jax.random.normal(keys[7], (outc,))).astype(jnp.float32),
        # net: conv3(outc->outc*4, ks=1, bias=False) + bn3
        w3=winit(keys[8], (outc, outc * expansion), outc),
        g3=(1.0 + 0.1 * jax.random.normal(keys[9], (outc * expansion,))).astype(jnp.float32),
        b3=(0.1 * jax.random.normal(keys[10], (outc * expansion,))).astype(jnp.float32),
        # downsample: conv(inc->outc*4, ks=1, bias=False) + bn
        wd=winit(keys[11], (inc, outc * expansion), inc),
        gd=(1.0 + 0.1 * jax.random.normal(keys[12], (outc * expansion,))).astype(jnp.float32),
        bd=(0.1 * jax.random.normal(keys[13], (outc * expansion,))).astype(jnp.float32),
    )

    out = bottleneck_forward(feats, nbr_idx, params)
    out = jax.block_until_ready(out)

    assert out.shape == (N, outc * expansion), out.shape
    assert out.dtype == jnp.float32
    assert bool(jnp.all(out >= 0.0))          # final ReLU
    assert bool(jnp.all(jnp.isfinite(out)))

    # numerical check vs. unfused f32 reference (kernel uses bf16 MXU inputs)
    ref = jax.block_until_ready(bottleneck_reference(feats, nbr_idx, params))
    np.testing.assert_allclose(np.asarray(out), np.asarray(ref),
                               atol=1e-1, rtol=1e-1)

    print("KERNEL_OK")
</pallas_src>

<mosaic_0001>
module attributes {stable_mosaic.version = 11 : i64} {
  func.func @kernel(%arg0: memref<64x16xf32, #tpu.memory_space<vmem>>, %arg1: memref<64x27xi32, #tpu.memory_space<vmem>>, %arg2: memref<16x256xbf16, #tpu.memory_space<vmem>>, %arg3: memref<256x128xbf16, #tpu.memory_space<vmem>>, %arg4: memref<128x128xbf16, #tpu.memory_space<vmem>>, %arg5: memref<1x256xf32, #tpu.memory_space<vmem>>, %arg6: memref<1x256xf32, #tpu.memory_space<vmem>>, %arg7: memref<1x128xf32, #tpu.memory_space<vmem>>, %arg8: memref<1x128xf32, #tpu.memory_space<vmem>>, %arg9: memref<1x128xf32, #tpu.memory_space<vmem>>, %arg10: memref<1x128xf32, #tpu.memory_space<vmem>>, %arg11: memref<64x128xf32, #tpu.memory_space<vmem>>, %arg12: memref<64x256xbf16, #tpu.memory_space<vmem>>) attributes {dimension_semantics = [], scalar_prefetch = 0 : i64, scratch_operands = 1 : i64, tpu.core_type = #tpu.core_type<tc>} {
    %c0 = arith.constant 0 : index
    %c0_0 = arith.constant 0 : index
    %0 = vector.load %arg0[%c0, %c0_0] : memref<64x16xf32, #tpu.memory_space<vmem>>, vector<64x16xf32>
    %1 = arith.truncf %0 : vector<64x16xf32> to vector<64x16xbf16>
    %c0_1 = arith.constant 0 : index
    %c0_2 = arith.constant 0 : index
    %2 = vector.load %arg2[%c0_1, %c0_2] : memref<16x256xbf16, #tpu.memory_space<vmem>>, vector<16x256xbf16>
    %cst = arith.constant dense<0.000000e+00> : vector<64x256xf32>
    %3 = tpu.matmul %1, %2, %cst {dimension_numbers = #tpu.dot_dimension_numbers<[1], [0], [0], [1], [0, 0, 1, 1], [], []>} : vector<64x16xbf16>, vector<16x256xbf16>, vector<64x256xf32> -> vector<64x256xf32>
    %c0_3 = arith.constant 0 : index
    %c0_4 = arith.constant 0 : index
    %4 = vector.load %arg5[%c0_3, %c0_4] : memref<1x256xf32, #tpu.memory_space<vmem>>, vector<1x256xf32>
    %c0_5 = arith.constant 0 : index
    %c0_6 = arith.constant 0 : index
    %5 = vector.load %arg6[%c0_5, %c0_6] : memref<1x256xf32, #tpu.memory_space<vmem>>, vector<1x256xf32>
    %cst_7 = arith.constant dense<0.000000e+00> : vector<256xf32>
    %6 = vector.multi_reduction <add>, %3, %cst_7 [0] : vector<64x256xf32> to vector<256xf32>
    %7 = vector.shape_cast %6 : vector<256xf32> to vector<1x256xf32>
    %8 = arith.mulf %3, %3 : vector<64x256xf32>
    %cst_8 = arith.constant dense<0.000000e+00> : vector<256xf32>
    %9 = vector.multi_reduction <add>, %8, %cst_8 [0] : vector<64x256xf32> to vector<256xf32>
    %10 = vector.shape_cast %9 : vector<256xf32> to vector<1x256xf32>
    %cst_9 = arith.constant 1.562500e-02 : f32
    %11 = vector.broadcast %cst_9 : f32 to vector<1x256xf32>
    %12 = arith.mulf %7, %11 : vector<1x256xf32>
    %cst_10 = arith.constant 1.562500e-02 : f32
    %13 = vector.broadcast %cst_10 : f32 to vector<1x256xf32>
    %14 = arith.mulf %10, %13 : vector<1x256xf32>
    %15 = arith.mulf %12, %12 : vector<1x256xf32>
    %16 = arith.subf %14, %15 : vector<1x256xf32>
    %cst_11 = arith.constant 9.99999974E-6 : f32
    %17 = vector.broadcast %cst_11 : f32 to vector<1x256xf32>
    %18 = arith.addf %16, %17 : vector<1x256xf32>
    %19 = math.rsqrt %18 : vector<1x256xf32>
    %20 = arith.mulf %4, %19 : vector<1x256xf32>
    %21 = arith.mulf %12, %20 : vector<1x256xf32>
    %22 = arith.subf %5, %21 : vector<1x256xf32>
    %23 = vector.broadcast %20 : vector<1x256xf32> to vector<64x256xf32>
    %24 = arith.mulf %3, %23 : vector<64x256xf32>
    %25 = vector.broadcast %22 : vector<1x256xf32> to vector<64x256xf32>
    %26 = arith.addf %24, %25 : vector<64x256xf32>
    %27 = vector.extract_strided_slice %26 {offsets = [0, 0], sizes = [64, 8], strides = [1, 1]} : vector<64x256xf32> to vector<64x8xf32>
    %28 = arith.truncf %27 : vector<64x8xf32> to vector<64x8xbf16>
    %29 = vector.extract_strided_slice %26 {offsets = [0, 128], sizes = [64, 128], strides = [1, 1]} : vector<64x256xf32> to vector<64x128xf32>
    %cst_12 = arith.constant 0.000000e+00 : bf16
    %30 = vector.broadcast %cst_12 : bf16 to vector<64x256xbf16>
    %c0_13 = arith.constant 0 : index
    %c0_14 = arith.constant 0 : index
    %31 = vector.load %arg12[%c0_13, %c0_14] : memref<64x256xbf16, #tpu.memory_space<vmem>>, vector<64x256xbf16>
    tpu.vector_store %arg12[%c0_13, %c0_14], %30 {strides = array<i32>} : memref<64x256xbf16, #tpu.memory_space<vmem>>, vector<64x256xbf16>,
    %32 = tpu.iota {dimensions = array<i32: 1>} : vector<64x64xi32>
    %c0_15 = arith.constant 0 : index
    %c0_16 = arith.constant 0 : index
    %33 = vector.load %arg1[%c0_15, %c0_16] : memref<64x27xi32, #tpu.memory_space<vmem>>, vector<64x1xi32>
    %34 = vector.broadcast %33 : vector<64x1xi32> to vector<64x64xi32>
    %35 = arith.cmpi eq, %34, %32 : vector<64x64xi32>
    %36 = arith.extui %35 : vector<64x64xi1> to vector<64x64xi32>
    %37 = arith.sitofp %36 : vector<64x64xi32> to vector<64x64xf32>
    %38 = arith.truncf %37 : vector<64x64xf32> to vector<64x64xbf16>
    %cst_17 = arith.constant dense<0.000000e+00> : vector<64x8xf32>
    %39 = tpu.matmul %38, %28, %cst_17 {dimension_numbers = #tpu.dot_dimension_numbers<[1], [0], [0], [1], [0, 0, 1, 1], [], []>} : vector<64x64xbf16>, vector<64x8xbf16>, vector<64x8xf32> -> vector<64x8xf32>
    %40 = arith.truncf %39 : vector<64x8xf32> to vector<64x8xbf16>
    %c0_18 = arith.constant 0 : index
    %c0_19 = arith.constant 0 : index
    %41 = vector.load %arg12[%c0_18, %c0_19] : memref<64x256xbf16, #tpu.memory_space<vmem>>, vector<64x8xbf16>
    tpu.vector_store %arg12[%c0_18, %c0_19], %40 {strides = array<i32>} : memref<64x256xbf16, #tpu.memory_space<vmem>>, vector<64x8xbf16>,
    %c0_20 = arith.constant 0 : index
    %c1 = arith.constant 1 : index
    %42 = vector.load %arg1[%c0_20, %c1] : memref<64x27xi32, #tpu.memory_space<vmem>>, vector<64x1xi32>
    %43 = vector.broadcast %42 : vector<64x1xi32> to vector<64x64xi32>
    %44 = arith.cmpi eq, %43, %32 : vector<64x64xi32>
    %45 = arith.extui %44 : vector<64x64xi1> to vector<64x64xi32>
    %46 = arith.sitofp %45 : vector<64x64xi32> to vector<64x64xf32>
    %47 = arith.truncf %46 : vector<64x64xf32> to vector<64x64xbf16>
    %cst_21 = arith.constant dense<0.000000e+00> : vector<64x8xf32>
    %48 = tpu.matmul %47, %28, %cst_21 {dimension_numbers = #tpu.dot_dimension_numbers<[1], [0], [0], [1], [0, 0, 1, 1], [], []>} : vector<64x64xbf16>, vector<64x8xbf16>, vector<64x8xf32> -> vector<64x8xf32>
    %49 = arith.truncf %48 : vector<64x8xf32> to vector<64x8xbf16>
    %c0_22 = arith.constant 0 : index
    %c8 = arith.constant 8 : index
    %50 = vector.load %arg12[%c0_22, %c8] : memref<64x256xbf16, #tpu.memory_space<vmem>>, vector<64x8xbf16>
    tpu.vector_store %arg12[%c0_22, %c8], %49 {strides = array<i32>} : memref<64x256xbf16, #tpu.memory_space<vmem>>, vector<64x8xbf16>,
    %c0_23 = arith.constant 0 : index
    %c2 = arith.constant 2 : index
    %51 = vector.load %arg1[%c0_23, %c2] : memref<64x27xi32, #tpu.memory_space<vmem>>, vector<64x1xi32>
    %52 = vector.broadcast %51 : vector<64x1xi32> to vector<64x64xi32>
    %53 = arith.cmpi eq, %52, %32 : vector<64x64xi32>
    %54 = arith.extui %53 : vector<64x64xi1> to vector<64x64xi32>
    %55 = arith.sitofp %54 : vector<64x64xi32> to vector<64x64xf32>
    %56 = arith.truncf %55 : vector<64x64xf32> to vector<64x64xbf16>
    %cst_24 = arith.constant dense<0.000000e+00> : vector<64x8xf32>
    %57 = tpu.matmul %56, %28, %cst_24 {dimension_numbers = #tpu.dot_dimension_numbers<[1], [0], [0], [1], [0, 0, 1, 1], [], []>} : vector<64x64xbf16>, vector<64x8xbf16>, vector<64x8xf32> -> vector<64x8xf32>
    %58 = arith.truncf %57 : vector<64x8xf32> to vector<64x8xbf16>
    %c0_25 = arith.constant 0 : index
    %c16 = arith.constant 16 : index
    %59 = vector.load %arg12[%c0_25, %c16] : memref<64x256xbf16, #tpu.memory_space<vmem>>, vector<64x8xbf16>
    tpu.vector_store %arg12[%c0_25, %c16], %58 {strides = array<i32>} : memref<64x256xbf16, #tpu.memory_space<vmem>>, vector<64x8xbf16>,
    %c0_26 = arith.constant 0 : index
    %c3 = arith.constant 3 : index
    %60 = vector.load %arg1[%c0_26, %c3] : memref<64x27xi32, #tpu.memory_space<vmem>>, vector<64x1xi32>
    %61 = vector.broadcast %60 : vector<64x1xi32> to vector<64x64xi32>
    %62 = arith.cmpi eq, %61, %32 : vector<64x64xi32>
    %63 = arith.extui %62 : vector<64x64xi1> to vector<64x64xi32>
    %64 = arith.sitofp %63 : vector<64x64xi32> to vector<64x64xf32>
    %65 = arith.truncf %64 : vector<64x64xf32> to vector<64x64xbf16>
    %cst_27 = arith.constant dense<0.000000e+00> : vector<64x8xf32>
    %66 = tpu.matmul %65, %28, %cst_27 {dimension_numbers = #tpu.dot_dimension_numbers<[1], [0], [0], [1], [0, 0, 1, 1], [], []>} : vector<64x64xbf16>, vector<64x8xbf16>, vector<64x8xf32> -> vector<64x8xf32>
    %67 = arith.truncf %66 : vector<64x8xf32> to vector<64x8xbf16>
    %c0_28 = arith.constant 0 : index
    %c24 = arith.constant 24 : index
    %68 = vector.load %arg12[%c0_28, %c24] : memref<64x256xbf16, #tpu.memory_space<vmem>>, vector<64x8xbf16>
    tpu.vector_store %arg12[%c0_28, %c24], %67 {strides = array<i32>} : memref<64x256xbf16, #tpu.memory_space<vmem>>, vector<64x8xbf16>,
    %c0_29 = arith.constant 0 : index
    %c4 = arith.constant 4 : index
    %69 = vector.load %arg1[%c0_29, %c4] : memref<64x27xi32, #tpu.memory_space<vmem>>, vector<64x1xi32>
    %70 = vector.broadcast %69 : vector<64x1xi32> to vector<64x64xi32>
    %71 = arith.cmpi eq, %70, %32 : vector<64x64xi32>
    %72 = arith.extui %71 : vector<64x64xi1> to vector<64x64xi32>
    %73 = arith.sitofp %72 : vector<64x64xi32> to vector<64x64xf32>
    %74 = arith.truncf %73 : vector<64x64xf32> to vector<64x64xbf16>
    %cst_30 = arith.constant dense<0.000000e+00> : vector<64x8xf32>
    %75 = tpu.matmul %74, %28, %cst_30 {dimension_numbers = #tpu.dot_dimension_numbers<[1], [0], [0], [1], [0, 0, 1, 1], [], []>} : vector<64x64xbf16>, vector<64x8xbf16>, vector<64x8xf32> -> vector<64x8xf32>
    %76 = arith.truncf %75 : vector<64x8xf32> to vector<64x8xbf16>
    %c0_31 = arith.constant 0 : index
    %c32 = arith.constant 32 : index
    %77 = vector.load %arg12[%c0_31, %c32] : memref<64x256xbf16, #tpu.memory_space<vmem>>, vector<64x8xbf16>
    tpu.vector_store %arg12[%c0_31, %c32], %76 {strides = array<i32>} : memref<64x256xbf16, #tpu.memory_space<vmem>>, vector<64x8xbf16>,
    %c0_32 = arith.constant 0 : index
    %c5 = arith.constant 5 : index
    %78 = vector.load %arg1[%c0_32, %c5] : memref<64x27xi32, #tpu.memory_space<vmem>>, vector<64x1xi32>
    %79 = vector.broadcast %78 : vector<64x1xi32> to vector<64x64xi32>
    %80 = arith.cmpi eq, %79, %32 : vector<64x64xi32>
    %81 = arith.extui %80 : vector<64x64xi1> to vector<64x64xi32>
    %82 = arith.sitofp %81 : vector<64x64xi32> to vector<64x64xf32>
    %83 = arith.truncf %82 : vector<64x64xf32> to vector<64x64xbf16>
    %cst_33 = arith.constant dense<0.000000e+00> : vector<64x8xf32>
    %84 = tpu.matmul %83, %28, %cst_33 {dimension_numbers = #tpu.dot_dimension_numbers<[1], [0], [0], [1], [0, 0, 1, 1], [], []>} : vector<64x64xbf16>, vector<64x8xbf16>, vector<64x8xf32> -> vector<64x8xf32>
    %85 = arith.truncf %84 : vector<64x8xf32> to vector<64x8xbf16>
    %c0_34 = arith.constant 0 : index
    %c40 = arith.constant 40 : index
    %86 = vector.load %arg12[%c0_34, %c40] : memref<64x256xbf16, #tpu.memory_space<vmem>>, vector<64x8xbf16>
    tpu.vector_store %arg12[%c0_34, %c40], %85 {strides = array<i32>} : memref<64x256xbf16, #tpu.memory_space<vmem>>, vector<64x8xbf16>,
    %c0_35 = arith.constant 0 : index
    %c6 = arith.constant 6 : index
    %87 = vector.load %arg1[%c0_35, %c6] : memref<64x27xi32, #tpu.memory_space<vmem>>, vector<64x1xi32>
    %88 = vector.broadcast %87 : vector<64x1xi32> to vector<64x64xi32>
    %89 = arith.cmpi eq, %88, %32 : vector<64x64xi32>
    %90 = arith.extui %89 : vector<64x64xi1> to vector<64x64xi32>
    %91 = arith.sitofp %90 : vector<64x64xi32> to vector<64x64xf32>
    %92 = arith.truncf %91 : vector<64x64xf32> to vector<64x64xbf16>
    %cst_36 = arith.constant dense<0.000000e+00> : vector<64x8xf32>
    %93 = tpu.matmul %92, %28, %cst_36 {dimension_numbers = #tpu.dot_dimension_numbers<[1], [0], [0], [1], [0, 0, 1, 1], [], []>} : vector<64x64xbf16>, vector<64x8xbf16>, vector<64x8xf32> -> vector<64x8xf32>
    %94 = arith.truncf %93 : vector<64x8xf32> to vector<64x8xbf16>
    %c0_37 = arith.constant 0 : index
    %c48 = arith.constant 48 : index
    %95 = vector.load %arg12[%c0_37, %c48] : memref<64x256xbf16, #tpu.memory_space<vmem>>, vector<64x8xbf16>
    tpu.vector_store %arg12[%c0_37, %c48], %94 {strides = array<i32>} : memref<64x256xbf16, #tpu.memory_space<vmem>>, vector<64x8xbf16>,
    %c0_38 = arith.constant 0 : index
    %c7 = arith.constant 7 : index
    %96 = vector.load %arg1[%c0_38, %c7] : memref<64x27xi32, #tpu.memory_space<vmem>>, vector<64x1xi32>
    %97 = vector.broadcast %96 : vector<64x1xi32> to vector<64x64xi32>
    %98 = arith.cmpi eq, %97, %32 : vector<64x64xi32>
    %99 = arith.extui %98 : vector<64x64xi1> to vector<64x64xi32>
    %100 = arith.sitofp %99 : vector<64x64xi32> to vector<64x64xf32>
    %101 = arith.truncf %100 : vector<64x64xf32> to vector<64x64xbf16>
    %cst_39 = arith.constant dense<0.000000e+00> : vector<64x8xf32>
    %102 = tpu.matmul %101, %28, %cst_39 {dimension_numbers = #tpu.dot_dimension_numbers<[1], [0], [0], [1], [0, 0, 1, 1], [], []>} : vector<64x64xbf16>, vector<64x8xbf16>, vector<64x8xf32> -> vector<64x8xf32>
    %103 = arith.truncf %102 : vector<64x8xf32> to vector<64x8xbf16>
    %c0_40 = arith.constant 0 : index
    %c56 = arith.constant 56 : index
    %104 = vector.load %arg12[%c0_40, %c56] : memref<64x256xbf16, #tpu.memory_space<vmem>>, vector<64x8xbf16>
    tpu.vector_store %arg12[%c0_40, %c56], %103 {strides = array<i32>} : memref<64x256xbf16, #tpu.memory_space<vmem>>, vector<64x8xbf16>,
    %c0_41 = arith.constant 0 : index
    %c8_42 = arith.constant 8 : index
    %105 = vector.load %arg1[%c0_41, %c8_42] : memref<64x27xi32, #tpu.memory_space<vmem>>, vector<64x1xi32>
    %106 = vector.broadcast %105 : vector<64x1xi32> to vector<64x64xi32>
    %107 = arith.cmpi eq, %106, %32 : vector<64x64xi32>
    %108 = arith.extui %107 : vector<64x64xi1> to vector<64x64xi32>
    %109 = arith.sitofp %108 : vector<64x64xi32> to vector<64x64xf32>
    %110 = arith.truncf %109 : vector<64x64xf32> to vector<64x64xbf16>
    %cst_43 = arith.constant dense<0.000000e+00> : vector<64x8xf32>
    %111 = tpu.matmul %110, %28, %cst_43 {dimension_numbers = #tpu.dot_dimension_numbers<[1], [0], [0], [1], [0, 0, 1, 1], [], []>} : vector<64x64xbf16>, vector<64x8xbf16>, vector<64x8xf32> -> vector<64x8xf32>
    %112 = arith.truncf %111 : vector<64x8xf32> to vector<64x8xbf16>
    %c0_44 = arith.constant 0 : index
    %c64 = arith.constant 64 : index
    %113 = vector.load %arg12[%c0_44, %c64] : memref<64x256xbf16, #tpu.memory_space<vmem>>, vector<64x8xbf16>
    tpu.vector_store %arg12[%c0_44, %c64], %112 {strides = array<i32>} : memref<64x256xbf16, #tpu.memory_space<vmem>>, vector<64x8xbf16>,
    %c0_45 = arith.constant 0 : index
    %c9 = arith.constant 9 : index
    %114 = vector.load %arg1[%c0_45, %c9] : memref<64x27xi32, #tpu.memory_space<vmem>>, vector<64x1xi32>
    %115 = vector.broadcast %114 : vector<64x1xi32> to vector<64x64xi32>
    %116 = arith.cmpi eq, %115, %32 : vector<64x64xi32>
    %117 = arith.extui %116 : vector<64x64xi1> to vector<64x64xi32>
    %118 = arith.sitofp %117 : vector<64x64xi32> to vector<64x64xf32>
    %119 = arith.truncf %118 : vector<64x64xf32> to vector<64x64xbf16>
    %cst_46 = arith.constant dense<0.000000e+00> : vector<64x8xf32>
    %120 = tpu.matmul %119, %28, %cst_46 {dimension_numbers = #tpu.dot_dimension_numbers<[1], [0], [0], [1], [0, 0, 1, 1], [], []>} : vector<64x64xbf16>, vector<64x8xbf16>, vector<64x8xf32> -> vector<64x8xf32>
    %121 = arith.truncf %120 : vector<64x8xf32> to vector<64x8xbf16>
    %c0_47 = arith.constant 0 : index
    %c72 = arith.constant 72 : index
    %122 = vector.load %arg12[%c0_47, %c72] : memref<64x256xbf16, #tpu.memory_space<vmem>>, vector<64x8xbf16>
    tpu.vector_store %arg12[%c0_47, %c72], %121 {strides = array<i32>} : memref<64x256xbf16, #tpu.memory_space<vmem>>, vector<64x8xbf16>,
    %c0_48 = arith.constant 0 : index
    %c10 = arith.constant 10 : index
    %123 = vector.load %arg1[%c0_48, %c10] : memref<64x27xi32, #tpu.memory_space<vmem>>, vector<64x1xi32>
    %124 = vector.broadcast %123 : vector<64x1xi32> to vector<64x64xi32>
    %125 = arith.cmpi eq, %124, %32 : vector<64x64xi32>
    %126 = arith.extui %125 : vector<64x64xi1> to vector<64x64xi32>
    %127 = arith.sitofp %126 : vector<64x64xi32> to vector<64x64xf32>
    %128 = arith.truncf %127 : vector<64x64xf32> to vector<64x64xbf16>
    %cst_49 = arith.constant dense<0.000000e+00> : vector<64x8xf32>
    %129 = tpu.matmul %128, %28, %cst_49 {dimension_numbers = #tpu.dot_dimension_numbers<[1], [0], [0], [1], [0, 0, 1, 1], [], []>} : vector<64x64xbf16>, vector<64x8xbf16>, vector<64x8xf32> -> vector<64x8xf32>
    %130 = arith.truncf %129 : vector<64x8xf32> to vector<64x8xbf16>
    %c0_50 = arith.constant 0 : index
    %c80 = arith.constant 80 : index
    %131 = vector.load %arg12[%c0_50, %c80] : memref<64x256xbf16, #tpu.memory_space<vmem>>, vector<64x8xbf16>
    tpu.vector_store %arg12[%c0_50, %c80], %130 {strides = array<i32>} : memref<64x256xbf16, #tpu.memory_space<vmem>>, vector<64x8xbf16>,
    %c0_51 = arith.constant 0 : index
    %c11 = arith.constant 11 : index
    %132 = vector.load %arg1[%c0_51, %c11] : memref<64x27xi32, #tpu.memory_space<vmem>>, vector<64x1xi32>
    %133 = vector.broadcast %132 : vector<64x1xi32> to vector<64x64xi32>
    %134 = arith.cmpi eq, %133, %32 : vector<64x64xi32>
    %135 = arith.extui %134 : vector<64x64xi1> to vector<64x64xi32>
    %136 = arith.sitofp %135 : vector<64x64xi32> to vector<64x64xf32>
    %137 = arith.truncf %136 : vector<64x64xf32> to vector<64x64xbf16>
    %cst_52 = arith.constant dense<0.000000e+00> : vector<64x8xf32>
    %138 = tpu.matmul %137, %28, %cst_52 {dimension_numbers = #tpu.dot_dimension_numbers<[1], [0], [0], [1], [0, 0, 1, 1], [], []>} : vector<64x64xbf16>, vector<64x8xbf16>, vector<64x8xf32> -> vector<64x8xf32>
    %139 = arith.truncf %138 : vector<64x8xf32> to vector<64x8xbf16>
    %c0_53 = arith.constant 0 : index
    %c88 = arith.constant 88 : index
    %140 = vector.load %arg12[%c0_53, %c88] : memref<64x256xbf16, #tpu.memory_space<vmem>>, vector<64x8xbf16>
    tpu.vector_store %arg12[%c0_53, %c88], %139 {strides = array<i32>} : memref<64x256xbf16, #tpu.memory_space<vmem>>, vector<64x8xbf16>,
    %c0_54 = arith.constant 0 : index
    %c12 = arith.constant 12 : index
    %141 = vector.load %arg1[%c0_54, %c12] : memref<64x27xi32, #tpu.memory_space<vmem>>, vector<64x1xi32>
    %142 = vector.broadcast %141 : vector<64x1xi32> to vector<64x64xi32>
    %143 = arith.cmpi eq, %142, %32 : vector<64x64xi32>
    %144 = arith.extui %143 : vector<64x64xi1> to vector<64x64xi32>
    %145 = arith.sitofp %144 : vector<64x64xi32> to vector<64x64xf32>
    %146 = arith.truncf %145 : vector<64x64xf32> to vector<64x64xbf16>
    %cst_55 = arith.constant dense<0.000000e+00> : vector<64x8xf32>
    %147 = tpu.matmul %146, %28, %cst_55 {dimension_numbers = #tpu.dot_dimension_numbers<[1], [0], [0], [1], [0, 0, 1, 1], [], []>} : vector<64x64xbf16>, vector<64x8xbf16>, vector<64x8xf32> -> vector<64x8xf32>
    %148 = arith.truncf %147 : vector<64x8xf32> to vector<64x8xbf16>
    %c0_56 = arith.constant 0 : index
    %c96 = arith.constant 96 : index
    %149 = vector.load %arg12[%c0_56, %c96] : memref<64x256xbf16, #tpu.memory_space<vmem>>, vector<64x8xbf16>
    tpu.vector_store %arg12[%c0_56, %c96], %148 {strides = array<i32>} : memref<64x256xbf16, #tpu.memory_space<vmem>>, vector<64x8xbf16>,
    %c0_57 = arith.constant 0 : index
    %c13 = arith.constant 13 : index
    %150 = vector.load %arg1[%c0_57, %c13] : memref<64x27xi32, #tpu.memory_space<vmem>>, vector<64x1xi32>
    %151 = vector.broadcast %150 : vector<64x1xi32> to vector<64x64xi32>
    %152 = arith.cmpi eq, %151, %32 : vector<64x64xi32>
    %153 = arith.extui %152 : vector<64x64xi1> to vector<64x64xi32>
    %154 = arith.sitofp %153 : vector<64x64xi32> to vector<64x64xf32>
    %155 = arith.truncf %154 : vector<64x64xf32> to vector<64x64xbf16>
    %cst_58 = arith.constant dense<0.000000e+00> : vector<64x8xf32>
    %156 = tpu.matmul %155, %28, %cst_58 {dimension_numbers = #tpu.dot_dimension_numbers<[1], [0], [0], [1], [0, 0, 1, 1], [], []>} : vector<64x64xbf16>, vector<64x8xbf16>, vector<64x8xf32> -> vector<64x8xf32>
    %157 = arith.truncf %156 : vector<64x8xf32> to vector<64x8xbf16>
    %c0_59 = arith.constant 0 : index
    %c104 = arith.constant 104 : index
    %158 = vector.load %arg12[%c0_59, %c104] : memref<64x256xbf16, #tpu.memory_space<vmem>>, vector<64x8xbf16>
    tpu.vector_store %arg12[%c0_59, %c104], %157 {strides = array<i32>} : memref<64x256xbf16, #tpu.memory_space<vmem>>, vector<64x8xbf16>,
    %c0_60 = arith.constant 0 : index
    %c14 = arith.constant 14 : index
    %159 = vector.load %arg1[%c0_60, %c14] : memref<64x27xi32, #tpu.memory_space<vmem>>, vector<64x1xi32>
    %160 = vector.broadcast %159 : vector<64x1xi32> to vector<64x64xi32>
    %161 = arith.cmpi eq, %160, %32 : vector<64x64xi32>
    %162 = arith.extui %161 : vector<64x64xi1> to vector<64x64xi32>
    %163 = arith.sitofp %162 : vector<64x64xi32> to vector<64x64xf32>
    %164 = arith.truncf %163 : vector<64x64xf32> to vector<64x64xbf16>
    %cst_61 = arith.constant dense<0.000000e+00> : vector<64x8xf32>
    %165 = tpu.matmul %164, %28, %cst_61 {dimension_numbers = #tpu.dot_dimension_numbers<[1], [0], [0], [1], [0, 0, 1, 1], [], []>} : vector<64x64xbf16>, vector<64x8xbf16>, vector<64x8xf32> -> vector<64x8xf32>
    %166 = arith.truncf %165 : vector<64x8xf32> to vector<64x8xbf16>
    %c0_62 = arith.constant 0 : index
    %c112 = arith.constant 112 : index
    %167 = vector.load %arg12[%c0_62, %c112] : memref<64x256xbf16, #tpu.memory_space<vmem>>, vector<64x8xbf16>
    tpu.vector_store %arg12[%c0_62, %c112], %166 {strides = array<i32>} : memref<64x256xbf16, #tpu.memory_space<vmem>>, vector<64x8xbf16>,
    %c0_63 = arith.constant 0 : index
    %c15 = arith.constant 15 : index
    %168 = vector.load %arg1[%c0_63, %c15] : memref<64x27xi32, #tpu.memory_space<vmem>>, vector<64x1xi32>
    %169 = vector.broadcast %168 : vector<64x1xi32> to vector<64x64xi32>
    %170 = arith.cmpi eq, %169, %32 : vector<64x64xi32>
    %171 = arith.extui %170 : vector<64x64xi1> to vector<64x64xi32>
    %172 = arith.sitofp %171 : vector<64x64xi32> to vector<64x64xf32>
    %173 = arith.truncf %172 : vector<64x64xf32> to vector<64x64xbf16>
    %cst_64 = arith.constant dense<0.000000e+00> : vector<64x8xf32>
    %174 = tpu.matmul %173, %28, %cst_64 {dimension_numbers = #tpu.dot_dimension_numbers<[1], [0], [0], [1], [0, 0, 1, 1], [], []>} : vector<64x64xbf16>, vector<64x8xbf16>, vector<64x8xf32> -> vector<64x8xf32>
    %175 = arith.truncf %174 : vector<64x8xf32> to vector<64x8xbf16>
    %c0_65 = arith.constant 0 : index
    %c120 = arith.constant 120 : index
    %176 = vector.load %arg12[%c0_65, %c120] : memref<64x256xbf16, #tpu.memory_space<vmem>>, vector<64x8xbf16>
    tpu.vector_store %arg12[%c0_65, %c120], %175 {strides = array<i32>} : memref<64x256xbf16, #tpu.memory_space<vmem>>, vector<64x8xbf16>,
    %c0_66 = arith.constant 0 : index
    %c16_67 = arith.constant 16 : index
    %177 = vector.load %arg1[%c0_66, %c16_67] : memref<64x27xi32, #tpu.memory_space<vmem>>, vector<64x1xi32>
    %178 = vector.broadcast %177 : vector<64x1xi32> to vector<64x64xi32>
    %179 = arith.cmpi eq, %178, %32 : vector<64x64xi32>
    %180 = arith.extui %179 : vector<64x64xi1> to vector<64x64xi32>
    %181 = arith.sitofp %180 : vector<64x64xi32> to vector<64x64xf32>
    %182 = arith.truncf %181 : vector<64x64xf32> to vector<64x64xbf16>
    %cst_68 = arith.constant dense<0.000000e+00> : vector<64x8xf32>
    %183 = tpu.matmul %182, %28, %cst_68 {dimension_numbers = #tpu.dot_dimension_numbers<[1], [0], [0], [1], [0, 0, 1, 1], [], []>} : vector<64x64xbf16>, vector<64x8xbf16>, vector<64x8xf32> -> vector<64x8xf32>
    %184 = arith.truncf %183 : vector<64x8xf32> to vector<64x8xbf16>
    %c0_69 = arith.constant 0 : index
    %c128 = arith.constant 128 : index
    %185 = vector.load %arg12[%c0_69, %c128] : memref<64x256xbf16, #tpu.memory_space<vmem>>, vector<64x8xbf16>
    tpu.vector_store %arg12[%c0_69, %c128], %184 {strides = array<i32>} : memref<64x256xbf16, #tpu.memory_space<vmem>>, vector<64x8xbf16>,
    %c0_70 = arith.constant 0 : index
    %c17 = arith.constant 17 : index
    %186 = vector.load %arg1[%c0_70, %c17] : memref<64x27xi32, #tpu.memory_space<vmem>>, vector<64x1xi32>
    %187 = vector.broadcast %186 : vector<64x1xi32> to vector<64x64xi32>
    %188 = arith.cmpi eq, %187, %32 : vector<64x64xi32>
    %189 = arith.extui %188 : vector<64x64xi1> to vector<64x64xi32>
    %190 = arith.sitofp %189 : vector<64x64xi32> to vector<64x64xf32>
    %191 = arith.truncf %190 : vector<64x64xf32> to vector<64x64xbf16>
    %cst_71 = arith.constant dense<0.000000e+00> : vector<64x8xf32>
    %192 = tpu.matmul %191, %28, %cst_71 {dimension_numbers = #tpu.dot_dimension_numbers<[1], [0], [0], [1], [0, 0, 1, 1], [], []>} : vector<64x64xbf16>, vector<64x8xbf16>, vector<64x8xf32> -> vector<64x8xf32>
    %193 = arith.truncf %192 : vector<64x8xf32> to vector<64x8xbf16>
    %c0_72 = arith.constant 0 : index
    %c136 = arith.constant 136 : index
    %194 = vector.load %arg12[%c0_72, %c136] : memref<64x256xbf16, #tpu.memory_space<vmem>>, vector<64x8xbf16>
    tpu.vector_store %arg12[%c0_72, %c136], %193 {strides = array<i32>} : memref<64x256xbf16, #tpu.memory_space<vmem>>, vector<64x8xbf16>,
    %c0_73 = arith.constant 0 : index
    %c18 = arith.constant 18 : index
    %195 = vector.load %arg1[%c0_73, %c18] : memref<64x27xi32, #tpu.memory_space<vmem>>, vector<64x1xi32>
    %196 = vector.broadcast %195 : vector<64x1xi32> to vector<64x64xi32>
    %197 = arith.cmpi eq, %196, %32 : vector<64x64xi32>
    %198 = arith.extui %197 : vector<64x64xi1> to vector<64x64xi32>
    %199 = arith.sitofp %198 : vector<64x64xi32> to vector<64x64xf32>
    %200 = arith.truncf %199 : vector<64x64xf32> to vector<64x64xbf16>
    %cst_74 = arith.constant dense<0.000000e+00> : vector<64x8xf32>
    %201 = tpu.matmul %200, %28, %cst_74 {dimension_numbers = #tpu.dot_dimension_numbers<[1], [0], [0], [1], [0, 0, 1, 1], [], []>} : vector<64x64xbf16>, vector<64x8xbf16>, vector<64x8xf32> -> vector<64x8xf32>
    %202 = arith.truncf %201 : vector<64x8xf32> to vector<64x8xbf16>
    %c0_75 = arith.constant 0 : index
    %c144 = arith.constant 144 : index
    %203 = vector.load %arg12[%c0_75, %c144] : memref<64x256xbf16, #tpu.memory_space<vmem>>, vector<64x8xbf16>
    tpu.vector_store %arg12[%c0_75, %c144], %202 {strides = array<i32>} : memref<64x256xbf16, #tpu.memory_space<vmem>>, vector<64x8xbf16>,
    %c0_76 = arith.constant 0 : index
    %c19 = arith.constant 19 : index
    %204 = vector.load %arg1[%c0_76, %c19] : memref<64x27xi32, #tpu.memory_space<vmem>>, vector<64x1xi32>
    %205 = vector.broadcast %204 : vector<64x1xi32> to vector<64x64xi32>
    %206 = arith.cmpi eq, %205, %32 : vector<64x64xi32>
    %207 = arith.extui %206 : vector<64x64xi1> to vector<64x64xi32>
    %208 = arith.sitofp %207 : vector<64x64xi32> to vector<64x64xf32>
    %209 = arith.truncf %208 : vector<64x64xf32> to vector<64x64xbf16>
    %cst_77 = arith.constant dense<0.000000e+00> : vector<64x8xf32>
    %210 = tpu.matmul %209, %28, %cst_77 {dimension_numbers = #tpu.dot_dimension_numbers<[1], [0], [0], [1], [0, 0, 1, 1], [], []>} : vector<64x64xbf16>, vector<64x8xbf16>, vector<64x8xf32> -> vector<64x8xf32>
    %211 = arith.truncf %210 : vector<64x8xf32> to vector<64x8xbf16>
    %c0_78 = arith.constant 0 : index
    %c152 = arith.constant 152 : index
    %212 = vector.load %arg12[%c0_78, %c152] : memref<64x256xbf16, #tpu.memory_space<vmem>>, vector<64x8xbf16>
    tpu.vector_store %arg12[%c0_78, %c152], %211 {strides = array<i32>} : memref<64x256xbf16, #tpu.memory_space<vmem>>, vector<64x8xbf16>,
    %c0_79 = arith.constant 0 : index
    %c20 = arith.constant 20 : index
    %213 = vector.load %arg1[%c0_79, %c20] : memref<64x27xi32, #tpu.memory_space<vmem>>, vector<64x1xi32>
    %214 = vector.broadcast %213 : vector<64x1xi32> to vector<64x64xi32>
    %215 = arith.cmpi eq, %214, %32 : vector<64x64xi32>
    %216 = arith.extui %215 : vector<64x64xi1> to vector<64x64xi32>
    %217 = arith.sitofp %216 : vector<64x64xi32> to vector<64x64xf32>
    %218 = arith.truncf %217 : vector<64x64xf32> to vector<64x64xbf16>
    %cst_80 = arith.constant dense<0.000000e+00> : vector<64x8xf32>
    %219 = tpu.matmul %218, %28, %cst_80 {dimension_numbers = #tpu.dot_dimension_numbers<[1], [0], [0], [1], [0, 0, 1, 1], [], []>} : vector<64x64xbf16>, vector<64x8xbf16>, vector<64x8xf32> -> vector<64x8xf32>
    %220 = arith.truncf %219 : vector<64x8xf32> to vector<64x8xbf16>
    %c0_81 = arith.constant 0 : index
    %c160 = arith.constant 160 : index
    %221 = vector.load %arg12[%c0_81, %c160] : memref<64x256xbf16, #tpu.memory_space<vmem>>, vector<64x8xbf16>
    tpu.vector_store %arg12[%c0_81, %c160], %220 {strides = array<i32>} : memref<64x256xbf16, #tpu.memory_space<vmem>>, vector<64x8xbf16>,
    %c0_82 = arith.constant 0 : index
    %c21 = arith.constant 21 : index
    %222 = vector.load %arg1[%c0_82, %c21] : memref<64x27xi32, #tpu.memory_space<vmem>>, vector<64x1xi32>
    %223 = vector.broadcast %222 : vector<64x1xi32> to vector<64x64xi32>
    %224 = arith.cmpi eq, %223, %32 : vector<64x64xi32>
    %225 = arith.extui %224 : vector<64x64xi1> to vector<64x64xi32>
    %226 = arith.sitofp %225 : vector<64x64xi32> to vector<64x64xf32>
    %227 = arith.truncf %226 : vector<64x64xf32> to vector<64x64xbf16>
    %cst_83 = arith.constant dense<0.000000e+00> : vector<64x8xf32>
    %228 = tpu.matmul %227, %28, %cst_83 {dimension_numbers = #tpu.dot_dimension_numbers<[1], [0], [0], [1], [0, 0, 1, 1], [], []>} : vector<64x64xbf16>, vector<64x8xbf16>, vector<64x8xf32> -> vector<64x8xf32>
    %229 = arith.truncf %228 : vector<64x8xf32> to vector<64x8xbf16>
    %c0_84 = arith.constant 0 : index
    %c168 = arith.constant 168 : index
    %230 = vector.load %arg12[%c0_84, %c168] : memref<64x256xbf16, #tpu.memory_space<vmem>>, vector<64x8xbf16>
    tpu.vector_store %arg12[%c0_84, %c168], %229 {strides = array<i32>} : memref<64x256xbf16, #tpu.memory_space<vmem>>, vector<64x8xbf16>,
    %c0_85 = arith.constant 0 : index
    %c22 = arith.constant 22 : index
    %231 = vector.load %arg1[%c0_85, %c22] : memref<64x27xi32, #tpu.memory_space<vmem>>, vector<64x1xi32>
    %232 = vector.broadcast %231 : vector<64x1xi32> to vector<64x64xi32>
    %233 = arith.cmpi eq, %232, %32 : vector<64x64xi32>
    %234 = arith.extui %233 : vector<64x64xi1> to vector<64x64xi32>
    %235 = arith.sitofp %234 : vector<64x64xi32> to vector<64x64xf32>
    %236 = arith.truncf %235 : vector<64x64xf32> to vector<64x64xbf16>
    %cst_86 = arith.constant dense<0.000000e+00> : vector<64x8xf32>
    %237 = tpu.matmul %236, %28, %cst_86 {dimension_numbers = #tpu.dot_dimension_numbers<[1], [0], [0], [1], [0, 0, 1, 1], [], []>} : vector<64x64xbf16>, vector<64x8xbf16>, vector<64x8xf32> -> vector<64x8xf32>
    %238 = arith.truncf %237 : vector<64x8xf32> to vector<64x8xbf16>
    %c0_87 = arith.constant 0 : index
    %c176 = arith.constant 176 : index
    %239 = vector.load %arg12[%c0_87, %c176] : memref<64x256xbf16, #tpu.memory_space<vmem>>, vector<64x8xbf16>
    tpu.vector_store %arg12[%c0_87, %c176], %238 {strides = array<i32>} : memref<64x256xbf16, #tpu.memory_space<vmem>>, vector<64x8xbf16>,
    %c0_88 = arith.constant 0 : index
    %c23 = arith.constant 23 : index
    %240 = vector.load %arg1[%c0_88, %c23] : memref<64x27xi32, #tpu.memory_space<vmem>>, vector<64x1xi32>
    %241 = vector.broadcast %240 : vector<64x1xi32> to vector<64x64xi32>
    %242 = arith.cmpi eq, %241, %32 : vector<64x64xi32>
    %243 = arith.extui %242 : vector<64x64xi1> to vector<64x64xi32>
    %244 = arith.sitofp %243 : vector<64x64xi32> to vector<64x64xf32>
    %245 = arith.truncf %244 : vector<64x64xf32> to vector<64x64xbf16>
    %cst_89 = arith.constant dense<0.000000e+00> : vector<64x8xf32>
    %246 = tpu.matmul %245, %28, %cst_89 {dimension_numbers = #tpu.dot_dimension_numbers<[1], [0], [0], [1], [0, 0, 1, 1], [], []>} : vector<64x64xbf16>, vector<64x8xbf16>, vector<64x8xf32> -> vector<64x8xf32>
    %247 = arith.truncf %246 : vector<64x8xf32> to vector<64x8xbf16>
    %c0_90 = arith.constant 0 : index
    %c184 = arith.constant 184 : index
    %248 = vector.load %arg12[%c0_90, %c184] : memref<64x256xbf16, #tpu.memory_space<vmem>>, vector<64x8xbf16>
    tpu.vector_store %arg12[%c0_90, %c184], %247 {strides = array<i32>} : memref<64x256xbf16, #tpu.memory_space<vmem>>, vector<64x8xbf16>,
    %c0_91 = arith.constant 0 : index
    %c24_92 = arith.constant 24 : index
    %249 = vector.load %arg1[%c0_91, %c24_92] : memref<64x27xi32, #tpu.memory_space<vmem>>, vector<64x1xi32>
    %250 = vector.broadcast %249 : vector<64x1xi32> to vector<64x64xi32>
    %251 = arith.cmpi eq, %250, %32 : vector<64x64xi32>
    %252 = arith.extui %251 : vector<64x64xi1> to vector<64x64xi32>
    %253 = arith.sitofp %252 : vector<64x64xi32> to vector<64x64xf32>
    %254 = arith.truncf %253 : vector<64x64xf32> to vector<64x64xbf16>
    %cst_93 = arith.constant dense<0.000000e+00> : vector<64x8xf32>
    %255 = tpu.matmul %254, %28, %cst_93 {dimension_numbers = #tpu.dot_dimension_numbers<[1], [0], [0], [1], [0, 0, 1, 1], [], []>} : vector<64x64xbf16>, vector<64x8xbf16>, vector<64x8xf32> -> vector<64x8xf32>
    %256 = arith.truncf %255 : vector<64x8xf32> to vector<64x8xbf16>
    %c0_94 = arith.constant 0 : index
    %c192 = arith.constant 192 : index
    %257 = vector.load %arg12[%c0_94, %c192] : memref<64x256xbf16, #tpu.memory_space<vmem>>, vector<64x8xbf16>
    tpu.vector_store %arg12[%c0_94, %c192], %256 {strides = array<i32>} : memref<64x256xbf16, #tpu.memory_space<vmem>>, vector<64x8xbf16>,
    %c0_95 = arith.constant 0 : index
    %c25 = arith.constant 25 : index
    %258 = vector.load %arg1[%c0_95, %c25] : memref<64x27xi32, #tpu.memory_space<vmem>>, vector<64x1xi32>
    %259 = vector.broadcast %258 : vector<64x1xi32> to vector<64x64xi32>
    %260 = arith.cmpi eq, %259, %32 : vector<64x64xi32>
    %261 = arith.extui %260 : vector<64x64xi1> to vector<64x64xi32>
    %262 = arith.sitofp %261 : vector<64x64xi32> to vector<64x64xf32>
    %263 = arith.truncf %262 : vector<64x64xf32> to vector<64x64xbf16>
    %cst_96 = arith.constant dense<0.000000e+00> : vector<64x8xf32>
    %264 = tpu.matmul %263, %28, %cst_96 {dimension_numbers = #tpu.dot_dimension_numbers<[1], [0], [0], [1], [0, 0, 1, 1], [], []>} : vector<64x64xbf16>, vector<64x8xbf16>, vector<64x8xf32> -> vector<64x8xf32>
    %265 = arith.truncf %264 : vector<64x8xf32> to vector<64x8xbf16>
    %c0_97 = arith.constant 0 : index
    %c200 = arith.constant 200 : index
    %266 = vector.load %arg12[%c0_97, %c200] : memref<64x256xbf16, #tpu.memory_space<vmem>>, vector<64x8xbf16>
    tpu.vector_store %arg12[%c0_97, %c200], %265 {strides = array<i32>} : memref<64x256xbf16, #tpu.memory_space<vmem>>, vector<64x8xbf16>,
    %c0_98 = arith.constant 0 : index
    %c26 = arith.constant 26 : index
    %267 = vector.load %arg1[%c0_98, %c26] : memref<64x27xi32, #tpu.memory_space<vmem>>, vector<64x1xi32>
    %268 = vector.broadcast %267 : vector<64x1xi32> to vector<64x64xi32>
    %269 = arith.cmpi eq, %268, %32 : vector<64x64xi32>
    %270 = arith.extui %269 : vector<64x64xi1> to vector<64x64xi32>
    %271 = arith.sitofp %270 : vector<64x64xi32> to vector<64x64xf32>
    %272 = arith.truncf %271 : vector<64x64xf32> to vector<64x64xbf16>
    %cst_99 = arith.constant dense<0.000000e+00> : vector<64x8xf32>
    %273 = tpu.matmul %272, %28, %cst_99 {dimension_numbers = #tpu.dot_dimension_numbers<[1], [0], [0], [1], [0, 0, 1, 1], [], []>} : vector<64x64xbf16>, vector<64x8xbf16>, vector<64x8xf32> -> vector<64x8xf32>
    %274 = arith.truncf %273 : vector<64x8xf32> to vector<64x8xbf16>
    %c0_100 = arith.constant 0 : index
    %c208 = arith.constant 208 : index
    %275 = vector.load %arg12[%c0_100, %c208] : memref<64x256xbf16, #tpu.memory_space<vmem>>, vector<64x8xbf16>
    tpu.vector_store %arg12[%c0_100, %c208], %274 {strides = array<i32>} : memref<64x256xbf16, #tpu.memory_space<vmem>>, vector<64x8xbf16>,
    %c0_101 = arith.constant 0 : index
    %c0_102 = arith.constant 0 : index
    %276 = vector.load %arg12[%c0_101, %c0_102] : memref<64x256xbf16, #tpu.memory_space<vmem>>, vector<64x256xbf16>
    %c0_103 = arith.constant 0 : index
    %c0_104 = arith.constant 0 : index
    %277 = vector.load %arg3[%c0_103, %c0_104] : memref<256x128xbf16, #tpu.memory_space<vmem>>, vector<256x128xbf16>
    %cst_105 = arith.constant dense<0.000000e+00> : vector<64x128xf32>
    %278 = tpu.matmul %276, %277, %cst_105 {dimension_numbers = #tpu.dot_dimension_numbers<[1], [0], [0], [1], [0, 0, 1, 1], [], []>} : vector<64x256xbf16>, vector<256x128xbf16>, vector<64x128xf32> -> vector<64x128xf32>
    %c0_106 = arith.constant 0 : index
    %c0_107 = arith.constant 0 : index
    %279 = vector.load %arg7[%c0_106, %c0_107] : memref<1x128xf32, #tpu.memory_space<vmem>>, vector<1x128xf32>
    %c0_108 = arith.constant 0 : index
    %c0_109 = arith.constant 0 : index
    %280 = vector.load %arg8[%c0_108, %c0_109] : memref<1x128xf32, #tpu.memory_space<vmem>>, vector<1x128xf32>
    %cst_110 = arith.constant dense<0.000000e+00> : vector<128xf32>
    %281 = vector.multi_reduction <add>, %278, %cst_110 [0] : vector<64x128xf32> to vector<128xf32>
    %282 = vector.shape_cast %281 : vector<128xf32> to vector<1x128xf32>
    %283 = arith.mulf %278, %278 : vector<64x128xf32>
    %cst_111 = arith.constant dense<0.000000e+00> : vector<128xf32>
    %284 = vector.multi_reduction <add>, %283, %cst_111 [0] : vector<64x128xf32> to vector<128xf32>
    %285 = vector.shape_cast %284 : vector<128xf32> to vector<1x128xf32>
    %cst_112 = arith.constant 1.562500e-02 : f32
    %286 = vector.broadcast %cst_112 : f32 to vector<1x128xf32>
    %287 = arith.mulf %282, %286 : vector<1x128xf32>
    %cst_113 = arith.constant 1.562500e-02 : f32
    %288 = vector.broadcast %cst_113 : f32 to vector<1x128xf32>
    %289 = arith.mulf %285, %288 : vector<1x128xf32>
    %290 = arith.mulf %287, %287 : vector<1x128xf32>
    %291 = arith.subf %289, %290 : vector<1x128xf32>
    %cst_114 = arith.constant 9.99999974E-6 : f32
    %292 = vector.broadcast %cst_114 : f32 to vector<1x128xf32>
    %293 = arith.addf %291, %292 : vector<1x128xf32>
    %294 = math.rsqrt %293 : vector<1x128xf32>
    %295 = arith.mulf %279, %294 : vector<1x128xf32>
    %296 = arith.mulf %287, %295 : vector<1x128xf32>
    %297 = arith.subf %280, %296 : vector<1x128xf32>
    %298 = vector.broadcast %295 : vector<1x128xf32> to vector<64x128xf32>
    %299 = arith.mulf %278, %298 : vector<64x128xf32>
    %300 = vector.broadcast %297 : vector<1x128xf32> to vector<64x128xf32>
    %301 = arith.addf %299, %300 : vector<64x128xf32>
    %302 = arith.truncf %301 : vector<64x128xf32> to vector<64x128xbf16>
    %c0_115 = arith.constant 0 : index
    %c0_116 = arith.constant 0 : index
    %303 = vector.load %arg4[%c0_115, %c0_116] : memref<128x128xbf16, #tpu.memory_space<vmem>>, vector<128x128xbf16>
    %cst_117 = arith.constant dense<0.000000e+00> : vector<64x128xf32>
    %304 = tpu.matmul %302, %303, %cst_117 {dimension_numbers = #tpu.dot_dimension_numbers<[1], [0], [0], [1], [0, 0, 1, 1], [], []>} : vector<64x128xbf16>, vector<128x128xbf16>, vector<64x128xf32> -> vector<64x128xf32>
    %c0_118 = arith.constant 0 : index
    %c0_119 = arith.constant 0 : index
    %305 = vector.load %arg9[%c0_118, %c0_119] : memref<1x128xf32, #tpu.memory_space<vmem>>, vector<1x128xf32>
    %c0_120 = arith.constant 0 : index
    %c0_121 = arith.constant 0 : index
    %306 = vector.load %arg10[%c0_120, %c0_121] : memref<1x128xf32, #tpu.memory_space<vmem>>, vector<1x128xf32>
    %cst_122 = arith.constant dense<0.000000e+00> : vector<128xf32>
    %307 = vector.multi_reduction <add>, %304, %cst_122 [0] : vector<64x128xf32> to vector<128xf32>
    %308 = vector.shape_cast %307 : vector<128xf32> to vector<1x128xf32>
    %309 = arith.mulf %304, %304 : vector<64x128xf32>
    %cst_123 = arith.constant dense<0.000000e+00> : vector<128xf32>
    %310 = vector.multi_reduction <add>, %309, %cst_123 [0] : vector<64x128xf32> to vector<128xf32>
    %311 = vector.shape_cast %310 : vector<128xf32> to vector<1x128xf32>
    %cst_124 = arith.constant 1.562500e-02 : f32
    %312 = vector.broadcast %cst_124 : f32 to vector<1x128xf32>
    %313 = arith.mulf %308, %312 : vector<1x128xf32>
    %cst_125 = arith.constant 1.562500e-02 : f32
    %314 = vector.broadcast %cst_125 : f32 to vector<1x128xf32>
    %315 = arith.mulf %311, %314 : vector<1x128xf32>
    %316 = arith.mulf %313, %313 : vector<1x128xf32>
    %317 = arith.subf %315, %316 : vector<1x128xf32>
    %cst_126 = arith.constant 9.99999974E-6 : f32
    %318 = vector.broadcast %cst_126 : f32 to vector<1x128xf32>
    %319 = arith.addf %317, %318 : vector<1x128xf32>
    %320 = math.rsqrt %319 : vector<1x128xf32>
    %321 = arith.mulf %305, %320 : vector<1x128xf32>
    %322 = arith.mulf %313, %321 : vector<1x128xf32>
    %323 = arith.subf %306, %322 : vector<1x128xf32>
    %324 = vector.broadcast %321 : vector<1x128xf32> to vector<64x128xf32>
    %325 = arith.mulf %304, %324 : vector<64x128xf32>
    %326 = vector.broadcast %323 : vector<1x128xf32> to vector<64x128xf32>
    %327 = arith.addf %325, %326 : vector<64x128xf32>
    %328 = arith.addf %327, %29 : vector<64x128xf32>
    %cst_127 = arith.constant 0.000000e+00 : f32
    %329 = vector.broadcast %cst_127 : f32 to vector<64x128xf32>
    %330 = arith.maximumf %328, %329 : vector<64x128xf32>
    %c0_128 = arith.constant 0 : index
    %c0_129 = arith.constant 0 : index
    %331 = vector.load %arg11[%c0_128, %c0_129] : memref<64x128xf32, #tpu.memory_space<vmem>>, vector<64x128xf32>
    tpu.vector_store %arg11[%c0_128, %c0_129], %330 {strides = array<i32>} : memref<64x128xf32, #tpu.memory_space<vmem>>, vector<64x128xf32>,
    return
  }
}

</mosaic_0001>

<bundles_post_ra>
// kernel: tpu_custom_call.1
= control target key start
LH: loop header
LB: loop body
LE: loop exit
PB: predicated region body
PF: predicated region fallthrough
CT: control target
= control target key end

     0   :  { %16 = vsyncpa [#allocation4], 0  ;;  %s9338_s0 = inlined_call_operand.vmem [shape: f32[64,16], index: 0, kind: input, shape index: {}]   ;;  %s9339_s1 = inlined_call_operand.vmem [shape: s32[64,27], index: 1, kind: input, shape index: {}]   ;;  %s9340_s2 = inlined_call_operand.vmem [shape: bf16[16,256], index: 2, kind: input, shape index: {}]   ;;  %s9341_s3 = inlined_call_operand.vmem [shape: bf16[256,128], index: 3, kind: input, shape index: {}]   ;;  %s9342_s4 = inlined_call_operand.hbm [shape: bf16[128,128], index: 4, kind: input, shape index: {}]   ;;  %s9343_s5 = inlined_call_operand.vmem [shape: f32[1,256], index: 5, kind: input, shape index: {}]   ;;  %s9344_s6 = inlined_call_operand.vmem [shape: f32[1,256], index: 6, kind: input, shape index: {}]   ;;  %s9345_s7 = inlined_call_operand.vmem [shape: f32[1,128], index: 7, kind: input, shape index: {}]   ;;  %s9346_s8 = inlined_call_operand.vmem [shape: f32[1,128], index: 8, kind: input, shape index: {}]   ;;  %s9347_s9 = inlined_call_operand.vmem [shape: f32[1,128], index: 9, kind: input, shape index: {}]   ;;  %s9348_s10 = inlined_call_operand.vmem [shape: f32[1,128], index: 10, kind: input, shape index: {}]   ;;  %s9349_s11 = inlined_call_operand.hbm [shape: f32[64,128], index: 11, kind: output, shape index: {}]  }
   0x1   :  { %17 = vsyncpa [#allocation5], 0  ;;  %s6511_s17 = smov [#allocation3]   ;;  %s6463_s21 = scalar_lea.hbm %s9342_s4, 1024 }
   0x2   :  { %s31_s18 = sshll.u32 %s6511_s17, 4  ;;  %p6464_p0 = scmp.ne.s32.totalorder %s9342_s4, %s6463_s21  ;;  %s32_s18 = int_to_ptr.vmem [resolvable:$true] %s31_s18 }
   0x3   :  { %p6467_p1 = scmp.lt.u32.totalorder %s6463_s21, %s9342_s4 }
   0x5   :  { %p6469_p2 = pnand %p6467_p1, %p6464_p0 }
   0x7   :  { %6472 = shalt.err (!%p6469_p2)
}
   0x8   :  { %s6473_s26 = scalar_lea.vmem %s32_s18, 1024  ;;  %p6478_p4 = scmp.lt.s32.totalorder %s32_s18, %s32_s18 }
   0x9   :  { %p6474_p3 = scmp.ne.s32.totalorder %s32_s18, %s6473_s26  ;;  %p6479_p5 = scmp.lt.s32.totalorder %s6473_s26, %s6473_s26 }
   0xb   :  { %p6480_p6 = por %p6479_p5, %p6478_p4 }
   0xd   :  { %p6481_p7 = pnand %p6480_p6, %p6474_p3 }
   0xf   :  { %6484 = shalt.err (!%p6481_p7)
}
  0x10   :  { %s6512_s27 = smov 64   ;;  %s6513_s28 = smov 4  }
  0x11   :  { %37 = dma.hbm_to_vmem [thread:$0]  %s9342_s4, 1024, %s32_s18, [#allocation4], %s6512_s27, %s6512_s27, %s6513_s28  }
  0x12   :  { %6507 = dma.done.wait [#allocation4], 1024  }
  0x13   :  { %6508 = vsyncadd [#allocation4], 4294966272  ;;  %v6514_v0 = vmov 0   ;;  %v6636_v1 = vld [vmem:[%s9339_s1 + $0x10] sm:$0xff]  ;;  %v6641_v2 = vld [vmem:[%s9339_s1] sm:$0xff]  ;;  %vm78_vm0 = vcmask 130048   ;;  %v9360_v48 = vlaneseq }
  0x14   :  { %6334 = vset.pattern.permute.xlu1 %v6514_v0  ;;  %344 = vst [vmem:[#allocation2] sm:$0xff] %v6514_v0  ;;  %345 = vst [vmem:[#allocation2 + $0x8] sm:$0xff] %v6514_v0  ;;  %6333 = vset.pattern.permute.xlu0 %v6514_v0  ;;  %v6414_v3 = vld [vmem:[%s9340_s2 + $0x4] ss:$8 sps:$4 sm:$0xff]   ;;  %v6416_v4 = vld [vmem:[%s9340_s2] ss:$8 sps:$4 sm:$0xff]  }
  0x15   :  { %346 = vst [vmem:[#allocation2 + $0x10] sm:$0xff] %v6514_v0  ;;  %347 = vst [vmem:[#allocation2 + $0x18] sm:$0xff] %v6514_v0  ;;  %123 = vmatprep.mubr.bf16.mxu0 %v6514_v0  ;;  %369 = vperm.xlu1 %6334, %v6636_v1   ;;  %v6654_v5 = vld [vmem:[%s9339_s1 + $0x18] sm:$0xff]  ;;  %v6659_v6 = vld [vmem:[%s9339_s1 + $0x8] sm:$0xff]  ;;  %v6515_v19 = vmov 1   ;;  %v6516_v23 = vmov 2  }
  0x16   :  { %348 = vst [vmem:[#allocation2 + $0x20] sm:$0xff] %v6514_v0  ;;  %349 = vst [vmem:[#allocation2 + $0x28] sm:$0xff] %v6514_v0  ;;  %363 = vperm.xlu0 %6333, %v6641_v2   ;;  %v54_v7 = vld [vmem:[%s9338_s0] sm:$0xff]  ;;  %91 = vmatprep.subr.bf16.mxu0 %v6414_v3  ;;  %v55_v8 = vld [vmem:[%s9338_s0 + $0x8] sm:$0xff]  ;;  %v6517_v25 = vmov 3   ;;  %v6518_v26 = vmov 4  }
  0x17   :  { %350 = vst [vmem:[#allocation2 + $0x30] sm:$0xff] %v6514_v0  ;;  %351 = vst [vmem:[#allocation2 + $0x38] sm:$0xff] %v6514_v0  ;;  %92 = vmatpush1.bf16.msra.mxu0 %v6416_v4  ;;  %v62_v9 = vpack.c.bf16 %v55_v8, %v54_v7  ;;  %v6672_v10 = vld [vmem:[%s9339_s1 + $0x28] sm:$0xff]  ;;  %v6677_v11 = vld [vmem:[%s9339_s1 + $0x20] sm:$0xff]  ;;  %v6519_v27 = vmov 5   ;;  %v6520_v28 = vmov 6  }
  0x18   :  { %v56_v12 = vld [vmem:[%s9338_s0 + $0x10] sm:$0xff]  ;;  %v57_v13 = vld [vmem:[%s9338_s0 + $0x18] sm:$0xff]  ;;  %v58_v17 = vld [vmem:[%s9338_s0 + $0x20] sm:$0xff]  ;;  %v6521_v29 = vmov 7   ;;  %v6522_v30 = vmov 8   ;;  %v6523_v31 = vmov 9  }
  0x19   :  { %372 = vperm.xlu1 %6334, %v6654_v5   ;;  %v6689_v14 = vld [vmem:[%s9339_s1 + $0x38] sm:$0xff]  ;;  %v6694_v15 = vld [vmem:[%s9339_s1 + $0x30] sm:$0xff]  ;;  %v63_v16 = vpack.c.bf16 %v57_v13, %v56_v12  ;;  %v59_v18 = vld [vmem:[%s9338_s0 + $0x28] sm:$0xff]  ;;  %v6524_v38 = vmov 10   ;;  %v9363_v43 = vmov 11   ;;  %v6818_v51 = vand.u32 127, %v9360_v48 }
  0x1a   :  { %366 = vperm.xlu0 %6333, %v6659_v6   ;;  %5209 = vmatmul.mubr.msk.bf16.vlgmr.msra.gmra.mrb[0].mxu0 %vm78_vm0, %v62_v9  ;;  %v64_v20 = vpack.c.bf16 %v59_v18, %v58_v17  ;;  %v60_v21 = vld [vmem:[%s9338_s0 + $0x30] sm:$0xff]  ;;  %v61_v22 = vld [vmem:[%s9338_s0 + $0x38] sm:$0xff]  ;;  %v6828_v54 = vld [vmem:[%s9339_s1 + $0x8] sm:$0xff]  ;;  %v9354_v55 = vmov 0.0   ;;  %vm414_vm3 = vcmask 523264   ;;  %v9361_v58 = vmov 12  }
  0x1b   :  { %133 = vmatprep.mubr.bf16.mxu0 %v6514_v0  ;;  %v65_v24 = vpack.c.bf16 %v61_v22, %v60_v21  ;;  %v6843_v61 = vld [vmem:[%s9339_s1 + $0x28] sm:$0xff]  ;;  %v6853_v63 = vld [vmem:[%s9339_s1] sm:$0xff]  ;;  %v6863_v4 = vld [vmem:[%s9339_s1 + $0x18] sm:$0xff]  ;;  %v9352_v22 = vmov 15   ;;  %s6545_s24 = smov 32   ;;  %s6547_s25 = smov 48  }
  0x1c   :  { %v6873_v8 = vld [vmem:[%s9339_s1 + $0x20] sm:$0xff]  ;;  %v6882_v12 = vld [vmem:[%s9339_s1 + $0x38] sm:$0xff]  ;;  %s6548_s26 = smov 40   ;;  %s6549_s0 = smov 56  }
  0x1d   :  { %378 = vperm.xlu1 %6334, %v6672_v10   ;;  %s6550_s2 = smov 80   ;;  %s6551_s28 = smov 72  }
  0x1e   :  { %375 = vperm.xlu0 %6333, %v6677_v11   ;;  %s6552_s29 = smov 96   ;;  %s6553_s30 = smov 88  }
  0x1f   :  { %s6554_s12 = smov 112   ;;  %s6555_s13 = smov 104  }
  0x20   :  { %s6556_s4 = smov 120  }
  0x21   :  { %384 = vperm.xlu1 %6334, %v6689_v14  }
  0x22   :  { %381 = vperm.xlu0 %6333, %v6694_v15   ;;  %5210 = vmatmul.mubr.msk.bf16.gmra.mrb[4].mxu0 %vm78_vm0, %v63_v16  ;;  %v9356_v16 = vmov 14  }
  0x23   :  { %143 = vmatprep.mubr.bf16.mxu0 %v6514_v0 }
  0x25   :  { %6336 = vset.pattern.permute.xlu1 %v6515_v19 }
  0x26   :  { %6335 = vset.pattern.permute.xlu0 %v6515_v19  ;;  %513 = vperm.xlu1 %6336, %v6659_v6  }
  0x27   :  { %510 = vperm.xlu0 %6335, %v6641_v2  }
  0x2a   :  { %516 = vperm.xlu1 %6336, %v6636_v1   ;;  %5211 = vmatmul.mubr.msk.bf16.gmra.mrb[8].mxu0 %vm78_vm0, %v64_v20 }
  0x2b   :  { %519 = vperm.xlu0 %6335, %v6654_v5   ;;  %153 = vmatprep.mubr.bf16.mxu0 %v6514_v0  ;;  %v9358_v0 = vmov 13  }
  0x2e   :  { %6337 = vset.pattern.permute.xlu1 %v6516_v23 }
  0x2f   :  { %522 = vperm.xlu0 %6335, %v6677_v11   ;;  %672 = vperm.xlu1 %6337, %v6641_v2  }
  0x32   :  { %5212 = vmatmul.mubr.msk.bf16.gmra.mrb[12].mxu0 %vm78_vm0, %v65_v24 }
  0x33   :  { %531 = vperm.xlu0 %6335, %v6689_v14   ;;  %678 = vperm.xlu1 %6337, %v6636_v1  }
  0x37   :  { %6339 = vset.pattern.permute.xlu0 %v6516_v23  ;;  %681 = vperm.xlu1 %6337, %v6654_v5  }
  0x38   :  { %675 = vperm.xlu0 %6339, %v6659_v6  }
  0x3b   :  { %6338 = vset.pattern.permute.xlu1 %v6515_v19 }
  0x3c   :  { %687 = vperm.xlu0 %6339, %v6672_v10   ;;  %525 = vperm.xlu1 %6338, %v6672_v10  }
  0x40   :  { %6341 = vset.pattern.permute.xlu0 %v6517_v25  ;;  %528 = vperm.xlu1 %6338, %v6694_v15  }
  0x41   :  { %834 = vperm.xlu0 %6341, %v6641_v2  }
  0x44   :  { %6340 = vset.pattern.permute.xlu1 %v6516_v23 }
  0x45   :  { %843 = vperm.xlu0 %6341, %v6654_v5   ;;  %684 = vperm.xlu1 %6340, %v6677_v11  }
  0x49   :  { %846 = vperm.xlu0 %6341, %v6677_v11   ;;  %690 = vperm.xlu1 %6340, %v6694_v15  }
  0x4d   :  { %855 = vperm.xlu0 %6341, %v6689_v14   ;;  %693 = vperm.xlu1 %6340, %v6689_v14  }
  0x51   :  { %6345 = vset.pattern.permute.xlu0 %v6518_v26  ;;  %6342 = vset.pattern.permute.xlu1 %v6517_v25 }
  0x52   :  { %999 = vperm.xlu0 %6345, %v6659_v6   ;;  %837 = vperm.xlu1 %6342, %v6659_v6  }
  0x56   :  { %1011 = vperm.xlu0 %6345, %v6672_v10   ;;  %840 = vperm.xlu1 %6342, %v6636_v1  }
  0x5a   :  { %6347 = vset.pattern.permute.xlu0 %v6519_v27  ;;  %6343 = vset.pattern.permute.xlu1 %v6518_v26 }
  0x5b   :  { %1158 = vperm.xlu0 %6347, %v6641_v2   ;;  %996 = vperm.xlu1 %6343, %v6641_v2  }
  0x5f   :  { %1167 = vperm.xlu0 %6347, %v6654_v5   ;;  %1002 = vperm.xlu1 %6343, %v6636_v1  }
  0x63   :  { %1170 = vperm.xlu0 %6347, %v6677_v11   ;;  %1005 = vperm.xlu1 %6343, %v6654_v5  }
  0x67   :  { %1179 = vperm.xlu0 %6347, %v6689_v14   ;;  %6344 = vset.pattern.permute.xlu1 %v6517_v25 }
  0x68   :  { %849 = vperm.xlu1 %6344, %v6672_v10  }
  0x6b   :  { %6351 = vset.pattern.permute.xlu0 %v6520_v28 }
  0x6c   :  { %1323 = vperm.xlu0 %6351, %v6659_v6   ;;  %852 = vperm.xlu1 %6344, %v6694_v15  }
  0x70   :  { %1335 = vperm.xlu0 %6351, %v6672_v10   ;;  %6346 = vset.pattern.permute.xlu1 %v6518_v26 }
  0x71   :  { %1008 = vperm.xlu1 %6346, %v6677_v11  }
  0x74   :  { %6353 = vset.pattern.permute.xlu0 %v6521_v29 }
  0x75   :  { %1482 = vperm.xlu0 %6353, %v6641_v2   ;;  %1014 = vperm.xlu1 %6346, %v6694_v15  }
  0x79   :  { %1491 = vperm.xlu0 %6353, %v6654_v5   ;;  %1017 = vperm.xlu1 %6346, %v6689_v14  }
  0x7d   :  { %1494 = vperm.xlu0 %6353, %v6677_v11   ;;  %6348 = vset.pattern.permute.xlu1 %v6519_v27 }
  0x7e   :  { %1161 = vperm.xlu1 %6348, %v6659_v6  }
  0x81   :  { %1503 = vperm.xlu0 %6353, %v6689_v14  }
  0x82   :  { %1164 = vperm.xlu1 %6348, %v6636_v1  }
  0x85   :  { %6357 = vset.pattern.permute.xlu0 %v6522_v30 }
  0x86   :  { %1647 = vperm.xlu0 %6357, %v6659_v6   ;;  %6349 = vset.pattern.permute.xlu1 %v6520_v28 }
  0x87   :  { %1320 = vperm.xlu1 %6349, %v6641_v2  }
  0x8a   :  { %1659 = vperm.xlu0 %6357, %v6672_v10  }
  0x8b   :  { %1326 = vperm.xlu1 %6349, %v6636_v1  }
  0x8e   :  { %6359 = vset.pattern.permute.xlu0 %v6523_v31 }
  0x8f   :  { %1806 = vperm.xlu0 %6359, %v6641_v2   ;;  %1329 = vperm.xlu1 %6349, %v6654_v5  }
  0x93   :  { %1815 = vperm.xlu0 %6359, %v6654_v5   ;;  %6350 = vset.pattern.permute.xlu1 %v6519_v27 }
  0x94   :  { %1173 = vperm.xlu1 %6350, %v6672_v10   ;;  %v6770_v32 = vpop.permute.xlu1 %369 }
  0x95   :  { %v6772_v33 = vpop.permute.xlu0 %363  ;;  %vm388_vm6 = vcmp.eq.s32.totalorder %v6770_v32, %v6818_v51 }
  0x96   :  { %vm386_vm4 = vcmp.eq.s32.totalorder %v6772_v33, %v6818_v51 }
  0x97   :  { %1818 = vperm.xlu0 %6359, %v6677_v11   ;;  %v5213_v17 = vsel %vm386_vm4, 1.0, %v9354_v55 }
  0x98   :  { %1176 = vperm.xlu1 %6350, %v6694_v15   ;;  %v6776_v34 = vpop.permute.xlu1 %372 }
  0x99   :  { %v6778_v35 = vpop.permute.xlu0 %366  ;;  %vm389_vm7 = vcmp.eq.s32.totalorder %v6776_v34, %v6818_v51  ;;  %v7244_v34 = vld [vmem:[%s9339_s1 + $0x28] sm:$0xff] }
  0x9a   :  { %vm387_vm5 = vcmp.eq.s32.totalorder %v6778_v35, %v6818_v51 }
  0x9b   :  { %1827 = vperm.xlu0 %6359, %v6689_v14   ;;  %v5214_v18 = vsel %vm387_vm5, 1.0, %v9354_v55 }
  0x9c   :  { %6352 = vset.pattern.permute.xlu1 %v6520_v28  ;;  %v6781_v36 = vpop.permute.xlu1 %378  ;;  %v410_v19 = vpack.c.bf16 %v5214_v18, %v5213_v17 }
  0x9d   :  { %v6783_v37 = vpop.permute.xlu0 %375  ;;  %1332 = vperm.xlu1 %6352, %v6677_v11   ;;  %vm391_vm8 = vcmp.eq.s32.totalorder %v6781_v36, %v6818_v51 }
  0x9e   :  { %5837 = vmatprep.mubr.msk.bf16.mxu1 %vm414_vm3, %v410_v19  ;;  %vm390_vm9 = vcmp.eq.s32.totalorder %v6783_v37, %v6818_v51 }
  0x9f   :  { %6363 = vset.pattern.permute.xlu0 %v6524_v38 }
  0xa0   :  { %1971 = vperm.xlu0 %6363, %v6659_v6   ;;  %v6788_v39 = vpop.permute.xlu1 %384 }
  0xa1   :  { %v6790_v40 = vpop.permute.xlu0 %381  ;;  %1338 = vperm.xlu1 %6352, %v6694_v15   ;;  %vm393_vm14 = vcmp.eq.s32.totalorder %v6788_v39, %v6818_v51 }
  0xa2   :  { %vm392_vm15 = vcmp.eq.s32.totalorder %v6790_v40, %v6818_v51 }
  0xa4   :  { %1983 = vperm.xlu0 %6363, %v6672_v10  }
  0xa5   :  { %1341 = vperm.xlu1 %6352, %v6689_v14   ;;  %v6795_v41 = vpop.permute.xlu1 %513 }
  0xa6   :  { %v6797_v42 = vpop.permute.xlu0 %510 }
  0xa8   :  { %6365 = vset.pattern.permute.xlu0 %v9363_v43 }
  0xa9   :  { %2130 = vperm.xlu0 %6365, %v6641_v2   ;;  %6354 = vset.pattern.permute.xlu1 %v6521_v29  ;;  %v6802_v44 = vpop.permute.xlu1 %516 }
  0xaa   :  { %v6804_v45 = vpop.permute.xlu0 %519  ;;  %1485 = vperm.xlu1 %6354, %v6659_v6  }
  0xab   :  { %9387 = vst [vmem:[#allocation9_spill] sm:$0xff] %v6804_v45  ;;  %v9372_v45 = vmov 18  }
  0xad   :  { %2139 = vperm.xlu0 %6365, %v6654_v5  }
  0xae   :  { %v6808_v46 = vpop.permute.xlu0 %522  ;;  %1488 = vperm.xlu1 %6354, %v6636_v1   ;;  %v673_v47 = vpop.permute.xlu1 %672 }
  0xaf   :  { %9388 = vst [vmem:[#allocation10_spill] sm:$0xff] %v6808_v46  ;;  %vm695_vm1 = vcmp.eq.s32.totalorder %v673_v47, %v6818_v51 }
  0xb0   :  { %v5237_v56 = vsel %vm695_vm1, 1.0, %v9354_v55  ;;  %vm534_vm1 = vcmp.eq.s32.totalorder %v6795_v41, %v6818_v51 }
  0xb1   :  { %2142 = vperm.xlu0 %6365, %v6677_v11  }
  0xb2   :  { %v6812_v49 = vpop.permute.xlu0 %531  ;;  %6355 = vset.pattern.permute.xlu1 %v6522_v30  ;;  %v6815_v50 = vpop.permute.xlu1 %678 }
  0xb3   :  { %9389 = vst [vmem:[#allocation11_spill] sm:$0xff] %v6812_v49  ;;  %1644 = vperm.xlu1 %6355, %v6641_v2   ;;  %vm697_vm13 = vcmp.eq.s32.totalorder %v6815_v50, %v6818_v51 }
  0xb5   :  { %2151 = vperm.xlu0 %6365, %v6689_v14  }
  0xb6   :  { %v6823_v52 = vpop.permute.xlu1 %681 }
  0xb7   :  { %v676_v53 = vpop.permute.xlu0 %675  ;;  %1650 = vperm.xlu1 %6355, %v6636_v1   ;;  %vm698_vm10 = vcmp.eq.s32.totalorder %v6823_v52, %v6818_v51 }
  0xb8   :  { %vm696_vm2 = vcmp.eq.s32.totalorder %v676_v53, %v6818_v51 }
  0xb9   :  { %v5238_v57 = vsel %vm696_vm2, 1.0, %v9354_v55  ;;  %6369 = vset.pattern.permute.xlu0 %v9361_v58  ;;  %vm533_vm2 = vcmp.eq.s32.totalorder %v6797_v42, %v6818_v51  ;;  %v9433_v42 = vmov 15  }
  0xba   :  { %v719_v59 = vpack.c.bf16 %v5238_v57, %v5237_v56  ;;  %2295 = vperm.xlu0 %6369, %v6828_v54  }
  0xbb   :  { %1653 = vperm.xlu1 %6355, %v6654_v5   ;;  %v6837_v60 = vpop.permute.xlu1 %525  ;;  %v6950_v56 = vpop.permute.xlu0 %687 }
  0xbc   :  { %9390 = vst [vmem:[#allocation12_spill] sm:$0xff] %v6837_v60  ;;  %5869 = vmatprep.mubr.msk.bf16.mxu0 %vm414_vm3, %v719_v59  ;;  %vm700_vm12 = vcmp.eq.s32.totalorder %v6950_v56, %v6818_v51 }
  0xbe   :  { %2307 = vperm.xlu0 %6369, %v6843_v61  }
  0xbf   :  { %6356 = vset.pattern.permute.xlu1 %v6521_v29  ;;  %v6847_v62 = vpop.permute.xlu1 %528 }
  0xc0   :  { %9391 = vst [vmem:[#allocation13_spill] sm:$0xff] %v6847_v62  ;;  %1497 = vperm.xlu1 %6356, %v6672_v10   ;;  %v6958_v19 = vpop.permute.xlu0 %834 }
  0xc1   :  { %9400 = vst [vmem:[#allocation22_spill] sm:$0xff] %v6958_v19 }
  0xc2   :  { %6371 = vset.pattern.permute.xlu0 %v9358_v0 }
  0xc3   :  { %2454 = vperm.xlu0 %6371, %v6853_v63  }
  0xc4   :  { %1500 = vperm.xlu1 %6356, %v6694_v15   ;;  %v6858_v3 = vpop.permute.xlu1 %684 }
  0xc5   :  { %vm699_vm11 = vcmp.eq.s32.totalorder %v6858_v3, %v6818_v51 }
  0xc7   :  { %2463 = vperm.xlu0 %6371, %v6863_v4  }
  0xc8   :  { %6358 = vset.pattern.permute.xlu1 %v6522_v30  ;;  %v6867_v7 = vpop.permute.xlu1 %690 }
  0xc9   :  { %1656 = vperm.xlu1 %6358, %v6677_v11   ;;  %vm701_vm4 = vcmp.eq.s32.totalorder %v6867_v7, %v6818_v51 }
  0xcb   :  { %2466 = vperm.xlu0 %6371, %v6873_v8  }
  0xcc   :  { %v6876_v9 = vpop.permute.xlu1 %693 }
  0xcd   :  { %1662 = vperm.xlu1 %6358, %v6694_v15   ;;  %vm702_vm0 = vcmp.eq.s32.totalorder %v6876_v9, %v6818_v51 }
  0xcf   :  { %2475 = vperm.xlu0 %6371, %v6882_v12  }
  0xd1   :  { %1665 = vperm.xlu1 %6358, %v6689_v14   ;;  %v6890_v13 = vpop.permute.xlu1 %837 }
  0xd2   :  { %9392 = vst [vmem:[#allocation14_spill] sm:$0xff] %v6890_v13  ;;  %v9409_v13 = vmov 12  }
  0xd3   :  { %6375 = vset.pattern.permute.xlu0 %v9356_v16 }
  0xd4   :  { %2619 = vperm.xlu0 %6375, %v6828_v54  }
  0xd5   :  { %6360 = vset.pattern.permute.xlu1 %v6523_v31  ;;  %v6897_v20 = vpop.permute.xlu1 %840 }
  0xd6   :  { %9393 = vst [vmem:[#allocation15_spill] sm:$0xff] %v6897_v20  ;;  %1809 = vperm.xlu1 %6360, %v6659_v6  }
  0xd8   :  { %2631 = vperm.xlu0 %6375, %v6843_v61  }
  0xda   :  { %1812 = vperm.xlu1 %6360, %v6636_v1   ;;  %v6903_v21 = vpop.permute.xlu1 %996 }
  0xdb   :  { %vm1019_vm5 = vcmp.eq.s32.totalorder %v6903_v21, %v6818_v51 }
  0xdc   :  { %6377 = vset.pattern.permute.xlu0 %v9352_v22 }
  0xdd   :  { %2778 = vperm.xlu0 %6377, %v6853_v63  }
  0xde   :  { %6361 = vset.pattern.permute.xlu1 %v6524_v38  ;;  %v6908_v23 = vpop.permute.xlu1 %1002 }
  0xdf   :  { %9394 = vst [vmem:[#allocation16_spill] sm:$0xff] %v6908_v23  ;;  %1968 = vperm.xlu1 %6361, %v6641_v2   ;;  %v9350_v2 = vmov 16  }
  0xe1   :  { %2787 = vperm.xlu0 %6377, %v6863_v4  }
  0xe2   :  { %v6912_v24 = vpop.permute.xlu1 %1005 }
  0xe3   :  { %9395 = vst [vmem:[#allocation17_spill] sm:$0xff] %v6912_v24  ;;  %1974 = vperm.xlu1 %6361, %v6636_v1  }
  0xe5   :  { %2790 = vperm.xlu0 %6377, %v6873_v8  }
  0xe7   :  { %1977 = vperm.xlu1 %6361, %v6654_v5   ;;  %v6917_v25 = vpop.permute.xlu1 %849 }
  0xe8   :  { %9396 = vst [vmem:[#allocation18_spill] sm:$0xff] %v6917_v25 }
  0xe9   :  { %2799 = vperm.xlu0 %6377, %v6882_v12  }
  0xeb   :  { %6362 = vset.pattern.permute.xlu1 %v6523_v31  ;;  %v6921_v26 = vpop.permute.xlu1 %852 }
  0xec   :  { %9397 = vst [vmem:[#allocation19_spill] sm:$0xff] %v6921_v26  ;;  %1821 = vperm.xlu1 %6362, %v6672_v10  }
  0xed   :  { %6381 = vset.pattern.permute.xlu0 %v9350_v2  ;;  %v6926_v27 = vpop.f32.mrb[0].mxu0 }
  0xee   :  { %2943 = vperm.xlu0 %6381, %v6828_v54   ;;  %v192_v5 = vmul.f32 %v6926_v27, %v6926_v27  ;;  %v6930_v28 = vpop.f32.mrb[1].mxu0 }
  0xef   :  { %v193_v30 = vmul.f32 %v6930_v28, %v6930_v28  ;;  %v6937_v10 = vpop.f32.mrb[2].mxu0 }
  0xf0   :  { %1824 = vperm.xlu1 %6362, %v6694_v15   ;;  %v6933_v29 = vpop.permute.xlu1 %1008  ;;  %v166_v31 = vadd.f32 %v6937_v10, %v6926_v27  ;;  %v194_v33 = vmul.f32 %v6937_v10, %v6937_v10  ;;  %v6943_v35 = vpop.f32.mrb[3].mxu0 }
  0xf1   :  { %9398 = vst [vmem:[#allocation20_spill] sm:$0xff] %v6933_v29  ;;  %v179_v47 = vadd.f32 %v6943_v35, %v6930_v28  ;;  %v195_v53 = vmul.f32 %v6943_v35, %v6943_v35 }
  0xf2   :  { %2955 = vperm.xlu0 %6381, %v6843_v61   ;;  %v208_v57 = vadd.f32 %v194_v33, %v192_v5 }
  0xf3   :  { %v221_v17 = vadd.f32 %v195_v53, %v193_v30 }
  0xf4   :  { %6364 = vset.pattern.permute.xlu1 %v6524_v38  ;;  %v6953_v59 = vpop.permute.xlu1 %1014 }
  0xf5   :  { %9399 = vst [vmem:[#allocation21_spill] sm:$0xff] %v6953_v59  ;;  %1980 = vperm.xlu1 %6364, %v6677_v11   ;;  %v6956_v18 = vpop.f32.mrb[4].mxu0 }
  0xf6   :  { %v167_v2 = vadd.f32 %v166_v31, %v6956_v18  ;;  %v196_v22 = vmul.f32 %v6956_v18, %v6956_v18  ;;  %v6963_v55 = vpop.f32.mrb[5].mxu0 }
  0xf7   :  { %v180_v38 = vadd.f32 %v179_v47, %v6963_v55  ;;  %v197_v5 = vmul.f32 %v6963_v55, %v6963_v55  ;;  %v6970_v30 = vpop.f32.mrb[6].mxu0 }
  0xf8   :  { %v6965_v16 = vpop.permute.xlu1 %1017  ;;  %v209_v11 = vadd.f32 %v208_v57, %v196_v22  ;;  %v168_v33 = vadd.f32 %v167_v2, %v6970_v30  ;;  %v198_v31 = vmul.f32 %v6970_v30, %v6970_v30  ;;  %v6976_v53 = vpop.f32.mrb[7].mxu0 }
  0xf9   :  { %9401 = vst [vmem:[#allocation23_spill] sm:$0xff] %v6965_v16  ;;  %1986 = vperm.xlu1 %6364, %v6694_v15   ;;  %v222_v0 = vadd.f32 %v221_v17, %v197_v5  ;;  %v181_v48 = vadd.f32 %v180_v38, %v6976_v53  ;;  %v199_v47 = vmul.f32 %v6976_v53, %v6976_v53  ;;  %v6984_v15 = vpop.permute.xlu0 %843 }
  0xfa   :  { %v210_v58 = vadd.f32 %v209_v11, %v198_v31  ;;  %9403 = vst [vmem:[#allocation25_spill] sm:$0xff] %v6984_v15 }
  0xfb   :  { %v223_v43 = vadd.f32 %v222_v0, %v199_v47 }
  0xfd   :  { %1989 = vperm.xlu1 %6364, %v6689_v14   ;;  %v6982_v26 = vpop.permute.xlu1 %1161  ;;  %v6986_v22 = vpop.f32.mrb[8].mxu0  ;;  %v9404_v14 = vmov 11  }
  0xfe   :  { %9402 = vst [vmem:[#allocation24_spill] sm:$0xff] %v6982_v26  ;;  %v169_v2 = vadd.f32 %v168_v33, %v6986_v22  ;;  %v200_v57 = vmul.f32 %v6986_v22, %v6986_v22  ;;  %v6991_v17 = vpop.f32.mrb[9].mxu0  ;;  %v7010_v59 = vpop.permute.xlu0 %846 }
  0xff   :  { %v182_v38 = vadd.f32 %v181_v48, %v6991_v17  ;;  %v201_v0 = vmul.f32 %v6991_v17, %v6991_v17  ;;  %v6996_v5 = vpop.f32.mrb[10].mxu0  ;;  %9406 = vst [vmem:[#allocation27_spill] sm:$0xff] %v7010_v59 }
 0x100   :  { %v211_v31 = vadd.f32 %v210_v58, %v200_v57  ;;  %v170_v47 = vadd.f32 %v169_v2, %v6996_v5  ;;  %v202_v33 = vmul.f32 %v6996_v5, %v6996_v5  ;;  %v7004_v26 = vpop.f32.mrb[11].mxu0  ;;  %v9367_v58 = vmov 17  }
 0x101   :  { %6366 = vset.pattern.permute.xlu1 %v9404_v14  ;;  %v6999_v11 = vpop.permute.xlu1 %1164  ;;  %v224_v48 = vadd.f32 %v223_v43, %v201_v0  ;;  %v183_v25 = vadd.f32 %v182_v38, %v7004_v26  ;;  %v203_v20 = vmul.f32 %v7004_v26, %v7004_v26  ;;  %6383 = vset.pattern.permute.xlu0 %v9367_v58 }
 0x102   :  { %9405 = vst [vmem:[#allocation26_spill] sm:$0xff] %v6999_v11  ;;  %2133 = vperm.xlu1 %6366, %v6659_v6   ;;  %v212_v15 = vadd.f32 %v211_v31, %v202_v33  ;;  %3085 = vperm.xlu0 %6383, %v6853_v63  }
 0x103   :  { %v225_v11 = vadd.f32 %v224_v48, %v203_v20 }
 0x105   :  { %v7017_v6 = vpop.f32.mrb[12].mxu0 }
 0x106   :  { %2136 = vperm.xlu1 %6366, %v6636_v1   ;;  %v7015_v2 = vpop.permute.xlu1 %1320  ;;  %v171_v43 = vadd.f32 %v170_v47, %v7017_v6  ;;  %v204_v57 = vmul.f32 %v7017_v6, %v7017_v6  ;;  %v7022_v38 = vpop.f32.mrb[13].mxu0  ;;  %3094 = vperm.xlu0 %6383, %v6863_v4  }
 0x107   :  { %9407 = vst [vmem:[#allocation28_spill] sm:$0xff] %v7015_v2  ;;  %v184_v20 = vadd.f32 %v183_v25, %v7022_v38  ;;  %v205_v0 = vmul.f32 %v7022_v38, %v7022_v38  ;;  %v7027_v31 = vpop.f32.mrb[14].mxu0  ;;  %v7035_v47 = vpop.permute.xlu0 %855 }
 0x108   :  { %v213_v33 = vadd.f32 %v212_v15, %v204_v57  ;;  %v172_v1 = vadd.f32 %v171_v43, %v7027_v31  ;;  %v206_v48 = vmul.f32 %v7027_v31, %v7027_v31  ;;  %v7032_v58 = vpop.f32.mrb[15].mxu0  ;;  %9408 = vst [vmem:[#allocation29_spill] sm:$0xff] %v7035_v47  ;;  %v7047_v47 = vld [vmem:[%s9339_s1 + $0x10] sm:$0xff] }
 0x109   :  { %v226_v59 = vadd.f32 %v225_v11, %v205_v0  ;;  %v185_v25 = vadd.f32 %v184_v20, %v7032_v58  ;;  %v207_v2 = vmul.f32 %v7032_v58, %v7032_v58 }
 0x10a   :  { %6367 = vset.pattern.permute.xlu1 %v9409_v13  ;;  %v7041_v15 = vpop.permute.xlu1 %1326  ;;  %v173_v43 = vrot.slane %v172_v1, 4  ;;  %v214_v57 = vadd.f32 %v213_v33, %v206_v48  ;;  %3097 = vperm.xlu0 %6383, %v6873_v8  }
 0x10b   :  { %9410 = vst [vmem:[#allocation30_spill] sm:$0xff] %v7041_v15  ;;  %2292 = vperm.xlu1 %6367, %v6853_v63   ;;  %v186_v19 = vrot.slane %v185_v25, 4  ;;  %v227_v16 = vadd.f32 %v226_v59, %v207_v2  ;;  %v7053_v33 = vpop.permute.xlu0 %999 }
 0x10c   :  { %v174_v11 = vadd.f32 %v173_v43, %v172_v1  ;;  %v215_v20 = vrot.slane %v214_v57, 4 }
 0x10d   :  { %v187_v0 = vadd.f32 %v186_v19, %v185_v25  ;;  %v228_v62 = vrot.slane %v227_v16, 4 }
 0x10e   :  { %v7050_v49 = vpop.permute.xlu1 %1329  ;;  %v175_v15 = vrot.slane %v174_v11, 2  ;;  %v216_v23 = vadd.f32 %v215_v20, %v214_v57  ;;  %3106 = vperm.xlu0 %6383, %v6882_v12  }
 0x10f   :  { %9411 = vst [vmem:[#allocation31_spill] sm:$0xff] %v7050_v49  ;;  %2298 = vperm.xlu1 %6367, %v7047_v47   ;;  %v188_v59 = vrot.slane %v187_v0, 2  ;;  %v229_v2 = vadd.f32 %v228_v62, %v227_v16  ;;  %v7059_v25 = vpop.permute.xlu0 %1011 }
 0x110   :  { %v176_v48 = vadd.f32 %v175_v15, %v174_v11  ;;  %v217_v29 = vrot.slane %v216_v23, 2 }
 0x111   :  { %v189_v1 = vadd.f32 %v188_v59, %v187_v0  ;;  %v230_v43 = vrot.slane %v229_v2, 2 }
 0x112   :  { %v177_v24 = vrot.slane %v176_v48, 1  ;;  %v218_v60 = vadd.f32 %v217_v29, %v216_v23  ;;  %6387 = vset.pattern.permute.xlu0 %v9372_v45 }
 0x113   :  { %2301 = vperm.xlu1 %6367, %v6863_v4   ;;  %v7057_v19 = vpop.permute.xlu1 %1173  ;;  %v190_v57 = vrot.slane %v189_v1, 1  ;;  %v231_v20 = vadd.f32 %v230_v43, %v229_v2  ;;  %3249 = vperm.xlu0 %6387, %v6828_v54   ;;  %v7066_v29 = vpop.permute.xlu0 %1158 }
 0x114   :  { %9412 = vst [vmem:[#allocation32_spill] sm:$0xff] %v7057_v19  ;;  %v178_v49 = vadd.f32 %v177_v24, %v176_v48  ;;  %v219_v46 = vrot.slane %v218_v60, 1  ;;  %9414 = vst [vmem:[#allocation34_spill] sm:$0xff] %v7066_v29  ;;  %v7072_v48 = vld [vmem:[%s9339_s1 + $0x30] sm:$0xff]  ;;  %v9427_v29 = vmov 14  }
 0x115   :  { %v191_v62 = vadd.f32 %v190_v57, %v189_v1  ;;  %v232_v16 = vrot.slane %v231_v20, 1 }
 0x116   :  { %v220_v15 = vadd.f32 %v219_v46, %v218_v60  ;;  %v234_v11 = vmul.f32 0.015625, %v178_v49 }
 0x117   :  { %6368 = vset.pattern.permute.xlu1 %v9404_v14  ;;  %v7064_v23 = vpop.permute.xlu1 %1176  ;;  %v233_v0 = vadd.f32 %v232_v16, %v231_v20  ;;  %v235_v59 = vmul.f32 0.015625, %v191_v62  ;;  %3261 = vperm.xlu0 %6387, %v6843_v61   ;;  %v7078_v57 = vpop.permute.xlu0 %1167  ;;  %v6534_v16 = vmov 1966171168  }
 0x118   :  { %9413 = vst [vmem:[#allocation33_spill] sm:$0xff] %v7064_v23  ;;  %2145 = vperm.xlu1 %6368, %v6843_v61   ;;  %v236_v24 = vmul.f32 0.015625, %v220_v15  ;;  %v238_v2 = vmul.f32 %v234_v11, %v234_v11  ;;  %9415 = vst [vmem:[#allocation35_spill] sm:$0xff] %v7078_v57  ;;  %v250_v15 = vunpack.c.l.s4 %v6534_v16  ;;  %v9422_v23 = vmov 13  }
 0x119   :  { %v237_v1 = vmul.f32 0.015625, %v233_v0  ;;  %v239_v46 = vmul.f32 %v235_v59, %v235_v59 }
 0x11a   :  { %v240_v49 = vsub.f32 %v236_v24, %v238_v2  ;;  %v251_v2 = vunpack.c.0.s8 %v250_v15  ;;  %v164_v15 = vld [vmem:[%s9343_s5] sm:$0x3]  ;;  %s6543_s5 = smov 16  }
 0x11b   :  { %v241_v60 = vsub.f32 %v237_v1, %v239_v46  ;;  %v7084_v0 = vpop.permute.xlu0 %1170  ;;  %v9419_v1 = vlaneseq }
 0x11c   :  { %2148 = vperm.xlu1 %6368, %v7072_v48   ;;  %v7076_v14 = vpop.permute.xlu1 %1332  ;;  %v242_v43 = vadd.f32 1e-05, %v240_v49  ;;  %9417 = vst [vmem:[#allocation37_spill] sm:$0xff] %v7084_v0 }
 0x11d   :  { %v243_v20 = vadd.f32 1e-05, %v241_v60  ;;  %v253_v46 = vshrl.u32 %v9419_v1, 7 }
 0x11e   :  { %6441 = vrsqrt.f32 %v242_v43 }
 0x11f   :  { %6443 = vrsqrt.f32 %v243_v20  ;;  %v254_v60 = vsub.s32 %v251_v2, %v253_v46  ;;  %v7093_v20 = vpop.permute.xlu0 %1179  ;;  %v7102_v1 = vsub.s32 0, %v253_v46  ;;  %v272_v0 = vsub.s32 1, %v253_v46 }
 0x120   :  { %6370 = vset.pattern.permute.xlu1 %v9409_v13  ;;  %v7081_v62 = vpop.permute.xlu1 %1338  ;;  %9421 = vst [vmem:[#allocation40_spill] sm:$0xff] %v7093_v20 }
 0x121   :  { %9416 = vst [vmem:[#allocation36_spill] sm:$0xff] %v7081_v62  ;;  %2304 = vperm.xlu1 %6370, %v6873_v8   ;;  %9424 = vst [vmem:[#allocation42_spill] sm:$0xff] %v7102_v1 }
 0x123   :  { %v7105_v20 = vpop.permute.xlu0 %1323 }
 0x124   :  { %v7086_v24 = vpop.permute.xlu1 %1341 }
 0x125   :  { %9418 = vst [vmem:[#allocation38_spill] sm:$0xff] %v7086_v24  ;;  %2310 = vperm.xlu1 %6370, %v7072_v48  }
 0x128   :  { %v6442_v49 = vpop.eup %6441 }
 0x129   :  { %2313 = vperm.xlu1 %6370, %v6882_v12   ;;  %v7091_v13 = vpop.permute.xlu1 %1485  ;;  %v6444_v43 = vpop.eup %6443 }
 0x12a   :  { %9420 = vst [vmem:[#allocation39_spill] sm:$0xff] %v7091_v13  ;;  %v248_v16 = vcombine.low %v6442_v49, %v6444_v43  ;;  %v9376_v13 = vmov 19  }
 0x12b   :  { %6389 = vset.pattern.permute.xlu0 %v9376_v13 }
 0x12c   :  { %v255_v45 = vrot.slane %v248_v16, %v254_v60  ;;  %3407 = vperm.xlu0 %6389, %v6853_v63  }
 0x12d   :  { %6372 = vset.pattern.permute.xlu1 %v9422_v23  ;;  %v7096_v19 = vpop.permute.xlu1 %1488 }
 0x12e   :  { %9423 = vst [vmem:[#allocation41_spill] sm:$0xff] %v7096_v19  ;;  %2457 = vperm.xlu1 %6372, %v6828_v54   ;;  %v262_v2 = vrot.slane %v255_v45, %v254_v60  ;;  %v7114_v45 = vpop.permute.xlu0 %1335 }
 0x12f   :  { %9426 = vst [vmem:[#allocation44_spill] sm:$0xff] %v7114_v45 }
 0x130   :  { %v264_v49 = vmul.f32 %v262_v2, %v164_v15  ;;  %3416 = vperm.xlu0 %6389, %v6863_v4  }
 0x132   :  { %2460 = vperm.xlu1 %6372, %v7047_v47   ;;  %v7109_v43 = vpop.permute.xlu1 %1644  ;;  %v269_v16 = vrot.slane %v264_v49, %v7102_v1  ;;  %v7112_v19 = vrot.slane %v264_v49, %v272_v0 }
 0x133   :  { %9425 = vst [vmem:[#allocation43_spill] sm:$0xff] %v7109_v43 }
 0x134   :  { %v276_v46 = vmul.f32 %v269_v16, %v234_v11  ;;  %v277_v13 = vmul.f32 %v7112_v19, %v235_v59  ;;  %v297_v57 = vmul.f32 %v269_v16, %v6926_v27  ;;  %v299_v62 = vmul.f32 %v269_v16, %v6937_v10  ;;  %v7132_v10 = vpop.permute.xlu0 %1482  ;;  %3419 = vperm.xlu0 %6389, %v6873_v8  }
 0x135   :  { %v301_v15 = vmul.f32 %v269_v16, %v6956_v18  ;;  %v303_v2 = vmul.f32 %v269_v16, %v6970_v30  ;;  %v305_v43 = vmul.f32 %v269_v16, %v6986_v22  ;;  %v307_v49 = vmul.f32 %v269_v16, %v6996_v5  ;;  %9429 = vst [vmem:[#allocation46_spill] sm:$0xff] %v7132_v10  ;;  %v165_v5 = vld [vmem:[%s9344_s6] sm:$0x3]  ;;  %s6546_s6 = smov 24  }
 0x136   :  { %6373 = vset.pattern.permute.xlu1 %v9427_v29  ;;  %v7125_v24 = vpop.permute.xlu1 %1650  ;;  %v280_v45 = vcombine.low %v276_v46, %v277_v13  ;;  %v309_v11 = vmul.f32 %v269_v16, %v7017_v6  ;;  %v311_v59 = vmul.f32 %v269_v16, %v7027_v31  ;;  %v312_v27 = vmul.f32 %v7112_v19, %v7032_v58  ;;  %v7161_v46 = vld [vmem:[%s9339_s1 + $0x8] sm:$0xff] }
 0x137   :  { %9428 = vst [vmem:[#allocation45_spill] sm:$0xff] %v7125_v24  ;;  %2616 = vperm.xlu1 %6373, %v6853_v63   ;;  %v298_v18 = vmul.f32 %v7112_v19, %v6930_v28  ;;  %v300_v22 = vmul.f32 %v7112_v19, %v6943_v35 }
 0x138   :  { %v287_v30 = vrot.slane %v280_v45, %v254_v60  ;;  %3428 = vperm.xlu0 %6389, %v6882_v12   ;;  %v7146_v13 = vpop.permute.xlu0 %1491  ;;  %v302_v45 = vmul.f32 %v7112_v19, %v6963_v55 }
 0x139   :  { %9430 = vst [vmem:[#allocation47_spill] sm:$0xff] %v7146_v13 }
 0x13a   :  { %v7142_v6 = vpop.permute.xlu1 %1653  ;;  %v294_v58 = vrot.slane %v287_v30, %v254_v60  ;;  %v304_v60 = vmul.f32 %v7112_v19, %v6976_v53  ;;  %v9385_v30 = vmov 20  }
 0x13b   :  { %2622 = vperm.xlu1 %6373, %v7047_v47  }
 0x13c   :  { %v296_v31 = vsub.f32 %v165_v5, %v294_v58  ;;  %6393 = vset.pattern.permute.xlu0 %v9385_v30 }
 0x13d   :  { %3571 = vperm.xlu0 %6393, %v7161_v46  }
 0x13e   :  { %v317_v28 = vrot.slane %v296_v31, %v7102_v1  ;;  %v7149_v16 = vrot.slane %v296_v31, %v272_v0 }
 0x13f   :  { %2625 = vperm.xlu1 %6373, %v6863_v4   ;;  %v7152_v35 = vpop.permute.xlu1 %1497 }
 0x140   :  { %9431 = vst [vmem:[#allocation48_spill] sm:$0xff] %v7152_v35  ;;  %v324_v0 = vadd.f32 %v317_v28, %v297_v57  ;;  %v326_v5 = vadd.f32 %v317_v28, %v299_v62  ;;  %v328_v58 = vadd.f32 %v317_v28, %v301_v15  ;;  %v330_v31 = vadd.f32 %v317_v28, %v303_v2  ;;  %v7179_v15 = vpop.permute.xlu0 %1494 }
 0x141   :  { %v332_v1 = vadd.f32 %v317_v28, %v305_v43  ;;  %v334_v35 = vadd.f32 %v317_v28, %v307_v49  ;;  %v336_v55 = vadd.f32 %v317_v28, %v309_v11  ;;  %v338_v13 = vadd.f32 %v317_v28, %v311_v59  ;;  %3583 = vperm.xlu0 %6393, %v7244_v34  }
 0x142   :  { %v7166_v53 = vadd.f32 %v7149_v16, %v312_v27  ;;  %v7168_v10 = vpack.c.bf16 %v326_v5, %v324_v0  ;;  %v7170_v24 = vpack.c.bf16 %v330_v31, %v328_v58  ;;  %v7185_v43 = vadd.f32 %v7149_v16, %v298_v18 }
 0x143   :  { %6374 = vset.pattern.permute.xlu1 %v9422_v23  ;;  %v7173_v30 = vpop.permute.xlu1 %1500  ;;  %v7175_v57 = vpack.c.bf16 %v334_v35, %v332_v1  ;;  %v7177_v62 = vpack.c.bf16 %v338_v13, %v336_v55  ;;  %v7188_v2 = vadd.f32 %v7149_v16, %v300_v22  ;;  %v7193_v23 = vadd.f32 %v7149_v16, %v302_v45 }
 0x144   :  { %2469 = vperm.xlu1 %6374, %v6843_v61   ;;  %5829 = vmatprep.subr.bf16.mxu1 %v7168_v10  ;;  %v308_v1 = vmul.f32 %v7112_v19, %v7004_v26  ;;  %v306_v49 = vmul.f32 %v7112_v19, %v6991_v17  ;;  %v7202_v11 = vadd.f32 %v7149_v16, %v304_v60  ;;  %v7213_v22 = vpop.permute.xlu0 %1503  ;;  %v9432_v17 = vmov 0.0  }
 0x145   :  { %5861 = vmatprep.subr.bf16.mxu0 %v7168_v10  ;;  %5830 = vmatpush3.bf16.msra.mxu1 %v7168_v10  ;;  %v5218_v35 = vsel %vm391_vm8, 1.0, %v9432_v17  ;;  %v5240_v50 = vsel %vm698_vm10, 1.0, %v9432_v17  ;;  %v5215_v36 = vsel %vm388_vm6, 1.0, %v9432_v17  ;;  %v5241_v37 = vsel %vm699_vm11, 1.0, %v9432_v17 }
 0x146   :  { %5862 = vmatpush3.bf16.msra.mxu0 %v7168_v10  ;;  %5831 = vmatprep.subr.bf16.mxu1 %v7170_v24  ;;  %v7208_v27 = vadd.f32 %v7149_v16, %v308_v1  ;;  %v7211_v18 = vadd.f32 %v7149_v16, %v306_v49  ;;  %v5242_v52 = vsel %vm700_vm12, 1.0, %v9432_v17  ;;  %v5239_v45 = vsel %vm697_vm13, 1.0, %v9432_v17 }
 0x147   :  { %5863 = vmatprep.subr.bf16.mxu0 %v7170_v24  ;;  %v720_v3 = vpack.c.bf16 %v5240_v50, %v5239_v45  ;;  %v721_v56 = vpack.c.bf16 %v5242_v52, %v5241_v37  ;;  %v5220_v39 = vsel %vm393_vm14, 1.0, %v9432_v17  ;;  %v5219_v40 = vsel %vm392_vm15, 1.0, %v9432_v17  ;;  %v9437_v50 = vld [vmem:[#allocation17_spill] sm:$0xff] }
 0x148   :  { %2472 = vperm.xlu1 %6374, %v7072_v48   ;;  %v7205_v59 = vpop.permute.xlu1 %1656  ;;  %v7251_v13 = vpop.permute.xlu0 %1647  ;;  %vm1020_vm6 = vcmp.eq.s32.totalorder %v7053_v33, %v6818_v51  ;;  %v5244_v41 = vsel %vm702_vm0, 1.0, %v9432_v17  ;;  %v5226_v7 = vsel %vm534_vm1, 1.0, %v9432_v17  ;;  %v5225_v21 = vsel %vm533_vm2, 1.0, %v9432_v17 }
 0x149   :  { %5832 = vmatpush3.bf16.msra.mxu1 %v7170_v24  ;;  %v413_v33 = vpack.c.bf16 %v5220_v39, %v5219_v40  ;;  %v5243_v5 = vsel %vm701_vm4, 1.0, %v9432_v17  ;;  %v5261_v58 = vsel %vm1019_vm5, 1.0, %v9432_v17  ;;  %v5262_v31 = vsel %vm1020_vm6, 1.0, %v9432_v17 }
 0x14a   :  { %5864 = vmatpush3.bf16.msra.mxu0 %v7170_v24  ;;  %5833 = vmatprep.subr.bf16.mxu1 %v7175_v57  ;;  %v722_v55 = vpack.c.bf16 %v5244_v41, %v5243_v5  ;;  %v557_v1 = vpack.c.bf16 %v5226_v7, %v5225_v21  ;;  %v1043_v49 = vpack.c.bf16 %v5262_v31, %v5261_v58  ;;  %v6537_v39 = vmov 21   ;;  %v7398_v5 = vld [vmem:[%s9339_s1] sm:$0xff] }
 0x14b   :  { %5865 = vmatprep.subr.bf16.mxu0 %v7175_v57  ;;  %vm1022_vm11 = vcmp.eq.s32.totalorder %v9437_v50, %v6818_v51  ;;  %vm1024_vm13 = vcmp.eq.s32.totalorder %v7059_v25, %v6818_v51  ;;  %6395 = vset.pattern.permute.xlu0 %v6537_v39  ;;  %v9441_v25 = vld [vmem:[#allocation11_spill] sm:$0xff] }
 0x14c   :  { %6376 = vset.pattern.permute.xlu1 %v9427_v29  ;;  %v7220_v26 = vpop.permute.xlu1 %1662  ;;  %v5216_v29 = vsel %vm389_vm7, 1.0, %v9432_v17  ;;  %v7291_v60 = vpop.permute.xlu0 %1659  ;;  %vm535_vm7 = vcmp.eq.s32.totalorder %v6802_v44, %v6818_v51  ;;  %v9440_v44 = vmov 16   ;;  %v5266_v41 = vsel %vm1024_vm13, 1.0, %v9432_v17  ;;  %3729 = vperm.xlu0 %6395, %v7398_v5  }
 0x14d   :  { %2628 = vperm.xlu1 %6376, %v6873_v8   ;;  %5834 = vmatpush3.bf16.msra.mxu1 %v7175_v57  ;;  %v310_v8 = vmul.f32 %v7112_v19, %v7022_v38  ;;  %v5217_v38 = vsel %vm390_vm9, 1.0, %v9432_v17  ;;  %v5227_v37 = vsel %vm535_vm7, 1.0, %v9432_v17  ;;  %vm540_vm15 = vcmp.eq.s32.totalorder %v9441_v25, %v6818_v51 }
 0x14e   :  { %5866 = vmatpush3.bf16.msra.mxu0 %v7175_v57  ;;  %5835 = vmatprep.subr.bf16.mxu1 %v7177_v62  ;;  %v412_v32 = vpack.c.bf16 %v5218_v35, %v5217_v38  ;;  %v9435_v35 = vld [vmem:[#allocation10_spill] sm:$0xff]  ;;  %v9436_v38 = vld [vmem:[#allocation12_spill] sm:$0xff]  ;;  %vm1344_vm7 = vcmp.eq.s32.totalorder %v7105_v20, %v6818_v51  ;;  %vm1347_vm13 = vcmp.eq.s32.totalorder %v7076_v14, %v6818_v51 }
 0x14f   :  { %5867 = vmatprep.subr.bf16.mxu0 %v7177_v62  ;;  %v7270_v19 = vadd.f32 %v7149_v16, %v310_v8  ;;  %v411_v16 = vpack.c.bf16 %v5216_v29, %v5215_v36  ;;  %vm537_vm9 = vcmp.eq.s32.totalorder %v9435_v35, %v6818_v51  ;;  %vm538_vm10 = vcmp.eq.s32.totalorder %v9436_v38, %v6818_v51  ;;  %v9438_v36 = vld [vmem:[#allocation20_spill] sm:$0xff]  ;;  %v9444_v35 = vld [vmem:[#allocation22_spill] sm:$0xff] }
 0x150   :  { %v7253_v28 = vpop.permute.xlu1 %1665  ;;  %v7317_v9 = vpop.permute.xlu0 %1806  ;;  %vm1023_vm12 = vcmp.eq.s32.totalorder %v9438_v36, %v6818_v51  ;;  %v5229_v45 = vsel %vm537_vm9, 1.0, %v9432_v17  ;;  %vm857_vm2 = vcmp.eq.s32.totalorder %v9444_v35, %v6818_v51  ;;  %v9445_v38 = vld [vmem:[#allocation14_spill] sm:$0xff]  ;;  %v9446_v36 = vld [vmem:[#allocation21_spill] sm:$0xff]  ;;  %v9452_v35 = vld [vmem:[#allocation31_spill] sm:$0xff] }
 0x151   :  { %2634 = vperm.xlu1 %6376, %v7072_v48   ;;  %5836 = vmatpush3.bf16.msra.mxu1 %v7177_v62  ;;  %v5265_v40 = vsel %vm1023_vm12, 1.0, %v9432_v17  ;;  %vm858_vm4 = vcmp.eq.s32.totalorder %v9445_v38, %v6818_v51  ;;  %vm1025_vm5 = vcmp.eq.s32.totalorder %v9446_v36, %v6818_v51  ;;  %vm1346_vm12 = vcmp.eq.s32.totalorder %v9452_v35, %v6818_v51 }
 0x152   :  { %5868 = vmatpush3.bf16.msra.mxu0 %v7177_v62  ;;  %5845 = vmatprep.subr.bf16.mxu1 %v7168_v10  ;;  %v5250_v20 = vsel %vm858_vm4, 1.0, %v9432_v17 }
 0x153   :  { %5893 = vmatprep.subr.bf16.mxu0 %v7168_v10 }
 0x154   :  { %5838 = vmatmul.mubr.msk.bf16.vlgmr.msra.gmra.mrb[0].mxu1 %vm414_vm3, %v411_v16  ;;  %v7341_v8 = vpop.permute.xlu0 %1815  ;;  %v9439_v16 = vld [vmem:[#allocation16_spill] sm:$0xff] }
 0x155   :  { %2637 = vperm.xlu1 %6376, %v6882_v12   ;;  %v7296_v0 = vpop.permute.xlu1 %1809  ;;  %5870 = vmatmul.mubr.msk.bf16.vlgmr.msra.gmra.mrb[16].mxu0 %vm414_vm3, %v720_v3  ;;  %vm1021_vm14 = vcmp.eq.s32.totalorder %v9439_v16, %v6818_v51  ;;  %v5264_v3 = vsel %vm1022_vm11, 1.0, %v9432_v17 }
 0x156   :  { %5841 = vmatprep.mubr.msk.bf16.mxu1 %vm414_vm3, %v412_v32  ;;  %5846 = vmatpush3.bf16.msra.mxu1 %v7168_v10  ;;  %v5230_v32 = vsel %vm538_vm10, 1.0, %v9432_v17  ;;  %v5263_v21 = vsel %vm1021_vm14, 1.0, %v9432_v17 }
 0x157   :  { %5873 = vmatprep.mubr.msk.bf16.mxu0 %vm414_vm3, %v721_v56  ;;  %5894 = vmatpush3.bf16.msra.mxu0 %v7168_v10  ;;  %v559_v58 = vpack.c.bf16 %v5230_v32, %v5229_v45  ;;  %v1044_v31 = vpack.c.bf16 %v5264_v3, %v5263_v21  ;;  %v7437_v45 = vld [vmem:[%s9339_s1 + $0x18] sm:$0xff]  ;;  %v5249_v32 = vsel %vm857_vm2, 1.0, %v9432_v17  ;;  %v5286_v21 = vsel %vm1344_vm7, 1.0, %v9432_v17 }
 0x158   :  { %5847 = vmatprep.subr.bf16.mxu1 %v7170_v24  ;;  %5895 = vmatprep.subr.bf16.mxu0 %v7170_v24 }
 0x159   :  { %6378 = vset.pattern.permute.xlu1 %v9433_v42  ;;  %v7323_v12 = vpop.permute.xlu1 %1812  ;;  %3738 = vperm.xlu0 %6395, %v7437_v45  }
 0x15a   :  { %2781 = vperm.xlu1 %6378, %v6828_v54   ;;  %5848 = vmatpush3.bf16.msra.mxu1 %v7170_v24  ;;  %v9434_v54 = vld [vmem:[#allocation9_spill] sm:$0xff] }
 0x15b   :  { %5896 = vmatpush3.bf16.msra.mxu0 %v7170_v24  ;;  %5849 = vmatprep.subr.bf16.mxu1 %v7175_v57  ;;  %vm536_vm8 = vcmp.eq.s32.totalorder %v9434_v54, %v6818_v51  ;;  %v9443_v54 = vld [vmem:[#allocation23_spill] sm:$0xff] }
 0x15c   :  { %5842 = vmatmul.mubr.msk.bf16.gmra.mrb[4].mxu1 %vm414_vm3, %v413_v33  ;;  %5897 = vmatprep.subr.bf16.mxu0 %v7175_v57  ;;  %v5228_v52 = vsel %vm536_vm8, 1.0, %v9432_v17  ;;  %v7391_v33 = vpop.permute.xlu0 %1818  ;;  %vm1026_vm1 = vcmp.eq.s32.totalorder %v9443_v54, %v6818_v51 }
 0x15d   :  { %5874 = vmatmul.mubr.msk.bf16.gmra.mrb[20].mxu0 %vm414_vm3, %v722_v55  ;;  %5853 = vmatprep.mubr.msk.bf16.mxu1 %vm414_vm3, %v557_v1  ;;  %v558_v7 = vpack.c.bf16 %v5228_v52, %v5227_v37  ;;  %v1045_v55 = vpack.c.bf16 %v5266_v41, %v5265_v40  ;;  %v9447_v37 = vld [vmem:[#allocation28_spill] sm:$0xff]  ;;  %v5268_v52 = vsel %vm1026_vm1, 1.0, %v9432_v17  ;;  %v5267_v41 = vsel %vm1025_vm5, 1.0, %v9432_v17 }
 0x15e   :  { %2784 = vperm.xlu1 %6378, %v7047_v47   ;;  %v7345_v29 = vpop.permute.xlu1 %1968  ;;  %5850 = vmatpush3.bf16.msra.mxu1 %v7175_v57  ;;  %vm1343_vm6 = vcmp.eq.s32.totalorder %v9447_v37, %v6818_v51  ;;  %v1046_v25 = vpack.c.bf16 %v5268_v52, %v5267_v41  ;;  %v9454_v52 = vld [vmem:[#allocation30_spill] sm:$0xff]  ;;  %v5289_v41 = vsel %vm1347_vm13, 1.0, %v9432_v17 }
 0x15f   :  { %5898 = vmatpush3.bf16.msra.mxu0 %v7175_v57  ;;  %5901 = vmatprep.mubr.msk.bf16.mxu0 %vm414_vm3, %v1043_v49  ;;  %v5232_v49 = vsel %vm540_vm15, 1.0, %v9432_v17  ;;  %vm1345_vm15 = vcmp.eq.s32.totalorder %v9454_v52, %v6818_v51  ;;  %v9459_v52 = vld [vmem:[#allocation24_spill] sm:$0xff] }
 0x160   :  { %5851 = vmatprep.subr.bf16.mxu1 %v7177_v62  ;;  %5899 = vmatprep.subr.bf16.mxu0 %v7177_v62  ;;  %v7430_v16 = vpop.permute.xlu0 %1827  ;;  %vm1182_vm5 = vcmp.eq.s32.totalorder %v9459_v52, %v6818_v51 }
 0x162   :  { %6379 = vset.pattern.permute.xlu1 %v9440_v44  ;;  %v7377_v56 = vpop.permute.xlu1 %1974  ;;  %5852 = vmatpush3.bf16.msra.mxu1 %v7177_v62 }
 0x163   :  { %2940 = vperm.xlu1 %6379, %v6853_v63   ;;  %5900 = vmatpush3.bf16.msra.mxu0 %v7177_v62  ;;  %v9442_v63 = vld [vmem:[#allocation13_spill] sm:$0xff] }
 0x164   :  { %5877 = vmatprep.subr.bf16.mxu1 %v7168_v10  ;;  %5925 = vmatprep.subr.bf16.mxu0 %v7168_v10  ;;  %vm539_vm0 = vcmp.eq.s32.totalorder %v9442_v63, %v6818_v51  ;;  %v9449_v63 = vld [vmem:[#allocation15_spill] sm:$0xff]  ;;  %v7466_v38 = vpop.permute.xlu0 %1971 }
 0x165   :  { %5854 = vmatmul.mubr.msk.bf16.vlgmr.msra.gmra.mrb[8].mxu1 %vm414_vm3, %v558_v7  ;;  %v5231_v50 = vsel %vm539_vm0, 1.0, %v9432_v17  ;;  %v5285_v7 = vsel %vm1343_vm6, 1.0, %v9432_v17  ;;  %vm859_vm9 = vcmp.eq.s32.totalorder %v9449_v63, %v6818_v51 }
 0x166   :  { %v7407_v1 = vpop.permute.xlu1 %1977  ;;  %5902 = vmatmul.mubr.msk.bf16.vlgmr.msra.gmra.mrb[24].mxu0 %vm414_vm3, %v1044_v31  ;;  %5857 = vmatprep.mubr.msk.bf16.mxu1 %vm414_vm3, %v559_v58  ;;  %v560_v40 = vpack.c.bf16 %v5232_v49, %v5231_v50  ;;  %v881_v58 = vpack.c.bf16 %v5250_v20, %v5249_v32  ;;  %v9448_v31 = vld [vmem:[#allocation25_spill] sm:$0xff]  ;;  %v9451_v49 = vld [vmem:[#allocation18_spill] sm:$0xff]  ;;  %v9453_v50 = vld [vmem:[#allocation44_spill] sm:$0xff]  ;;  %v5251_v37 = vsel %vm859_vm9, 1.0, %v9432_v17  ;;  %v5288_v20 = vsel %vm1346_vm12, 1.0, %v9432_v17 }
 0x167   :  { %5878 = vmatpush3.bf16.msra.mxu1 %v7168_v10  ;;  %5905 = vmatprep.mubr.msk.bf16.mxu0 %vm414_vm3, %v1045_v55  ;;  %vm860_vm8 = vcmp.eq.s32.totalorder %v9448_v31, %v6818_v51  ;;  %v1367_v55 = vpack.c.bf16 %v5286_v21, %v5285_v7  ;;  %vm862_vm11 = vcmp.eq.s32.totalorder %v9451_v49, %v6818_v51  ;;  %v9457_v49 = vld [vmem:[#allocation38_spill] sm:$0xff] }
 0x168   :  { %5926 = vmatpush3.bf16.msra.mxu0 %v7168_v10  ;;  %2946 = vperm.xlu1 %6379, %v7047_v47   ;;  %vm1348_vm14 = vcmp.eq.s32.totalorder %v9453_v50, %v6818_v51  ;;  %v5252_v36 = vsel %vm860_vm8, 1.0, %v9432_v17  ;;  %v5254_v32 = vsel %vm862_vm11, 1.0, %v9432_v17  ;;  %v7503_v21 = vpop.permute.xlu0 %1983  ;;  %vm1350_vm2 = vcmp.eq.s32.totalorder %v9457_v49, %v6818_v51 }
 0x169   :  { %5879 = vmatprep.subr.bf16.mxu1 %v7170_v24  ;;  %5927 = vmatprep.subr.bf16.mxu0 %v7170_v24  ;;  %vm1668_vm8 = vcmp.eq.s32.totalorder %v7251_v13, %v6818_v51  ;;  %v9463_v13 = vld [vmem:[#allocation26_spill] sm:$0xff]  ;;  %vm1670_vm11 = vcmp.eq.s32.totalorder %v7142_v6, %v6818_v51  ;;  %v9466_v6 = vld [vmem:[#allocation45_spill] sm:$0xff] }
 0x16b   :  { %v7441_v3 = vpop.permute.xlu1 %1821  ;;  %5880 = vmatpush3.bf16.msra.mxu1 %v7170_v24 }
 0x16c   :  { %5928 = vmatpush3.bf16.msra.mxu0 %v7170_v24  ;;  %2949 = vperm.xlu1 %6379, %v6863_v4   ;;  %v9450_v4 = vld [vmem:[#allocation27_spill] sm:$0xff]  ;;  %v7525_v50 = vpop.permute.xlu0 %2130 }
 0x16d   :  { %5858 = vmatmul.mubr.msk.bf16.gmra.mrb[12].mxu1 %vm414_vm3, %v560_v40  ;;  %5881 = vmatprep.subr.bf16.mxu1 %v7175_v57  ;;  %vm861_vm10 = vcmp.eq.s32.totalorder %v9450_v4, %v6818_v51  ;;  %v7496_v40 = vld [vmem:[%s9339_s1 + $0x20] sm:$0xff] }
 0x16e   :  { %5906 = vmatmul.mubr.msk.bf16.gmra.mrb[28].mxu0 %vm414_vm3, %v1046_v25  ;;  %5929 = vmatprep.subr.bf16.mxu0 %v7175_v57  ;;  %v5253_v14 = vsel %vm861_vm10, 1.0, %v9432_v17  ;;  %v5287_v25 = vsel %vm1345_vm15, 1.0, %v9432_v17  ;;  %vm1183_vm10 = vcmp.eq.s32.totalorder %v9463_v13, %v6818_v51  ;;  %vm1671_vm15 = vcmp.eq.s32.totalorder %v7205_v59, %v6818_v51 }
 0x16f   :  { %v7458_v54 = vpop.permute.xlu1 %1824  ;;  %5882 = vmatpush3.bf16.msra.mxu1 %v7175_v57  ;;  %5885 = vmatprep.mubr.msk.bf16.mxu1 %vm414_vm3, %v881_v58  ;;  %v9455_v58 = vld [vmem:[#allocation29_spill] sm:$0xff]  ;;  %v883_v31 = vpack.c.bf16 %v5254_v32, %v5253_v14  ;;  %v1368_v63 = vpack.c.bf16 %v5288_v20, %v5287_v25  ;;  %v9460_v32 = vld [vmem:[#allocation36_spill] sm:$0xff]  ;;  %v9461_v20 = vld [vmem:[#allocation43_spill] sm:$0xff]  ;;  %v5274_v25 = vsel %vm1182_vm5, 1.0, %v9432_v17  ;;  %v9469_v59 = vmov 17  }
 0x170   :  { %5930 = vmatpush3.bf16.msra.mxu0 %v7175_v57  ;;  %5933 = vmatprep.mubr.msk.bf16.mxu0 %vm414_vm3, %v1367_v55  ;;  %vm864_vm0 = vcmp.eq.s32.totalorder %v9455_v58, %v6818_v51  ;;  %v9456_v55 = vld [vmem:[#allocation19_spill] sm:$0xff]  ;;  %vm1349_vm6 = vcmp.eq.s32.totalorder %v9460_v32, %v6818_v51  ;;  %vm1667_vm7 = vcmp.eq.s32.totalorder %v9461_v20, %v6818_v51  ;;  %v7559_v58 = vld [vmem:[%s9339_s1 + $0x20] sm:$0xff] }
 0x171   :  { %6380 = vset.pattern.permute.xlu1 %v9433_v42  ;;  %5883 = vmatprep.subr.bf16.mxu1 %v7177_v62  ;;  %v5290_v42 = vsel %vm1348_vm14, 1.0, %v9432_v17  ;;  %vm863_vm1 = vcmp.eq.s32.totalorder %v9456_v55, %v6818_v51  ;;  %v5309_v55 = vsel %vm1667_vm7, 1.0, %v9432_v17  ;;  %vm1669_vm14 = vcmp.eq.s32.totalorder %v9466_v6, %v6818_v51  ;;  %v6451_v6 = vld [vmem:[%s9339_s1 + $0x8] sm:$0xff] }
 0x172   :  { %2793 = vperm.xlu1 %6380, %v6843_v61   ;;  %5931 = vmatprep.subr.bf16.mxu0 %v7177_v62  ;;  %v882_v61 = vpack.c.bf16 %v5252_v36, %v5251_v37  ;;  %v1369_v4 = vpack.c.bf16 %v5290_v42, %v5289_v41  ;;  %v5256_v36 = vsel %vm864_vm0, 1.0, %v9432_v17  ;;  %v9458_v37 = vld [vmem:[#allocation34_spill] sm:$0xff]  ;;  %v5255_v14 = vsel %vm863_vm1, 1.0, %v9432_v17  ;;  %v7552_v42 = vld [vmem:[%s9339_s1 + $0x38] sm:$0xff] }
 0x173   :  { %5884 = vmatpush3.bf16.msra.mxu1 %v7177_v62  ;;  %3741 = vperm.xlu0 %6395, %v7496_v40   ;;  %vm1181_vm4 = vcmp.eq.s32.totalorder %v9458_v37, %v6818_v51  ;;  %v5292_v41 = vsel %vm1350_vm2, 1.0, %v9432_v17  ;;  %v9462_v37 = vld [vmem:[#allocation35_spill] sm:$0xff]  ;;  %vm1672_vm0 = vcmp.eq.s32.totalorder %v7291_v60, %v6818_v51  ;;  %v5311_v13 = vsel %vm1669_vm14, 1.0, %v9432_v17 }
 0x174   :  { %v7501_v7 = vpop.permute.xlu1 %1980  ;;  %5932 = vmatpush3.bf16.msra.mxu0 %v7177_v62  ;;  %5909 = vmatprep.subr.bf16.mxu1 %v7168_v10  ;;  %vm1184_vm9 = vcmp.eq.s32.totalorder %v9462_v37, %v6818_v51  ;;  %vm1673_vm7 = vcmp.eq.s32.totalorder %v7220_v26, %v6818_v51  ;;  %vm1994_vm14 = vcmp.eq.s32.totalorder %v7407_v1, %v6818_v51 }
 0x175   :  { %5957 = vmatprep.subr.bf16.mxu0 %v7168_v10  ;;  %v5276_v20 = vsel %vm1184_vm9, 1.0, %v9432_v17  ;;  %vm1992_vm9 = vcmp.eq.s32.totalorder %v7466_v38, %v6818_v51 }
 0x176   :  { %2796 = vperm.xlu1 %6380, %v7072_v48   ;;  %5886 = vmatmul.mubr.msk.bf16.vlgmr.msra.gmra.mrb[16].mxu1 %vm414_vm3, %v882_v61  ;;  %v5273_v61 = vsel %vm1181_vm4, 1.0, %v9432_v17  ;;  %vm1674_vm4 = vcmp.eq.s32.totalorder %v7253_v28, %v6818_v51  ;;  %v5334_v28 = vsel %vm1992_vm9, 1.0, %v9432_v17 }
 0x177   :  { %5934 = vmatmul.mubr.msk.bf16.vlgmr.msra.gmra.mrb[32].mxu0 %vm414_vm3, %v1368_v63  ;;  %5889 = vmatprep.mubr.msk.bf16.mxu1 %vm414_vm3, %v883_v31  ;;  %v5291_v63 = vsel %vm1349_vm6, 1.0, %v9432_v17  ;;  %v1205_v52 = vpack.c.bf16 %v5274_v25, %v5273_v61  ;;  %v9465_v61 = vld [vmem:[#allocation32_spill] sm:$0xff]  ;;  %v5312_v25 = vsel %vm1670_vm11, 1.0, %v9432_v17 }
 0x178   :  { %v7523_v35 = vpop.permute.xlu1 %1986  ;;  %5910 = vmatpush3.bf16.msra.mxu1 %v7168_v10  ;;  %5937 = vmatprep.mubr.msk.bf16.mxu0 %vm414_vm3, %v1369_v4  ;;  %v5310_v4 = vsel %vm1668_vm8, 1.0, %v9432_v17  ;;  %v1370_v49 = vpack.c.bf16 %v5292_v41, %v5291_v63  ;;  %v9464_v41 = vld [vmem:[#allocation37_spill] sm:$0xff]  ;;  %vm1186_vm13 = vcmp.eq.s32.totalorder %v9465_v61, %v6818_v51  ;;  %vm1991_vm8 = vcmp.eq.s32.totalorder %v7345_v29, %v6818_v51 }
 0x179   :  { %5958 = vmatpush3.bf16.msra.mxu0 %v7168_v10  ;;  %5911 = vmatprep.subr.bf16.mxu1 %v7170_v24  ;;  %vm1185_vm12 = vcmp.eq.s32.totalorder %v9464_v41, %v6818_v51  ;;  %v5314_v41 = vsel %vm1672_vm0, 1.0, %v9432_v17  ;;  %vm1996_vm0 = vcmp.eq.s32.totalorder %v7503_v21, %v6818_v51 }
 0x17a   :  { %6382 = vset.pattern.permute.xlu1 %v9440_v44  ;;  %5959 = vmatprep.subr.bf16.mxu0 %v7170_v24  ;;  %v884_v44 = vpack.c.bf16 %v5256_v36, %v5255_v14  ;;  %v7580_v36 = vpop.permute.xlu0 %2139  ;;  %v1691_v14 = vpack.c.bf16 %v5310_v4, %v5309_v55  ;;  %v6538_v55 = vmov 22   ;;  %v5277_v4 = vsel %vm1185_vm12, 1.0, %v9432_v17 }
 0x17b   :  { %2952 = vperm.xlu1 %6382, %v7559_v58   ;;  %3750 = vperm.xlu0 %6395, %v7552_v42   ;;  %vm1509_vm12 = vcmp.eq.s32.totalorder %v7179_v15, %v6818_v51 }
 0x17c   :  { %v7562_v31 = vpop.permute.xlu1 %1989  ;;  %5912 = vmatpush3.bf16.msra.mxu1 %v7170_v24 }
 0x17d   :  { %5960 = vmatpush3.bf16.msra.mxu0 %v7170_v24  ;;  %5913 = vmatprep.subr.bf16.mxu1 %v7175_v57 }
 0x17e   :  { %5890 = vmatmul.mubr.msk.bf16.gmra.mrb[20].mxu1 %vm414_vm3, %v884_v44  ;;  %5961 = vmatprep.subr.bf16.mxu0 %v7175_v57  ;;  %v7616_v44 = vld [vmem:[%s9339_s1 + $0x38] sm:$0xff]  ;;  %v7619_v63 = vpop.permute.xlu0 %2142 }
 0x17f   :  { %2958 = vperm.xlu1 %6382, %v7072_v48   ;;  %5938 = vmatmul.mubr.msk.bf16.gmra.mrb[36].mxu0 %vm414_vm3, %v1370_v49  ;;  %v5275_v48 = vsel %vm1183_vm10, 1.0, %v9432_v17  ;;  %v5278_v49 = vsel %vm1186_vm13, 1.0, %v9432_v17 }
 0x180   :  { %5914 = vmatpush3.bf16.msra.mxu1 %v7175_v57  ;;  %5917 = vmatprep.mubr.msk.bf16.mxu1 %vm414_vm3, %v1205_v52  ;;  %v1206_v52 = vpack.c.bf16 %v5276_v20, %v5275_v48  ;;  %v1692_v20 = vpack.c.bf16 %v5312_v25, %v5311_v13  ;;  %v1207_v61 = vpack.c.bf16 %v5278_v49, %v5277_v4  ;;  %v9468_v48 = vld [vmem:[#allocation33_spill] sm:$0xff]  ;;  %v9470_v4 = vld [vmem:[#allocation46_spill] sm:$0xff]  ;;  %v9471_v49 = vld [vmem:[#allocation39_spill] sm:$0xff] }
 0x181   :  { %v7594_v32 = vpop.permute.xlu1 %2133  ;;  %5962 = vmatpush3.bf16.msra.mxu0 %v7175_v57  ;;  %5965 = vmatprep.mubr.msk.bf16.mxu0 %vm414_vm3, %v1691_v14  ;;  %v5313_v14 = vsel %vm1671_vm15, 1.0, %v9432_v17  ;;  %vm1187_vm2 = vcmp.eq.s32.totalorder %v9468_v48, %v6818_v51  ;;  %vm1505_vm5 = vcmp.eq.s32.totalorder %v9470_v4, %v6818_v51  ;;  %vm1506_vm6 = vcmp.eq.s32.totalorder %v9471_v49, %v6818_v51 }
 0x182   :  { %5915 = vmatprep.subr.bf16.mxu1 %v7177_v62  ;;  %5963 = vmatprep.subr.bf16.mxu0 %v7177_v62  ;;  %v1693_v60 = vpack.c.bf16 %v5314_v41, %v5313_v14  ;;  %v5279_v14 = vsel %vm1187_vm2, 1.0, %v9432_v17  ;;  %v5316_v41 = vsel %vm1674_vm4, 1.0, %v9432_v17  ;;  %v5297_v26 = vsel %vm1505_vm5, 1.0, %v9432_v17 }
 0x183   :  { %2961 = vperm.xlu1 %6382, %v7616_v44   ;;  %6399 = vset.pattern.permute.xlu0 %v6538_v55  ;;  %v5298_v29 = vsel %vm1506_vm6, 1.0, %v9432_v17  ;;  %v9474_v49 = vmov 18   ;;  %vm1995_vm15 = vcmp.eq.s32.totalorder %v7501_v7, %v6818_v51  ;;  %vm1512_vm2 = vcmp.eq.s32.totalorder %v7213_v22, %v6818_v51 }
 0x184   :  { %5916 = vmatpush3.bf16.msra.mxu1 %v7177_v62  ;;  %3893 = vperm.xlu0 %6399, %v7161_v46   ;;  %v9467_v46 = vld [vmem:[#allocation40_spill] sm:$0xff]  ;;  %v5337_v15 = vsel %vm1995_vm15, 1.0, %v9432_v17  ;;  %vm1511_vm4 = vcmp.eq.s32.totalorder %v7173_v30, %v6818_v51  ;;  %vm1998_vm5 = vcmp.eq.s32.totalorder %v7562_v31, %v6818_v51  ;;  %v5304_v22 = vsel %vm1512_vm2, 1.0, %v9432_v17 }
 0x185   :  { %v7631_v37 = vpop.permute.xlu1 %2136  ;;  %5964 = vmatpush3.bf16.msra.mxu0 %v7177_v62  ;;  %5941 = vmatprep.subr.bf16.mxu1 %v7168_v10  ;;  %vm1188_vm1 = vcmp.eq.s32.totalorder %v9467_v46, %v6818_v51  ;;  %v5315_v46 = vsel %vm1673_vm7, 1.0, %v9432_v17  ;;  %v5303_v30 = vsel %vm1511_vm4, 1.0, %v9432_v17  ;;  %vm1829_vm6 = vcmp.eq.s32.totalorder %v7317_v9, %v6818_v51  ;;  %v6454_v31 = vld [vmem:[%s9339_s1 + $0x18] sm:$0xff] }
 0x186   :  { %5989 = vmatprep.subr.bf16.mxu0 %v7168_v10  ;;  %v5280_v25 = vsel %vm1188_vm1, 1.0, %v9432_v17  ;;  %v1694_v48 = vpack.c.bf16 %v5316_v41, %v5315_v46  ;;  %vm1993_vm1 = vcmp.eq.s32.totalorder %v7377_v56, %v6818_v51  ;;  %vm1830_vm7 = vcmp.eq.s32.totalorder %v7296_v0, %v6818_v51 }
 0x187   :  { %6384 = vset.pattern.permute.xlu1 %v9469_v59  ;;  %5918 = vmatmul.mubr.msk.bf16.vlgmr.msra.gmra.mrb[24].mxu1 %vm414_vm3, %v1206_v52  ;;  %v7666_v52 = vpop.permute.xlu0 %2151  ;;  %v1208_v38 = vpack.c.bf16 %v5280_v25, %v5279_v14  ;;  %v9473_v25 = vld [vmem:[#allocation41_spill] sm:$0xff]  ;;  %v9475_v14 = vld [vmem:[#allocation48_spill] sm:$0xff]  ;;  %v1532_v9 = vpack.c.bf16 %v5304_v22, %v5303_v30 }
 0x188   :  { %5966 = vmatmul.mubr.msk.bf16.vlgmr.msra.gmra.mrb[40].mxu0 %vm414_vm3, %v1692_v20  ;;  %3088 = vperm.xlu1 %6384, %v6451_v6   ;;  %v5333_v20 = vsel %vm1991_vm8, 1.0, %v9432_v17  ;;  %v9472_v6 = vld [vmem:[#allocation47_spill] sm:$0xff]  ;;  %vm1507_vm11 = vcmp.eq.s32.totalorder %v9473_v25, %v6818_v51  ;;  %vm1510_vm13 = vcmp.eq.s32.totalorder %v9475_v14, %v6818_v51  ;;  %v5335_v25 = vsel %vm1993_vm1, 1.0, %v9432_v17 }
 0x189   :  { %5921 = vmatprep.mubr.msk.bf16.mxu1 %vm414_vm3, %v1207_v61  ;;  %5942 = vmatpush3.bf16.msra.mxu1 %v7168_v10  ;;  %vm1508_vm10 = vcmp.eq.s32.totalorder %v9472_v6, %v6818_v51  ;;  %v2015_v4 = vpack.c.bf16 %v5334_v28, %v5333_v20  ;;  %v5301_v20 = vsel %vm1509_vm12, 1.0, %v9432_v17  ;;  %v5302_v28 = vsel %vm1510_vm13, 1.0, %v9432_v17  ;;  %v6453_v14 = vld [vmem:[%s9339_s1 + $0x10] sm:$0xff] }
 0x18a   :  { %v7670_v13 = vpop.permute.xlu1 %2292  ;;  %5969 = vmatprep.mubr.msk.bf16.mxu0 %vm414_vm3, %v1693_v60  ;;  %5990 = vmatpush3.bf16.msra.mxu0 %v7168_v10  ;;  %v1529_v60 = vpack.c.bf16 %v5298_v29, %v5297_v26  ;;  %v5300_v26 = vsel %vm1508_vm10, 1.0, %v9432_v17  ;;  %v5299_v29 = vsel %vm1507_vm11, 1.0, %v9432_v17  ;;  %v5338_v6 = vsel %vm1996_vm0, 1.0, %v9432_v17 }
 0x18b   :  { %5943 = vmatprep.subr.bf16.mxu1 %v7170_v24  ;;  %5991 = vmatprep.subr.bf16.mxu0 %v7170_v24  ;;  %v1530_v1 = vpack.c.bf16 %v5300_v26, %v5299_v29  ;;  %v1531_v21 = vpack.c.bf16 %v5302_v28, %v5301_v20  ;;  %v2017_v26 = vpack.c.bf16 %v5338_v6, %v5337_v15  ;;  %v5322_v20 = vsel %vm1830_vm7, 1.0, %v9432_v17  ;;  %v6455_v6 = vld [vmem:[%s9339_s1 + $0x28] sm:$0xff] }
 0x18c   :  { %3091 = vperm.xlu1 %6384, %v7047_v47   ;;  %3905 = vperm.xlu0 %6399, %v7244_v34   ;;  %v7699_v47 = vpop.permute.xlu0 %2295  ;;  %vm1997_vm8 = vcmp.eq.s32.totalorder %v7523_v35, %v6818_v51  ;;  %vm2315_vm9 = vcmp.eq.s32.totalorder %v7670_v13, %v6818_v51  ;;  %v5321_v35 = vsel %vm1829_vm6, 1.0, %v9432_v17  ;;  %vm1832_vm11 = vcmp.eq.s32.totalorder %v7341_v8, %v6818_v51 }
 0x18d   :  { %5944 = vmatpush3.bf16.msra.mxu1 %v7170_v24  ;;  %vm2316_vm10 = vcmp.eq.s32.totalorder %v7699_v47, %v6818_v51  ;;  %v5339_v28 = vsel %vm1997_vm8, 1.0, %v9432_v17  ;;  %v5357_v47 = vsel %vm2315_vm9, 1.0, %v9432_v17  ;;  %vm1833_vm12 = vcmp.eq.s32.totalorder %v7391_v33, %v6818_v51 }
 0x18e   :  { %v7695_v61 = vpop.permute.xlu1 %2298  ;;  %5992 = vmatpush3.bf16.msra.mxu0 %v7170_v24  ;;  %5945 = vmatprep.subr.bf16.mxu1 %v7175_v57  ;;  %vm1834_vm0 = vcmp.eq.s32.totalorder %v7441_v3, %v6818_v51  ;;  %vm1835_vm6 = vcmp.eq.s32.totalorder %v7458_v54, %v6818_v51  ;;  %vm2153_vm8 = vcmp.eq.s32.totalorder %v7525_v50, %v6818_v51 }
 0x18f   :  { %5922 = vmatmul.mubr.msk.bf16.gmra.mrb[28].mxu1 %vm414_vm3, %v1208_v38  ;;  %5993 = vmatprep.subr.bf16.mxu0 %v7175_v57  ;;  %v6452_v38 = vld [vmem:[%s9339_s1] sm:$0xff]  ;;  %vm2317_vm2 = vcmp.eq.s32.totalorder %v7695_v61, %v6818_v51  ;;  %v5325_v61 = vsel %vm1833_vm12, 1.0, %v9432_v17  ;;  %v5326_v22 = vsel %vm1834_vm0, 1.0, %v9432_v17  ;;  %vm2154_vm9 = vcmp.eq.s32.totalorder %v7594_v32, %v6818_v51 }
 0x190   :  { %5970 = vmatmul.mubr.msk.bf16.gmra.mrb[44].mxu0 %vm414_vm3, %v1694_v48  ;;  %6385 = vset.pattern.permute.xlu1 %v9474_v49  ;;  %v7733_v46 = vpop.permute.xlu0 %2307  ;;  %v5336_v48 = vsel %vm1994_vm14, 1.0, %v9432_v17  ;;  %vm1831_vm14 = vcmp.eq.s32.totalorder %v7323_v12, %v6818_v51  ;;  %v5324_v12 = vsel %vm1832_vm11, 1.0, %v9432_v17  ;;  %v5345_v32 = vsel %vm2153_vm8, 1.0, %v9432_v17 }
 0x191   :  { %5946 = vmatpush3.bf16.msra.mxu1 %v7175_v57  ;;  %5949 = vmatprep.mubr.msk.bf16.mxu1 %vm414_vm3, %v1529_v60  ;;  %v6539_v60 = vmov 23   ;;  %vm2320_vm13 = vcmp.eq.s32.totalorder %v7733_v46, %v6818_v51  ;;  %v5359_v46 = vsel %vm2317_vm2, 1.0, %v9432_v17  ;;  %vm2155_vm11 = vcmp.eq.s32.totalorder %v7631_v37, %v6818_v51 }
 0x192   :  { %v7717_v41 = vpop.permute.xlu1 %2301  ;;  %5994 = vmatpush3.bf16.msra.mxu0 %v7175_v57  ;;  %5997 = vmatprep.mubr.msk.bf16.mxu0 %vm414_vm3, %v2015_v4  ;;  %v2016_v4 = vpack.c.bf16 %v5336_v48, %v5335_v25  ;;  %v5358_v48 = vsel %vm2316_vm10, 1.0, %v9432_v17  ;;  %vm2156_vm10 = vcmp.eq.s32.totalorder %v7580_v36, %v6818_v51  ;;  %v9476_v37 = vmov 19  }
 0x193   :  { %3246 = vperm.xlu1 %6385, %v6452_v38   ;;  %5947 = vmatprep.subr.bf16.mxu1 %v7177_v62  ;;  %v5340_v38 = vsel %vm1998_vm5, 1.0, %v9432_v17  ;;  %vm2318_vm1 = vcmp.eq.s32.totalorder %v7717_v41, %v6818_v51  ;;  %vm1836_vm5 = vcmp.eq.s32.totalorder %v7430_v16, %v6818_v51  ;;  %v5348_v36 = vsel %vm2156_vm10, 1.0, %v9432_v17 }
 0x194   :  { %5995 = vmatprep.subr.bf16.mxu0 %v7177_v62  ;;  %6401 = vset.pattern.permute.xlu0 %v6539_v60  ;;  %v7773_v56 = vpop.permute.xlu0 %2454  ;;  %v2018_v13 = vpack.c.bf16 %v5340_v38, %v5339_v28  ;;  %v5360_v30 = vsel %vm2318_vm1, 1.0, %v9432_v17  ;;  %v1855_v38 = vpack.c.bf16 %v5326_v22, %v5325_v61  ;;  %v5328_v54 = vsel %vm1836_vm5, 1.0, %v9432_v17 }
 0x195   :  { %5948 = vmatpush3.bf16.msra.mxu1 %v7177_v62  ;;  %4051 = vperm.xlu0 %6401, %v7398_v5   ;;  %v2340_v41 = vpack.c.bf16 %v5360_v30, %v5359_v46  ;;  %vm2160_vm0 = vcmp.eq.s32.totalorder %v7666_v52, %v6818_v51  ;;  %vm2477_vm2 = vcmp.eq.s32.totalorder %v7773_v56, %v6818_v51  ;;  %v9477_v30 = vmov 20  }
 0x196   :  { %5996 = vmatpush3.bf16.msra.mxu0 %v7177_v62  ;;  %5973 = vmatprep.subr.bf16.mxu1 %v7168_v10  ;;  %v5352_v52 = vsel %vm2160_vm0, 1.0, %v9432_v17  ;;  %v5369_v56 = vsel %vm2477_vm2, 1.0, %v9432_v17 }
 0x197   :  { %v7765_v7 = vpop.permute.xlu1 %2145  ;;  %3252 = vperm.xlu1 %6385, %v6453_v14   ;;  %6021 = vmatprep.subr.bf16.mxu0 %v7168_v10  ;;  %v6456_v14 = vld [vmem:[%s9339_s1 + $0x30] sm:$0xff] }
 0x198   :  { %5950 = vmatmul.mubr.msk.bf16.vlgmr.msra.gmra.mrb[32].mxu1 %vm414_vm3, %v1530_v1  ;;  %v7805_v0 = vpop.permute.xlu0 %2463  ;;  %v1853_v1 = vpack.c.bf16 %v5322_v20, %v5321_v35  ;;  %v5346_v35 = vsel %vm2154_vm9, 1.0, %v9432_v17 }
 0x199   :  { %5998 = vmatmul.mubr.msk.bf16.vlgmr.msra.gmra.mrb[48].mxu0 %vm414_vm3, %v2016_v4  ;;  %5953 = vmatprep.mubr.msk.bf16.mxu1 %vm414_vm3, %v1531_v21  ;;  %v5323_v4 = vsel %vm1831_vm14, 1.0, %v9432_v17  ;;  %vm2158_vm14 = vcmp.eq.s32.totalorder %v7765_v7, %v6818_v51  ;;  %vm2480_vm8 = vcmp.eq.s32.totalorder %v7805_v0, %v6818_v51 }
 0x19a   :  { %5974 = vmatpush3.bf16.msra.mxu1 %v7168_v10  ;;  %6001 = vmatprep.mubr.msk.bf16.mxu0 %vm414_vm3, %v2017_v26  ;;  %v5362_v26 = vsel %vm2320_vm13, 1.0, %v9432_v17  ;;  %v1854_v33 = vpack.c.bf16 %v5324_v12, %v5323_v4  ;;  %vm2157_vm13 = vcmp.eq.s32.totalorder %v7619_v63, %v6818_v51  ;;  %v7951_v12 = vld [vmem:[%s9339_s1 + $0x10] sm:$0xff] }
 0x19b   :  { %v7785_v29 = vpop.permute.xlu1 %2148  ;;  %6022 = vmatpush3.bf16.msra.mxu0 %v7168_v10  ;;  %3255 = vperm.xlu1 %6385, %v6454_v31   ;;  %v5349_v7 = vsel %vm2157_vm13, 1.0, %v9432_v17 }
 0x19c   :  { %5975 = vmatprep.subr.bf16.mxu1 %v7170_v24  ;;  %6023 = vmatprep.subr.bf16.mxu0 %v7170_v24  ;;  %v7843_v21 = vpop.permute.xlu0 %2466  ;;  %vm2159_vm1 = vcmp.eq.s32.totalorder %v7785_v29, %v6818_v51 }
 0x19d   :  { %4060 = vperm.xlu0 %6401, %v7437_v45   ;;  %v5351_v29 = vsel %vm2159_vm1, 1.0, %v9432_v17 }
 0x19e   :  { %5976 = vmatpush3.bf16.msra.mxu1 %v7170_v24 }
 0x19f   :  { %6024 = vmatpush3.bf16.msra.mxu0 %v7170_v24  ;;  %6386 = vset.pattern.permute.xlu1 %v9469_v59  ;;  %v2339_v59 = vpack.c.bf16 %v5358_v48, %v5357_v47  ;;  %v2177_v48 = vpack.c.bf16 %v5346_v35, %v5345_v32 }
 0x1a0   :  { %v2305_v15 = vpop.permute.xlu1 %2304  ;;  %3100 = vperm.xlu1 %6386, %v6455_v6   ;;  %5954 = vmatmul.mubr.msk.bf16.gmra.mrb[36].mxu1 %vm414_vm3, %v1532_v9  ;;  %v7887_v9 = vpop.permute.xlu0 %2475  ;;  %v5350_v6 = vsel %vm2158_vm14, 1.0, %v9432_v17 }
 0x1a1   :  { %5977 = vmatprep.subr.bf16.mxu1 %v7175_v57  ;;  %6002 = vmatmul.mubr.msk.bf16.gmra.mrb[52].mxu0 %vm414_vm3, %v2018_v13  ;;  %vm2319_vm15 = vcmp.eq.s32.totalorder %v2305_v15, %v6818_v51 }
 0x1a2   :  { %6025 = vmatprep.subr.bf16.mxu0 %v7175_v57  ;;  %5978 = vmatpush3.bf16.msra.mxu1 %v7175_v57  ;;  %v5361_v8 = vsel %vm2319_vm15, 1.0, %v9432_v17 }
 0x1a3   :  { %5981 = vmatprep.mubr.msk.bf16.mxu1 %vm414_vm3, %v1853_v1  ;;  %6026 = vmatpush3.bf16.msra.mxu0 %v7175_v57  ;;  %v2341_v31 = vpack.c.bf16 %v5362_v26, %v5361_v8  ;;  %v7942_v1 = vld [vmem:[%s9339_s1 + $0x8] sm:$0xff]  ;;  %v2179_v8 = vpack.c.bf16 %v5350_v6, %v5349_v7 }
 0x1a4   :  { %v2311_v25 = vpop.permute.xlu1 %2310  ;;  %6029 = vmatprep.mubr.msk.bf16.mxu0 %vm414_vm3, %v2339_v59  ;;  %3103 = vperm.xlu1 %6386, %v6456_v14   ;;  %v2620_v13 = vpop.permute.xlu0 %2619  ;;  %v6540_v59 = vmov 24  }
 0x1a5   :  { %5979 = vmatprep.subr.bf16.mxu1 %v7177_v62  ;;  %6027 = vmatprep.subr.bf16.mxu0 %v7177_v62  ;;  %vm2321_vm7 = vcmp.eq.s32.totalorder %v2311_v25, %v6818_v51  ;;  %vm2640_vm12 = vcmp.eq.s32.totalorder %v2620_v13, %v6818_v51 }
 0x1a6   :  { %5980 = vmatpush3.bf16.msra.mxu1 %v7177_v62  ;;  %4063 = vperm.xlu0 %6401, %v7496_v40   ;;  %v5363_v50 = vsel %vm2321_vm7, 1.0, %v9432_v17  ;;  %v5382_v15 = vsel %vm2640_vm12, 1.0, %v9432_v17  ;;  %vm2481_vm7 = vcmp.eq.s32.totalorder %v7843_v21, %v6818_v51 }
 0x1a7   :  { %6028 = vmatpush3.bf16.msra.mxu0 %v7177_v62  ;;  %6005 = vmatprep.subr.bf16.mxu1 %v7168_v10 }
 0x1a8   :  { %v2314_v3 = vpop.permute.xlu1 %2313  ;;  %6388 = vset.pattern.permute.xlu1 %v9474_v49  ;;  %6053 = vmatprep.subr.bf16.mxu0 %v7168_v10 }
 0x1a9   :  { %vm2322_vm4 = vcmp.eq.s32.totalorder %v2314_v3, %v6818_v51  ;;  %3258 = vperm.xlu1 %6388, %v7559_v58   ;;  %5982 = vmatmul.mubr.msk.bf16.vlgmr.msra.gmra.mrb[40].mxu1 %vm414_vm3, %v1854_v33  ;;  %v5327_v58 = vsel %vm1835_vm6, 1.0, %v9432_v17  ;;  %v2180_v3 = vpack.c.bf16 %v5352_v52, %v5351_v29 }
 0x1aa   :  { %6030 = vmatmul.mubr.msk.bf16.vlgmr.msra.gmra.mrb[56].mxu0 %vm414_vm3, %v2340_v41  ;;  %5985 = vmatprep.mubr.msk.bf16.mxu1 %vm414_vm3, %v1855_v38  ;;  %v5364_v16 = vsel %vm2322_vm4, 1.0, %v9432_v17  ;;  %v1856_v28 = vpack.c.bf16 %v5328_v54, %v5327_v58  ;;  %v6541_v41 = vmov 26   ;;  %v5373_v54 = vsel %vm2481_vm7, 1.0, %v9432_v17 }
 0x1ab   :  { %6006 = vmatpush3.bf16.msra.mxu1 %v7168_v10  ;;  %6033 = vmatprep.mubr.msk.bf16.mxu0 %vm414_vm3, %v2341_v31  ;;  %v2342_v20 = vpack.c.bf16 %v5364_v16, %v5363_v50  ;;  %v2632_v31 = vpop.permute.xlu0 %2631  ;;  %v5372_v58 = vsel %vm2480_vm8, 1.0, %v9432_v17 }
 0x1ac   :  { %6054 = vmatpush3.bf16.msra.mxu0 %v7168_v10  ;;  %6007 = vmatprep.subr.bf16.mxu1 %v7170_v24  ;;  %vm2644_vm13 = vcmp.eq.s32.totalorder %v2632_v31, %v6818_v51 }
 0x1ad   :  { %v7903_v49 = vpop.permute.xlu1 %2457  ;;  %3264 = vperm.xlu1 %6388, %v6456_v14   ;;  %6055 = vmatprep.subr.bf16.mxu0 %v7170_v24 }
 0x1ae   :  { %4072 = vperm.xlu0 %6401, %v7552_v42   ;;  %vm2478_vm4 = vcmp.eq.s32.totalorder %v7903_v49, %v6818_v51 }
 0x1af   :  { %6008 = vmatpush3.bf16.msra.mxu1 %v7170_v24  ;;  %v5370_v22 = vsel %vm2478_vm4, 1.0, %v9432_v17  ;;  %v7997_v21 = vpop.permute.xlu0 %2778 }
 0x1b0   :  { %6056 = vmatpush3.bf16.msra.mxu0 %v7170_v24  ;;  %6009 = vmatprep.subr.bf16.mxu1 %v7175_v57  ;;  %v2501_v38 = vpack.c.bf16 %v5370_v22, %v5369_v56  ;;  %vm2801_vm1 = vcmp.eq.s32.totalorder %v7997_v21, %v6818_v51 }
 0x1b1   :  { %v7913_v47 = vpop.permute.xlu1 %2460  ;;  %3267 = vperm.xlu1 %6388, %v7616_v44   ;;  %5986 = vmatmul.mubr.msk.bf16.gmra.mrb[44].mxu1 %vm414_vm3, %v1856_v28  ;;  %v5347_v44 = vsel %vm2155_vm11, 1.0, %v9432_v17  ;;  %vm2484_vm11 = vcmp.eq.s32.totalorder %v7887_v9, %v6818_v51  ;;  %v6542_v28 = vmov 25  }
 0x1b2   :  { %6034 = vmatmul.mubr.msk.bf16.gmra.mrb[60].mxu0 %vm414_vm3, %v2342_v20  ;;  %6057 = vmatprep.subr.bf16.mxu0 %v7175_v57  ;;  %v2178_v4 = vpack.c.bf16 %v5348_v36, %v5347_v44  ;;  %vm2479_vm9 = vcmp.eq.s32.totalorder %v7913_v47, %v6818_v51  ;;  %v5376_v9 = vsel %vm2484_vm11, 1.0, %v9432_v17  ;;  %v8030_v36 = vld [vmem:[%s9339_s1 + $0x28] sm:$0xff] }
 0x1b3   :  { %6010 = vmatpush3.bf16.msra.mxu1 %v7175_v57  ;;  %6013 = vmatprep.mubr.msk.bf16.mxu1 %vm414_vm3, %v2177_v48  ;;  %v5371_v49 = vsel %vm2479_vm9, 1.0, %v9432_v17  ;;  %v2788_v20 = vpop.permute.xlu0 %2787  ;;  %v5386_v48 = vsel %vm2644_vm13, 1.0, %v9432_v17 }
 0x1b4   :  { %6058 = vmatpush3.bf16.msra.mxu0 %v7175_v57  ;;  %6011 = vmatprep.subr.bf16.mxu1 %v7177_v62  ;;  %v2502_v35 = vpack.c.bf16 %v5372_v58, %v5371_v49  ;;  %vm2804_vm2 = vcmp.eq.s32.totalorder %v2788_v20, %v6818_v51 }
 0x1b5   :  { %6390 = vset.pattern.permute.xlu1 %v9476_v37  ;;  %6059 = vmatprep.subr.bf16.mxu0 %v7177_v62 }
 0x1b6   :  { %v2617_v63 = vpop.permute.xlu1 %2616  ;;  %3410 = vperm.xlu1 %6390, %v7942_v1   ;;  %6405 = vset.pattern.permute.xlu0 %v6540_v59 }
 0x1b7   :  { %vm2639_vm15 = vcmp.eq.s32.totalorder %v2617_v63, %v6818_v51  ;;  %6012 = vmatpush3.bf16.msra.mxu1 %v7177_v62  ;;  %4215 = vperm.xlu0 %6405, %v7942_v1   ;;  %v8043_v6 = vpop.permute.xlu0 %2790 }
 0x1b8   :  { %v5381_v25 = vsel %vm2639_vm15, 1.0, %v9432_v17  ;;  %6060 = vmatpush3.bf16.msra.mxu0 %v7177_v62  ;;  %6037 = vmatprep.subr.bf16.mxu1 %v7168_v10 }
 0x1b9   :  { %v2663_v14 = vpack.c.bf16 %v5382_v15, %v5381_v25  ;;  %6085 = vmatprep.subr.bf16.mxu0 %v7168_v10 }
 0x1ba   :  { %v2623_v26 = vpop.permute.xlu1 %2622  ;;  %6014 = vmatmul.mubr.msk.bf16.vlgmr.msra.gmra.mrb[48].mxu1 %vm414_vm3, %v2178_v4  ;;  %3413 = vperm.xlu1 %6390, %v7951_v12  }
 0x1bb   :  { %6017 = vmatprep.mubr.msk.bf16.mxu1 %vm414_vm3, %v2179_v8  ;;  %6038 = vmatpush3.bf16.msra.mxu1 %v7168_v10  ;;  %vm2641_vm5 = vcmp.eq.s32.totalorder %v2623_v26, %v6818_v51 }
 0x1bc   :  { %6039 = vmatprep.subr.bf16.mxu1 %v7170_v24  ;;  %6061 = vmatprep.mubr.msk.bf16.mxu0 %vm414_vm3, %v2663_v14  ;;  %v5383_v33 = vsel %vm2641_vm5, 1.0, %v9432_v17  ;;  %v8061_v14 = vpop.permute.xlu0 %2799 }
 0x1bd   :  { %4227 = vperm.xlu0 %6405, %v7244_v34   ;;  %vm2808_vm11 = vcmp.eq.s32.totalorder %v8061_v14, %v6818_v51 }
 0x1be   :  { %v2626_v61 = vpop.permute.xlu1 %2625  ;;  %6391 = vset.pattern.permute.xlu1 %v9477_v30 }
 0x1bf   :  { %vm2642_vm6 = vcmp.eq.s32.totalorder %v2626_v61, %v6818_v51  ;;  %6040 = vmatpush3.bf16.msra.mxu1 %v7170_v24  ;;  %3568 = vperm.xlu1 %6391, %v7398_v5  }
 0x1c0   :  { %v5384_v46 = vsel %vm2642_vm6, 1.0, %v9432_v17  ;;  %6041 = vmatprep.subr.bf16.mxu1 %v7175_v57  ;;  %v2944_v61 = vpop.permute.xlu0 %2943 }
 0x1c1   :  { %v2664_v34 = vpack.c.bf16 %v5384_v46, %v5383_v33  ;;  %6409 = vset.pattern.permute.xlu0 %v6541_v41  ;;  %vm2964_vm6 = vcmp.eq.s32.totalorder %v2944_v61, %v6818_v51 }
 0x1c2   :  { %6018 = vmatmul.mubr.msk.bf16.gmra.mrb[52].mxu1 %vm414_vm3, %v2180_v3  ;;  %4537 = vperm.xlu0 %6409, %v7942_v1   ;;  %v5406_v46 = vsel %vm2964_vm6, 1.0, %v9432_v17 }
 0x1c3   :  { %v2470_v16 = vpop.permute.xlu1 %2469  ;;  %6062 = vmatmul.mubr.msk.bf16.vlgmr.msra.gmra.mrb[64].mxu0 %vm414_vm3, %v2664_v34  ;;  %6042 = vmatpush3.bf16.msra.mxu1 %v7175_v57 }
 0x1c4   :  { %6045 = vmatprep.mubr.msk.bf16.mxu1 %vm414_vm3, %v2501_v38  ;;  %vm2482_vm10 = vcmp.eq.s32.totalorder %v2470_v16, %v6818_v51  ;;  %3574 = vperm.xlu1 %6391, %v7951_v12   ;;  %v2956_v3 = vpop.permute.xlu0 %2955 }
 0x1c5   :  { %6043 = vmatprep.subr.bf16.mxu1 %v7177_v62  ;;  %v5374_v0 = vsel %vm2482_vm10, 1.0, %v9432_v17  ;;  %6086 = vmatpush3.bf16.msra.mxu0 %v7168_v10  ;;  %vm2805_vm10 = vcmp.eq.s32.totalorder %v8043_v6, %v6818_v51 }
 0x1c6   :  { %6087 = vmatprep.subr.bf16.mxu0 %v7170_v24  ;;  %v2503_v32 = vpack.c.bf16 %v5374_v0, %v5373_v54  ;;  %6410 = vset.pattern.permute.xlu0 %v6542_v28  ;;  %v8103_v54 = vld [vmem:[%s9339_s1] sm:$0xff] }
 0x1c7   :  { %v2473_v50 = vpop.permute.xlu1 %2472  ;;  %6044 = vmatpush3.bf16.msra.mxu1 %v7177_v62  ;;  %4373 = vperm.xlu0 %6410, %v7398_v5  }
 0x1c8   :  { %3577 = vperm.xlu1 %6391, %v7437_v45   ;;  %6069 = vmatprep.subr.bf16.mxu1 %v7168_v10  ;;  %vm2483_vm12 = vcmp.eq.s32.totalorder %v2473_v50, %v6818_v51  ;;  %v8094_v16 = vpop.permute.xlu0 %3085 }
 0x1c9   :  { %6088 = vmatpush3.bf16.msra.mxu0 %v7170_v24  ;;  %v5375_v13 = vsel %vm2483_vm12, 1.0, %v9432_v17 }
 0x1ca   :  { %6046 = vmatmul.mubr.msk.bf16.vlgmr.msra.gmra.mrb[56].mxu1 %vm414_vm3, %v2502_v35  ;;  %6089 = vmatprep.subr.bf16.mxu0 %v7175_v57  ;;  %v2504_v63 = vpack.c.bf16 %v5376_v9, %v5375_v13  ;;  %v8129_v13 = vld [vmem:[%s9339_s1 + $0x18] sm:$0xff] }
 0x1cb   :  { %6070 = vmatpush3.bf16.msra.mxu1 %v7168_v10  ;;  %6049 = vmatprep.mubr.msk.bf16.mxu1 %vm414_vm3, %v2503_v32  ;;  %v5397_v32 = vsel %vm2805_vm10, 1.0, %v9432_v17 }
 0x1cc   :  { %v2629_v47 = vpop.permute.xlu1 %2628  ;;  %6392 = vset.pattern.permute.xlu1 %v9476_v37  ;;  %6071 = vmatprep.subr.bf16.mxu1 %v7170_v24  ;;  %v8038_v37 = vld [vmem:[%s9339_s1 + $0x30] sm:$0xff]  ;;  %v8109_v49 = vpop.permute.xlu0 %3094 }
 0x1cd   :  { %vm2643_vm14 = vcmp.eq.s32.totalorder %v2629_v47, %v6818_v51  ;;  %3422 = vperm.xlu1 %6392, %v8030_v36   ;;  %6090 = vmatpush3.bf16.msra.mxu0 %v7175_v57 }
 0x1ce   :  { %v5385_v44 = vsel %vm2643_vm14, 1.0, %v9432_v17  ;;  %6091 = vmatprep.subr.bf16.mxu0 %v7177_v62  ;;  %4382 = vperm.xlu0 %6410, %v7437_v45   ;;  %v5393_v45 = vsel %vm2801_vm1, 1.0, %v9432_v17  ;;  %vm2968_vm14 = vcmp.eq.s32.totalorder %v2956_v3, %v6818_v51 }
 0x1cf   :  { %v2665_v15 = vpack.c.bf16 %v5386_v48, %v5385_v44  ;;  %6072 = vmatpush3.bf16.msra.mxu1 %v7170_v24  ;;  %v5400_v48 = vsel %vm2808_vm11, 1.0, %v9432_v17 }
 0x1d0   :  { %v2635_v7 = vpop.permute.xlu1 %2634  ;;  %6073 = vmatprep.subr.bf16.mxu1 %v7175_v57  ;;  %v8124_v9 = vpop.permute.xlu0 %3097 }
 0x1d1   :  { %6065 = vmatprep.mubr.msk.bf16.mxu0 %vm414_vm3, %v2665_v15  ;;  %3425 = vperm.xlu1 %6392, %v8038_v37   ;;  %vm2645_vm15 = vcmp.eq.s32.totalorder %v2635_v7, %v6818_v51  ;;  %vm3112_vm11 = vcmp.eq.s32.totalorder %v8124_v9, %v6818_v51 }
 0x1d2   :  { %6092 = vmatpush3.bf16.msra.mxu0 %v7177_v62  ;;  %6050 = vmatmul.mubr.msk.bf16.gmra.mrb[60].mxu1 %vm414_vm3, %v2504_v63  ;;  %v5387_v25 = vsel %vm2645_vm15, 1.0, %v9432_v17 }
 0x1d3   :  { %6117 = vmatprep.subr.bf16.mxu0 %v7168_v10  ;;  %6074 = vmatpush3.bf16.msra.mxu1 %v7175_v57 }
 0x1d4   :  { %v2638_v5 = vpop.permute.xlu1 %2637  ;;  %6075 = vmatprep.subr.bf16.mxu1 %v7177_v62  ;;  %4385 = vperm.xlu0 %6410, %v7496_v40   ;;  %v8142_v7 = vpop.permute.xlu0 %3106 }
 0x1d5   :  { %vm2646_vm0 = vcmp.eq.s32.totalorder %v2638_v5, %v6818_v51  ;;  %6394 = vset.pattern.permute.xlu1 %v9477_v30  ;;  %v5410_v5 = vsel %vm2968_vm14, 1.0, %v9432_v17 }
 0x1d6   :  { %v5388_v4 = vsel %vm2646_vm0, 1.0, %v9432_v17  ;;  %3580 = vperm.xlu1 %6394, %v7496_v40   ;;  %v5396_v40 = vsel %vm2804_vm2, 1.0, %v9432_v17  ;;  %vm3108_vm2 = vcmp.eq.s32.totalorder %v8094_v16, %v6818_v51 }
 0x1d7   :  { %v2666_v8 = vpack.c.bf16 %v5388_v4, %v5387_v25  ;;  %6076 = vmatpush3.bf16.msra.mxu1 %v7177_v62  ;;  %v5417_v61 = vsel %vm3108_vm2, 1.0, %v9432_v17 }
 0x1d8   :  { %6101 = vmatprep.subr.bf16.mxu1 %v7168_v10  ;;  %4394 = vperm.xlu0 %6410, %v7552_v42   ;;  %v3250_v14 = vpop.permute.xlu0 %3249 }
 0x1d9   :  { %v2782_v26 = vpop.permute.xlu1 %2781  ;;  %6066 = vmatmul.mubr.msk.bf16.gmra.mrb[68].mxu0 %vm414_vm3, %v2666_v8  ;;  %v8158_v8 = vld [vmem:[%s9339_s1 + $0x20] sm:$0xff] }
 0x1da   :  { %vm2802_vm4 = vcmp.eq.s32.totalorder %v2782_v26, %v6818_v51  ;;  %3586 = vperm.xlu1 %6394, %v8038_v37  }
 0x1db   :  { %v5394_v52 = vsel %vm2802_vm4, 1.0, %v9432_v17  ;;  %vm3111_vm4 = vcmp.eq.s32.totalorder %v8109_v49, %v6818_v51 }
 0x1dc   :  { %v2825_v29 = vpack.c.bf16 %v5394_v52, %v5393_v45  ;;  %6413 = vset.pattern.permute.xlu0 %v6541_v41  ;;  %v8162_v26 = vpop.permute.xlu0 %3261 }
 0x1dd   :  { %v2785_v56 = vpop.permute.xlu1 %2784  ;;  %4549 = vperm.xlu0 %6413, %v8030_v36  }
 0x1de   :  { %vm2803_vm5 = vcmp.eq.s32.totalorder %v2785_v56, %v6818_v51  ;;  %6077 = vmatprep.mubr.msk.bf16.mxu1 %vm414_vm3, %v2825_v29  ;;  %3589 = vperm.xlu1 %6394, %v7552_v42  }
 0x1df   :  { %v5395_v22 = vsel %vm2803_vm5, 1.0, %v9432_v17 }
 0x1e0   :  { %v2826_v30 = vpack.c.bf16 %v5396_v40, %v5395_v22  ;;  %v8171_v56 = vpop.permute.xlu0 %3407 }
 0x1e2   :  { %v2941_v33 = vpop.permute.xlu1 %2940  ;;  %6078 = vmatmul.mubr.msk.bf16.vlgmr.msra.gmra.mrb[64].mxu1 %vm414_vm3, %v2826_v30  ;;  %6396 = vset.pattern.permute.xlu1 %v6537_v39 }
 0x1e3   :  { %vm2963_vm7 = vcmp.eq.s32.totalorder %v2941_v33, %v6818_v51  ;;  %6102 = vmatpush3.bf16.msra.mxu1 %v7168_v10  ;;  %3732 = vperm.xlu1 %6396, %v7942_v1   ;;  %v5420_v33 = vsel %vm3111_vm4, 1.0, %v9432_v17 }
 0x1e4   :  { %v5405_v31 = vsel %vm2963_vm7, 1.0, %v9432_v17  ;;  %6103 = vmatprep.subr.bf16.mxu1 %v7170_v24  ;;  %v8182_v3 = vpop.permute.xlu0 %3416  ;;  %vm3270_vm7 = vcmp.eq.s32.totalorder %v3250_v14, %v6818_v51 }
 0x1e5   :  { %v2987_v34 = vpack.c.bf16 %v5406_v46, %v5405_v31 }
 0x1e7   :  { %6104 = vmatpush3.bf16.msra.mxu1 %v7170_v24  ;;  %6093 = vmatprep.mubr.msk.bf16.mxu0 %vm414_vm3, %v2987_v34  ;;  %v2947_v38 = vpop.permute.xlu1 %2946 }
 0x1e8   :  { %3735 = vperm.xlu1 %6396, %v7951_v12   ;;  %6105 = vmatprep.subr.bf16.mxu1 %v7175_v57  ;;  %vm2965_vm8 = vcmp.eq.s32.totalorder %v2947_v38, %v6818_v51  ;;  %v5430_v38 = vsel %vm3270_vm7, 1.0, %v9432_v17  ;;  %v8193_v16 = vpop.permute.xlu0 %3419 }
 0x1e9   :  { %v5407_v0 = vsel %vm2965_vm8, 1.0, %v9432_v17 }
 0x1eb   :  { %6106 = vmatpush3.bf16.msra.mxu1 %v7175_v57  ;;  %v2950_v21 = vpop.permute.xlu1 %2949 }
 0x1ec   :  { %6397 = vset.pattern.permute.xlu1 %v6538_v55  ;;  %6107 = vmatprep.subr.bf16.mxu1 %v7177_v62  ;;  %vm2966_vm9 = vcmp.eq.s32.totalorder %v2950_v21, %v6818_v51  ;;  %v8203_v49 = vpop.permute.xlu0 %3428 }
 0x1ed   :  { %3890 = vperm.xlu1 %6397, %v8103_v54   ;;  %v5408_v58 = vsel %vm2966_vm9, 1.0, %v9432_v17 }
 0x1ee   :  { %v2988_v50 = vpack.c.bf16 %v5408_v58, %v5407_v0 }
 0x1ef   :  { %6108 = vmatpush3.bf16.msra.mxu1 %v7177_v62 }
 0x1f0   :  { %6133 = vmatprep.subr.bf16.mxu1 %v7168_v10  ;;  %6094 = vmatmul.mubr.msk.bf16.vlgmr.msra.gmra.mrb[72].mxu0 %vm414_vm3, %v2988_v50 }
 0x1f1   :  { %3896 = vperm.xlu1 %6397, %v7951_v12   ;;  %v2794_v35 = vpop.permute.xlu1 %2793  ;;  %6118 = vmatpush3.bf16.msra.mxu0 %v7168_v10 }
 0x1f2   :  { %vm2806_vm12 = vcmp.eq.s32.totalorder %v2794_v35, %v6818_v51  ;;  %6119 = vmatprep.subr.bf16.mxu0 %v7170_v24 }
 0x1f3   :  { %v5398_v20 = vsel %vm2806_vm12, 1.0, %v9432_v17  ;;  %vm3115_vm12 = vcmp.eq.s32.totalorder %v8142_v7, %v6818_v51 }
 0x1f4   :  { %v2827_v47 = vpack.c.bf16 %v5398_v20, %v5397_v32 }
 0x1f5   :  { %3899 = vperm.xlu1 %6397, %v8129_v13   ;;  %v2797_v44 = vpop.permute.xlu1 %2796  ;;  %6120 = vmatpush3.bf16.msra.mxu0 %v7170_v24 }
 0x1f6   :  { %vm2807_vm13 = vcmp.eq.s32.totalorder %v2797_v44, %v6818_v51  ;;  %6081 = vmatprep.mubr.msk.bf16.mxu1 %vm414_vm3, %v2827_v47  ;;  %6121 = vmatprep.subr.bf16.mxu0 %v7175_v57  ;;  %v5421_v47 = vsel %vm3112_vm11, 1.0, %v9432_v17  ;;  %v8216_v44 = vpop.permute.xlu0 %3571 }
 0x1f7   :  { %v5399_v63 = vsel %vm2807_vm13, 1.0, %v9432_v17 }
 0x1f8   :  { %v2828_v15 = vpack.c.bf16 %v5400_v48, %v5399_v63 }
 0x1f9   :  { %6398 = vset.pattern.permute.xlu1 %v6537_v39  ;;  %6122 = vmatpush3.bf16.msra.mxu0 %v7175_v57 }
 0x1fa   :  { %3744 = vperm.xlu1 %6398, %v8030_v36   ;;  %v2953_v6 = vpop.permute.xlu1 %2952  ;;  %6082 = vmatmul.mubr.msk.bf16.gmra.mrb[68].mxu1 %vm414_vm3, %v2828_v15  ;;  %v5424_v15 = vsel %vm3115_vm12, 1.0, %v9432_v17 }
 0x1fb   :  { %6123 = vmatprep.subr.bf16.mxu0 %v7177_v62  ;;  %vm2967_vm15 = vcmp.eq.s32.totalorder %v2953_v6, %v6818_v51 }
 0x1fc   :  { %v5409_v25 = vsel %vm2967_vm15, 1.0, %v9432_v17  ;;  %vm3274_vm15 = vcmp.eq.s32.totalorder %v8162_v26, %v6818_v51 }
 0x1fd   :  { %v2989_v39 = vpack.c.bf16 %v5410_v5, %v5409_v25  ;;  %6124 = vmatpush3.bf16.msra.mxu0 %v7177_v62  ;;  %v8226_v5 = vpop.permute.xlu0 %3583  ;;  %v5434_v14 = vsel %vm3274_vm15, 1.0, %v9432_v17 }
 0x1fe   :  { %3747 = vperm.xlu1 %6398, %v8038_v37   ;;  %v2959_v4 = vpop.permute.xlu1 %2958  ;;  %6149 = vmatprep.subr.bf16.mxu0 %v7168_v10 }
 0x1ff   :  { %6097 = vmatprep.mubr.msk.bf16.mxu0 %vm414_vm3, %v2989_v39  ;;  %vm2969_vm0 = vcmp.eq.s32.totalorder %v2959_v4, %v6818_v51 }
 0x200   :  { %v5411_v52 = vsel %vm2969_vm0, 1.0, %v9432_v17 }
 0x201   :  { %v8237_v4 = vpop.permute.xlu0 %3729 }
 0x202   :  { %6400 = vset.pattern.permute.xlu1 %v6538_v55  ;;  %v2962_v45 = vpop.permute.xlu1 %2961 }
 0x203   :  { %3902 = vperm.xlu1 %6400, %v8158_v8   ;;  %vm2970_vm1 = vcmp.eq.s32.totalorder %v2962_v45, %v6818_v51 }
 0x204   :  { %v5412_v55 = vsel %vm2970_vm1, 1.0, %v9432_v17  ;;  %vm496_vm1 = vcmask 64512  }
 0x205   :  { %v2990_v29 = vpack.c.bf16 %v5412_v55, %v5411_v52 }
 0x207   :  { %3908 = vperm.xlu1 %6400, %v8038_v37   ;;  %v3089_v40 = vpop.permute.xlu1 %3088  ;;  %6098 = vmatmul.mubr.msk.bf16.gmra.mrb[76].mxu0 %vm414_vm3, %v2990_v29 }
 0x208   :  { %vm3109_vm5 = vcmp.eq.s32.totalorder %v3089_v40, %v6818_v51 }
 0x209   :  { %v5418_v22 = vsel %vm3109_vm5, 1.0, %v9432_v17  ;;  %vm3430_vm5 = vcmp.eq.s32.totalorder %v8171_v56, %v6818_v51  ;;  %v8288_v56 = vld [vmem:[%s9339_s1 + $0x38] sm:$0xff]  ;;  %s6544_s1 = smov 8  }
 0x20a   :  { %v3132_v30 = vpack.c.bf16 %v5418_v22, %v5417_v61 }
 0x20b   :  { %3911 = vperm.xlu1 %6400, %v7552_v42   ;;  %v3092_v46 = vpop.permute.xlu1 %3091 }
 0x20c   :  { %vm3110_vm6 = vcmp.eq.s32.totalorder %v3092_v46, %v6818_v51  ;;  %6109 = vmatprep.mubr.msk.bf16.mxu1 %vm414_vm3, %v3132_v30 }
 0x20d   :  { %v5419_v31 = vsel %vm3110_vm6, 1.0, %v9432_v17  ;;  %vm3433_vm6 = vcmp.eq.s32.totalorder %v8182_v3, %v6818_v51 }
 0x20e   :  { %v3133_v34 = vpack.c.bf16 %v5420_v33, %v5419_v31  ;;  %v5444_v3 = vsel %vm3433_vm6, 1.0, %v9432_v17  ;;  %vm3752_vm6 = vcmp.eq.s32.totalorder %v8237_v4, %v6818_v51 }
 0x20f   :  { %6402 = vset.pattern.permute.xlu1 %v6539_v60 }
 0x210   :  { %4054 = vperm.xlu1 %6402, %v7942_v1   ;;  %6110 = vmatmul.mubr.msk.bf16.vlgmr.msra.gmra.mrb[72].mxu1 %vm414_vm3, %v3133_v34 }
 0x211   :  { %6134 = vmatpush3.bf16.msra.mxu1 %v7168_v10 }
 0x212   :  { %v3247_v42 = vpop.permute.xlu1 %3246  ;;  %6135 = vmatprep.subr.bf16.mxu1 %v7170_v24 }
 0x213   :  { %vm3269_vm8 = vcmp.eq.s32.totalorder %v3247_v42, %v6818_v51 }
 0x214   :  { %4057 = vperm.xlu1 %6402, %v7951_v12   ;;  %v5429_v21 = vsel %vm3269_vm8, 1.0, %v9432_v17 }
 0x215   :  { %v3293_v0 = vpack.c.bf16 %v5430_v38, %v5429_v21  ;;  %6136 = vmatpush3.bf16.msra.mxu1 %v7170_v24  ;;  %v8266_v21 = vpop.permute.xlu0 %3738 }
 0x216   :  { %v3253_v58 = vpop.permute.xlu1 %3252  ;;  %6137 = vmatprep.subr.bf16.mxu1 %v7175_v57 }
 0x217   :  { %6125 = vmatprep.mubr.msk.bf16.mxu0 %vm414_vm3, %v3293_v0  ;;  %vm3271_vm9 = vcmp.eq.s32.totalorder %v3253_v58, %v6818_v51 }
 0x218   :  { %6403 = vset.pattern.permute.xlu1 %v6540_v59  ;;  %v5431_v32 = vsel %vm3271_vm9, 1.0, %v9432_v17  ;;  %vm3592_vm9 = vcmp.eq.s32.totalorder %v8216_v44, %v6818_v51 }
 0x219   :  { %4212 = vperm.xlu1 %6403, %v8103_v54   ;;  %6138 = vmatpush3.bf16.msra.mxu1 %v7175_v57 }
 0x21a   :  { %v3256_v50 = vpop.permute.xlu1 %3255  ;;  %6139 = vmatprep.subr.bf16.mxu1 %v7177_v62 }
 0x21b   :  { %vm3272_vm10 = vcmp.eq.s32.totalorder %v3256_v50, %v6818_v51 }
 0x21c   :  { %v5432_v35 = vsel %vm3272_vm10, 1.0, %v9432_v17 }
 0x21d   :  { %4218 = vperm.xlu1 %6403, %v7951_v12   ;;  %v3294_v20 = vpack.c.bf16 %v5432_v35, %v5431_v32  ;;  %6140 = vmatpush3.bf16.msra.mxu1 %v7177_v62 }
 0x21e   :  { %6165 = vmatprep.subr.bf16.mxu1 %v7168_v10 }
 0x21f   :  { %v3101_v48 = vpop.permute.xlu1 %3100  ;;  %6126 = vmatmul.mubr.msk.bf16.vlgmr.msra.gmra.mrb[80].mxu0 %vm414_vm3, %v3294_v20 }
 0x220   :  { %vm3113_vm13 = vcmp.eq.s32.totalorder %v3101_v48, %v6818_v51  ;;  %6150 = vmatpush3.bf16.msra.mxu0 %v7168_v10 }
 0x221   :  { %4221 = vperm.xlu1 %6403, %v8129_v13   ;;  %v5422_v9 = vsel %vm3113_vm13, 1.0, %v9432_v17  ;;  %6151 = vmatprep.subr.bf16.mxu0 %v7170_v24  ;;  %vm3434_vm13 = vcmp.eq.s32.totalorder %v8193_v16, %v6818_v51 }
 0x222   :  { %v3134_v63 = vpack.c.bf16 %v5422_v9, %v5421_v47  ;;  %v5445_v16 = vsel %vm3434_vm13, 1.0, %v9432_v17 }
 0x223   :  { %v3104_v6 = vpop.permute.xlu1 %3103 }
 0x224   :  { %vm3114_vm14 = vcmp.eq.s32.totalorder %v3104_v6, %v6818_v51  ;;  %6152 = vmatpush3.bf16.msra.mxu0 %v7170_v24  ;;  %6113 = vmatprep.mubr.msk.bf16.mxu1 %vm414_vm3, %v3134_v63 }
 0x225   :  { %6404 = vset.pattern.permute.xlu1 %v6539_v60  ;;  %v5423_v7 = vsel %vm3114_vm14, 1.0, %v9432_v17  ;;  %6153 = vmatprep.subr.bf16.mxu0 %v7175_v57  ;;  %vm3437_vm14 = vcmp.eq.s32.totalorder %v8203_v49, %v6818_v51 }
 0x226   :  { %4066 = vperm.xlu1 %6404, %v8030_v36   ;;  %v3135_v25 = vpack.c.bf16 %v5424_v15, %v5423_v7 }
 0x227   :  { %v5839_v39 = vpop.f32.mrb[0].mxu1 }
 0x228   :  { %6154 = vmatpush3.bf16.msra.mxu0 %v7175_v57  ;;  %v3259_v60 = vpop.permute.xlu1 %3258  ;;  %6114 = vmatmul.mubr.msk.bf16.gmra.mrb[76].mxu1 %vm414_vm3, %v3135_v25  ;;  %v8242_v45 = vpop.f32.mrb[16].mxu0 }
 0x229   :  { %vm3273_vm0 = vcmp.eq.s32.totalorder %v3259_v60, %v6818_v51  ;;  %6155 = vmatprep.subr.bf16.mxu0 %v7177_v62  ;;  %v461_v26 = vpop.f32.mrb[1].mxu1  ;;  %v8247_v52 = vpop.f32.mrb[17].mxu0 }
 0x22a   :  { %4069 = vperm.xlu1 %6404, %v8038_v37   ;;  %v5433_v55 = vsel %vm3273_vm0, 1.0, %v9432_v17  ;;  %v5840_v29 = vpop.f32.mrb[2].mxu1  ;;  %v8250_v61 = vpop.f32.mrb[18].mxu0 }
 0x22b   :  { %v3295_v40 = vpack.c.bf16 %v5434_v14, %v5433_v55  ;;  %v493_v22 = vpack.c.bf16 %v5840_v29, %v5839_v39  ;;  %v801_v30 = vpack.c.bf16 %v8250_v61, %v8242_v45  ;;  %v464_v33 = vpop.f32.mrb[3].mxu1  ;;  %v8254_v46 = vpop.f32.mrb[19].mxu0  ;;  %v5441_v39 = vsel %vm3430_vm5, 1.0, %v9432_v17 }
 0x22c   :  { %6156 = vmatpush3.bf16.msra.mxu0 %v7177_v62  ;;  %v3265_v31 = vpop.permute.xlu1 %3264  ;;  %v492_v34 = vpack.c.bf16 %v464_v33, %v461_v26  ;;  %v800_v42 = vpack.c.bf16 %v8254_v46, %v8247_v52  ;;  %v8295_v29 = vpop.permute.xlu0 %3741 }
 0x22d   :  { %6181 = vmatprep.subr.bf16.mxu0 %v7168_v10  ;;  %498 = vst.msk [vmem:[#allocation2 + $0x10] sm:$0xff] %vm496_vm1, %v493_v22  ;;  %6129 = vmatprep.mubr.msk.bf16.mxu0 %vm414_vm3, %v3295_v40  ;;  %vm3275_vm2 = vcmp.eq.s32.totalorder %v3265_v31, %v6818_v51 }
 0x22e   :  { %6406 = vset.pattern.permute.xlu1 %v6540_v59  ;;  %497 = vst.msk [vmem:[#allocation2] sm:$0xff] %vm496_vm1, %v492_v34  ;;  %v5435_v32 = vsel %vm3275_vm2, 1.0, %v9432_v17  ;;  %vm3596_vm2 = vcmp.eq.s32.totalorder %v8226_v5, %v6818_v51 }
 0x22f   :  { %4224 = vperm.xlu1 %6406, %v8158_v8   ;;  %v5843_v38 = vpop.f32.mrb[4].mxu1  ;;  %v5458_v5 = vsel %vm3596_vm2, 1.0, %v9432_v17 }
 0x230   :  { %v3268_v0 = vpop.permute.xlu1 %3267  ;;  %v8268_v58 = vpop.f32.mrb[20].mxu0 }
 0x231   :  { %vm3276_vm4 = vcmp.eq.s32.totalorder %v3268_v0, %v6818_v51  ;;  %v477_v59 = vpop.f32.mrb[5].mxu1  ;;  %v785_v50 = vpop.f32.mrb[21].mxu0 }
 0x232   :  { %v5436_v35 = vsel %vm3276_vm4, 1.0, %v9432_v17  ;;  %v5844_v20 = vpop.f32.mrb[6].mxu1  ;;  %v8276_v47 = vpop.f32.mrb[22].mxu0 }
 0x233   :  { %4230 = vperm.xlu1 %6406, %v8038_v37   ;;  %v3296_v48 = vpack.c.bf16 %v5436_v35, %v5435_v32  ;;  %v495_v9 = vpack.c.bf16 %v5844_v20, %v5843_v38  ;;  %v803_v63 = vpack.c.bf16 %v8276_v47, %v8268_v58  ;;  %v480_v15 = vpop.f32.mrb[7].mxu1  ;;  %v788_v6 = vpop.f32.mrb[23].mxu0 }
 0x234   :  { %v494_v7 = vpack.c.bf16 %v480_v15, %v477_v59  ;;  %v802_v25 = vpack.c.bf16 %v788_v6, %v785_v50  ;;  %v8323_v44 = vpop.permute.xlu0 %3750 }
 0x235   :  { %v3411_v60 = vpop.permute.xlu1 %3410  ;;  %6130 = vmatmul.mubr.msk.bf16.gmra.mrb[84].mxu0 %vm414_vm3, %v3296_v48  ;;  %500 = vst.msk [vmem:[#allocation2 + $0x30] sm:$0xff] %vm496_vm1, %v495_v9 }
 0x236   :  { %vm3431_vm7 = vcmp.eq.s32.totalorder %v3411_v60, %v6818_v51  ;;  %812 = vrot.lane.b32.xlu0 %v802_v25, %s6543_s5  ;;  %499 = vst.msk [vmem:[#allocation2 + $0x20] sm:$0xff] %vm496_vm1, %v494_v7 }
 0x237   :  { %4233 = vperm.xlu1 %6406, %v8288_v56   ;;  %v5442_v14 = vsel %vm3431_vm7, 1.0, %v9432_v17 }
 0x238   :  { %v3454_v26 = vpack.c.bf16 %v5442_v14, %v5441_v39  ;;  %v5855_v55 = vpop.f32.mrb[8].mxu1 }
 0x239   :  { %v3414_v40 = vpop.permute.xlu1 %3413  ;;  %v8298_v22 = vpop.f32.mrb[24].mxu0 }
 0x23a   :  { %vm3432_vm8 = vcmp.eq.s32.totalorder %v3414_v40, %v6818_v51  ;;  %6141 = vmatprep.mubr.msk.bf16.mxu1 %vm414_vm3, %v3454_v26  ;;  %v607_v33 = vpop.f32.mrb[9].mxu1  ;;  %v8303_v31 = vpop.f32.mrb[25].mxu0 }
 0x23b   :  { %6407 = vset.pattern.permute.xlu1 %v6542_v28  ;;  %v5443_v34 = vsel %vm3432_vm8, 1.0, %v9432_v17  ;;  %v5856_v38 = vpop.f32.mrb[10].mxu1  ;;  %v8309_v0 = vpop.f32.mrb[26].mxu0  ;;  %vm3755_vm8 = vcmp.eq.s32.totalorder %v8266_v21, %v6818_v51 }
 0x23c   :  { %4376 = vperm.xlu1 %6407, %v7942_v1   ;;  %v3455_v59 = vpack.c.bf16 %v5444_v3, %v5443_v34  ;;  %v639_v50 = vpack.c.bf16 %v5856_v38, %v5855_v55  ;;  %v1125_v32 = vpack.c.bf16 %v8309_v0, %v8298_v22  ;;  %v610_v35 = vpop.f32.mrb[11].mxu1  ;;  %v8313_v20 = vpop.f32.mrb[27].mxu0  ;;  %v5454_v1 = vsel %vm3592_vm9, 1.0, %v9432_v17 }
 0x23d   :  { %v638_v48 = vpack.c.bf16 %v610_v35, %v607_v33  ;;  %v1124_v9 = vpack.c.bf16 %v8313_v20, %v8303_v31  ;;  %v8345_v35 = vpop.permute.xlu0 %3893  ;;  %v5468_v21 = vsel %vm3755_vm8, 1.0, %v9432_v17 }
 0x23e   :  { %v3569_v15 = vpop.permute.xlu1 %3568  ;;  %6142 = vmatmul.mubr.msk.bf16.vlgmr.msra.gmra.mrb[80].mxu1 %vm414_vm3, %v3455_v59  ;;  %648 = vrot.lane.b32.xlu0 %v639_v50, %s6544_s1 }
 0x23f   :  { %vm3591_vm10 = vcmp.eq.s32.totalorder %v3569_v15, %v6818_v51  ;;  %6166 = vmatpush3.bf16.msra.mxu1 %v7168_v10 }
 0x240   :  { %4379 = vperm.xlu1 %6407, %v7951_v12   ;;  %v5453_v6 = vsel %vm3591_vm10, 1.0, %v9432_v17  ;;  %6167 = vmatprep.subr.bf16.mxu1 %v7170_v24  ;;  %v5859_v7 = vpop.f32.mrb[12].mxu1 }
 0x241   :  { %v3615_v25 = vpack.c.bf16 %v5454_v1, %v5453_v6  ;;  %v8327_v39 = vpop.f32.mrb[28].mxu0  ;;  %v8329_v60 = vpop.f32.mrb[13].mxu1 }
 0x242   :  { %v1109_v14 = vpop.f32.mrb[29].mxu0  ;;  %646 = vrot.lane.b32.xlu0 %v638_v48, %s6544_s1  ;;  %v5860_v26 = vpop.f32.mrb[14].mxu1 }
 0x243   :  { %v3575_v55 = vpop.permute.xlu1 %3574  ;;  %6168 = vmatpush3.bf16.msra.mxu1 %v7170_v24  ;;  %v641_v3 = vpack.c.bf16 %v5860_v26, %v5859_v7  ;;  %v8334_v40 = vpop.f32.mrb[30].mxu0  ;;  %6157 = vmatprep.mubr.msk.bf16.mxu0 %vm414_vm3, %v3615_v25 }
 0x244   :  { %6408 = vset.pattern.permute.xlu1 %v6541_v41  ;;  %v8340_v34 = vpop.f32.mrb[15].mxu1  ;;  %v1112_v38 = vpop.f32.mrb[31].mxu0  ;;  %6169 = vmatprep.subr.bf16.mxu1 %v7175_v57  ;;  %vm3593_vm11 = vcmp.eq.s32.totalorder %v3575_v55, %v6818_v51 }
 0x245   :  { %4534 = vperm.xlu1 %6408, %v8103_v54   ;;  %v1126_v50 = vpack.c.bf16 %v1112_v38, %v1109_v14  ;;  %v5455_v48 = vsel %vm3593_vm11, 1.0, %v9432_v17  ;;  %v8357_v6 = vpop.permute.xlu0 %3905  ;;  %vm3914_vm11 = vcmp.eq.s32.totalorder %v8345_v35, %v6818_v51 }
 0x246   :  { %652 = vrot.lane.b32.xlu0 %v641_v3, %s6544_s1 }
 0x247   :  { %v3578_v54 = vpop.permute.xlu1 %3577  ;;  %6170 = vmatpush3.bf16.msra.mxu1 %v7175_v57 }
 0x248   :  { %vm3594_vm12 = vcmp.eq.s32.totalorder %v3578_v54, %v6818_v51  ;;  %6171 = vmatprep.subr.bf16.mxu1 %v7177_v62 }
 0x249   :  { %4540 = vperm.xlu1 %6408, %v7951_v12   ;;  %v5456_v15 = vsel %vm3594_vm12, 1.0, %v9432_v17  ;;  %v5887_v1 = vpop.f32.mrb[16].mxu1 }
 0x24a   :  { %v3616_v7 = vpack.c.bf16 %v5456_v15, %v5455_v48  ;;  %v5935_v25 = vpop.f32.mrb[32].mxu0  ;;  %1136 = vrot.lane.b32.xlu0 %v1126_v50, %s6545_s24  ;;  %v931_v14 = vpop.f32.mrb[17].mxu1 }
 0x24b   :  { %6172 = vmatpush3.bf16.msra.mxu1 %v7177_v62  ;;  %v8361_v12 = vpop.f32.mrb[33].mxu0  ;;  %v5888_v26 = vpop.f32.mrb[18].mxu1 }
 0x24c   :  { %v3423_v55 = vpop.permute.xlu1 %3422  ;;  %6158 = vmatmul.mubr.msk.bf16.vlgmr.msra.gmra.mrb[88].mxu0 %vm414_vm3, %v3616_v7  ;;  %v963_v3 = vpack.c.bf16 %v5888_v26, %v5887_v1  ;;  %v5936_v38 = vpop.f32.mrb[34].mxu0  ;;  %6197 = vmatprep.subr.bf16.mxu1 %v7168_v10  ;;  %v5448_v7 = vsel %vm3437_vm14, 1.0, %v9432_v17 }
 0x24d   :  { %4543 = vperm.xlu1 %6408, %v8129_v13   ;;  %vm3435_vm15 = vcmp.eq.s32.totalorder %v3423_v55, %v6818_v51  ;;  %6182 = vmatpush3.bf16.msra.mxu0 %v7168_v10  ;;  %v1449_v50 = vpack.c.bf16 %v5936_v38, %v5935_v25  ;;  %v934_v54 = vpop.f32.mrb[19].mxu1  ;;  %v1420_v48 = vpop.f32.mrb[35].mxu0 }
 0x24e   :  { %v5446_v15 = vsel %vm3435_vm15, 1.0, %v9432_v17  ;;  %6183 = vmatprep.subr.bf16.mxu0 %v7170_v24  ;;  %v962_v13 = vpack.c.bf16 %v934_v54, %v931_v14  ;;  %v1448_v1 = vpack.c.bf16 %v1420_v48, %v8361_v12  ;;  %972 = vrot.lane.b32.xlu0 %v963_v3, %s6546_s6  ;;  %v8380_v55 = vpop.permute.xlu0 %4051  ;;  %vm3756_vm15 = vcmp.eq.s32.totalorder %v8295_v29, %v6818_v51 }
 0x24f   :  { %v3456_v49 = vpack.c.bf16 %v5446_v15, %v5445_v16  ;;  %v5469_v31 = vsel %vm3756_vm15, 1.0, %v9432_v17 }
 0x250   :  { %v3426_v26 = vpop.permute.xlu1 %3425 }
 0x251   :  { %6411 = vset.pattern.permute.xlu1 %v6542_v28  ;;  %vm3436_vm0 = vcmp.eq.s32.totalorder %v3426_v26, %v6818_v51  ;;  %6184 = vmatpush3.bf16.msra.mxu0 %v7170_v24  ;;  %v5891_v25 = vpop.f32.mrb[20].mxu1 }
 0x252   :  { %4388 = vperm.xlu1 %6411, %v8030_v36   ;;  %v5447_v14 = vsel %vm3436_vm0, 1.0, %v9432_v17  ;;  %6145 = vmatprep.mubr.msk.bf16.mxu1 %vm414_vm3, %v3456_v49  ;;  %v5939_v28 = vpop.f32.mrb[36].mxu0  ;;  %v8387_v12 = vpop.f32.mrb[21].mxu1  ;;  %vm3759_vm0 = vcmp.eq.s32.totalorder %v8323_v44, %v6818_v51 }
 0x253   :  { %6185 = vmatprep.subr.bf16.mxu0 %v7175_v57  ;;  %v3457_v16 = vpack.c.bf16 %v5448_v7, %v5447_v14  ;;  %v8389_v3 = vpop.f32.mrb[37].mxu0  ;;  %1458 = vrot.lane.b32.xlu0 %v1449_v50, %s6547_s25  ;;  %v5892_v36 = vpop.f32.mrb[22].mxu1 }
 0x254   :  { %v965_v38 = vpack.c.bf16 %v5892_v36, %v5891_v25  ;;  %v5940_v54 = vpop.f32.mrb[38].mxu0  ;;  %v8392_v48 = vpop.f32.mrb[23].mxu1 }
 0x255   :  { %6186 = vmatpush3.bf16.msra.mxu0 %v7175_v57  ;;  %v3581_v15 = vpop.permute.xlu1 %3580  ;;  %v1451_v49 = vpack.c.bf16 %v5940_v54, %v5939_v28  ;;  %v8399_v26 = vpop.f32.mrb[39].mxu0  ;;  %6146 = vmatmul.mubr.msk.bf16.gmra.mrb[84].mxu1 %vm414_vm3, %v3457_v16 }
 0x256   :  { %4391 = vperm.xlu1 %6411, %v8038_v37   ;;  %vm3595_vm4 = vcmp.eq.s32.totalorder %v3581_v15, %v6818_v51  ;;  %6187 = vmatprep.subr.bf16.mxu0 %v7177_v62  ;;  %v8412_v36 = vpop.permute.xlu0 %4060 }
 0x257   :  { %v5457_v25 = vsel %vm3595_vm4, 1.0, %v9432_v17  ;;  %970 = vrot.lane.b32.xlu0 %v962_v13, %s6546_s6 }
 0x258   :  { %v3617_v14 = vpack.c.bf16 %v5458_v5, %v5457_v25 }
 0x259   :  { %6188 = vmatpush3.bf16.msra.mxu0 %v7177_v62  ;;  %v3587_v28 = vpop.permute.xlu1 %3586 }
 0x25a   :  { %6412 = vset.pattern.permute.xlu1 %v6541_v41  ;;  %6213 = vmatprep.subr.bf16.mxu0 %v7168_v10  ;;  %v5919_v16 = vpop.f32.mrb[24].mxu1  ;;  %vm3597_vm5 = vcmp.eq.s32.totalorder %v3587_v28, %v6818_v51 }
 0x25b   :  { %4546 = vperm.xlu1 %6412, %v8158_v8   ;;  %6161 = vmatprep.mubr.msk.bf16.mxu0 %vm414_vm3, %v3617_v14  ;;  %v8415_v54 = vpop.f32.mrb[40].mxu0  ;;  %v1255_v13 = vpop.f32.mrb[25].mxu1  ;;  %v5459_v28 = vsel %vm3597_vm5, 1.0, %v9432_v17  ;;  %vm3918_vm5 = vcmp.eq.s32.totalorder %v8357_v6, %v6818_v51 }
 0x25c   :  { %1456 = vrot.lane.b32.xlu0 %v1448_v1, %s6547_s25  ;;  %v8419_v15 = vpop.f32.mrb[41].mxu0  ;;  %v5920_v41 = vpop.f32.mrb[26].mxu1 }
 0x25d   :  { %v3590_v5 = vpop.permute.xlu1 %3589  ;;  %v1287_v25 = vpack.c.bf16 %v5920_v41, %v5919_v16  ;;  %v8421_v50 = vpop.f32.mrb[42].mxu0 }
 0x25e   :  { %vm3598_vm7 = vcmp.eq.s32.totalorder %v3590_v5, %v6818_v51  ;;  %v1258_v1 = vpop.f32.mrb[27].mxu1  ;;  %v8429_v14 = vpop.f32.mrb[43].mxu0 }
 0x25f   :  { %4552 = vperm.xlu1 %6412, %v8038_v37   ;;  %v5460_v7 = vsel %vm3598_vm7, 1.0, %v9432_v17  ;;  %v1286_v16 = vpack.c.bf16 %v1258_v1, %v1255_v13  ;;  %v1772_v41 = vpack.c.bf16 %v8429_v14, %v8419_v15  ;;  %v8436_v5 = vpop.permute.xlu0 %4063  ;;  %v5465_v37 = vsel %vm3752_vm6, 1.0, %v9432_v17 }
 0x260   :  { %976 = vrot.lane.b32.xlu0 %v965_v38, %s6546_s6  ;;  %v3618_v4 = vpack.c.bf16 %v5460_v7, %v5459_v28 }
 0x262   :  { %v3733_v8 = vpop.permute.xlu1 %3732  ;;  %6162 = vmatmul.mubr.msk.bf16.gmra.mrb[92].mxu0 %vm414_vm3, %v3618_v4  ;;  %v5923_v59 = vpop.f32.mrb[28].mxu1 }
 0x263   :  { %4555 = vperm.xlu1 %6412, %v8288_v56   ;;  %vm3753_vm9 = vcmp.eq.s32.totalorder %v3733_v8, %v6818_v51  ;;  %v8444_v13 = vpop.f32.mrb[44].mxu0  ;;  %v8447_v38 = vpop.f32.mrb[29].mxu1 }
 0x264   :  { %1462 = vrot.lane.b32.xlu0 %v1451_v49, %s6547_s25  ;;  %v5466_v7 = vsel %vm3753_vm9, 1.0, %v9432_v17  ;;  %v8450_v15 = vpop.f32.mrb[45].mxu0  ;;  %v5924_v56 = vpop.f32.mrb[30].mxu1  ;;  %vm4074_vm9 = vcmp.eq.s32.totalorder %v8380_v55, %v6818_v51 }
 0x265   :  { %v3776_v1 = vpack.c.bf16 %v5466_v7, %v5465_v37  ;;  %v1289_v14 = vpack.c.bf16 %v5924_v56, %v5923_v59  ;;  %v8452_v28 = vpop.f32.mrb[46].mxu0  ;;  %v8454_v4 = vpop.f32.mrb[31].mxu1  ;;  %v5478_v56 = vsel %vm3914_vm11, 1.0, %v9432_v17  ;;  %v5489_v55 = vsel %vm4074_vm9, 1.0, %v9432_v17 }
 0x266   :  { %v1775_v49 = vpack.c.bf16 %v8452_v28, %v8444_v13  ;;  %v1760_v37 = vpop.f32.mrb[47].mxu0  ;;  %v8476_v61 = vpop.permute.xlu0 %4072  ;;  %v9483_v13 = vpack.c.bf16 %v8454_v4, %v8447_v38  ;;  %vm658_vm9 = vcmask 130112  }
 0x267   :  { %v3736_v8 = vpop.permute.xlu1 %3735  ;;  %810 = vrot.lane.b32.xlu1 %v801_v30, %s6543_s5  ;;  %6173 = vmatprep.mubr.msk.bf16.mxu1 %vm414_vm3, %v3776_v1  ;;  %v1774_v59 = vpack.c.bf16 %v1760_v37, %v8450_v15 }
 0x268   :  { %vm3754_vm10 = vcmp.eq.s32.totalorder %v3736_v8, %v6818_v51  ;;  %1296 = vrot.lane.b32.xlu0 %v1287_v25, %s6548_s26 }
 0x269   :  { %v5467_v7 = vsel %vm3754_vm10, 1.0, %v9432_v17  ;;  %vm4077_vm10 = vcmp.eq.s32.totalorder %v8412_v36, %v6818_v51 }
 0x26a   :  { %v3777_v45 = vpack.c.bf16 %v5468_v21, %v5467_v7  ;;  %v8519_v47 = vpop.permute.xlu0 %4215 }
 0x26b   :  { %808 = vrot.lane.b32.xlu1 %v800_v42, %s6543_s5  ;;  %v8480_v15 = vpop.f32.mrb[32].mxu1 }
 0x26c   :  { %v3891_v30 = vpop.permute.xlu1 %3890  ;;  %6174 = vmatmul.mubr.msk.bf16.vlgmr.msra.gmra.mrb[88].mxu1 %vm414_vm3, %v3777_v45  ;;  %1294 = vrot.lane.b32.xlu0 %v1286_v16, %s6548_s26  ;;  %v8485_v35 = vpop.f32.mrb[48].mxu0 }
 0x26d   :  { %vm3913_vm12 = vcmp.eq.s32.totalorder %v3891_v30, %v6818_v51  ;;  %6198 = vmatpush3.bf16.msra.mxu1 %v7168_v10  ;;  %v8487_v25 = vpop.f32.mrb[33].mxu1  ;;  %v8491_v46 = vpop.f32.mrb[49].mxu0 }
 0x26e   :  { %v5477_v52 = vsel %vm3913_vm12, 1.0, %v9432_v17  ;;  %6199 = vmatprep.subr.bf16.mxu1 %v7170_v24  ;;  %v5952_v42 = vpop.f32.mrb[34].mxu1  ;;  %v8498_v21 = vpop.f32.mrb[50].mxu0 }
 0x26f   :  { %v3937_v1 = vpack.c.bf16 %v5478_v56, %v5477_v52  ;;  %814 = vrot.lane.b32.xlu1 %v803_v63, %s6543_s5  ;;  %v1611_v16 = vpack.c.bf16 %v5952_v42, %v8480_v15  ;;  %v8500_v8 = vpop.f32.mrb[35].mxu1  ;;  %v8506_v30 = vpop.f32.mrb[51].mxu0 }
 0x270   :  { %v3897_v37 = vpop.permute.xlu1 %3896  ;;  %v1610_v45 = vpack.c.bf16 %v8500_v8, %v8487_v25  ;;  %1780 = vrot.lane.b32.xlu0 %v1772_v41, %s6512_s27  ;;  %v2096_v58 = vpack.c.bf16 %v8506_v30, %v8491_v46  ;;  %v8573_v44 = vpop.permute.xlu0 %4227  ;;  %v9480_v25 = vpack.c.bf16 %v8392_v48, %v8387_v12  ;;  %v9481_v46 = vpack.c.bf16 %v8399_v26, %v8389_v3 }
 0x271   :  { %6200 = vmatpush3.bf16.msra.mxu1 %v7170_v24  ;;  %6189 = vmatprep.mubr.msk.bf16.mxu0 %vm414_vm3, %v3937_v1  ;;  %vm3915_vm13 = vcmp.eq.s32.totalorder %v3897_v37, %v6818_v51 }
 0x272   :  { %6201 = vmatprep.subr.bf16.mxu1 %v7175_v57  ;;  %v5479_v22 = vsel %vm3915_vm13, 1.0, %v9432_v17  ;;  %vm4236_vm13 = vcmp.eq.s32.totalorder %v8519_v47, %v6818_v51 }
 0x273   :  { %1134 = vrot.lane.b32.xlu1 %v1125_v32, %s6545_s24  ;;  %v8521_v41 = vpop.f32.mrb[36].mxu1  ;;  %v5502_v47 = vsel %vm4236_vm13, 1.0, %v9432_v17 }
 0x274   :  { %v3900_v63 = vpop.permute.xlu1 %3899  ;;  %1300 = vrot.lane.b32.xlu0 %v1289_v14, %s6548_s26  ;;  %v8526_v56 = vpop.f32.mrb[52].mxu0 }
 0x275   :  { %vm3916_vm14 = vcmp.eq.s32.totalorder %v3900_v63, %v6818_v51  ;;  %6202 = vmatpush3.bf16.msra.mxu1 %v7175_v57  ;;  %v8528_v15 = vpop.f32.mrb[37].mxu1  ;;  %v8535_v32 = vpop.f32.mrb[53].mxu0 }
 0x276   :  { %v5480_v0 = vsel %vm3916_vm14, 1.0, %v9432_v17  ;;  %6203 = vmatprep.subr.bf16.mxu1 %v7177_v62  ;;  %v8537_v14 = vpop.f32.mrb[38].mxu1  ;;  %v8545_v29 = vpop.f32.mrb[54].mxu0 }
 0x277   :  { %v3938_v52 = vpack.c.bf16 %v5480_v0, %v5479_v22  ;;  %1132 = vrot.lane.b32.xlu1 %v1124_v9, %s6545_s24  ;;  %v1613_v42 = vpack.c.bf16 %v8537_v14, %v8521_v41  ;;  %v8547_v1 = vpop.f32.mrb[39].mxu1  ;;  %v8553_v7 = vpop.f32.mrb[55].mxu0  ;;  %v9478_v22 = vpack.c.bf16 %v8334_v40, %v8327_v39 }
 0x278   :  { %1784 = vrot.lane.b32.xlu0 %v1774_v59, %s6512_s27  ;;  %v2098_v9 = vpack.c.bf16 %v8553_v7, %v8535_v32 }
 0x279   :  { %6204 = vmatpush3.bf16.msra.mxu1 %v7177_v62  ;;  %v3745_v20 = vpop.permute.xlu1 %3744  ;;  %6190 = vmatmul.mubr.msk.bf16.vlgmr.msra.gmra.mrb[96].mxu0 %vm414_vm3, %v3938_v52  ;;  %v5472_v52 = vsel %vm3759_vm0, 1.0, %v9432_v17 }
 0x27a   :  { %vm3757_vm2 = vcmp.eq.s32.totalorder %v3745_v20, %v6818_v51  ;;  %6214 = vmatpush3.bf16.msra.mxu0 %v7168_v10  ;;  %6229 = vmatprep.subr.bf16.mxu1 %v7168_v10 }
 0x27b   :  { %v5470_v59 = vsel %vm3757_vm2, 1.0, %v9432_v17  ;;  %6215 = vmatprep.subr.bf16.mxu0 %v7170_v24  ;;  %1138 = vrot.lane.b32.xlu1 %v9478_v22, %s6545_s24  ;;  %vm4078_vm2 = vcmp.eq.s32.totalorder %v8436_v5, %v6818_v51 }
 0x27c   :  { %v3778_v0 = vpack.c.bf16 %v5470_v59, %v5469_v31  ;;  %1620 = vrot.lane.b32.xlu0 %v1611_v16, %s6549_s0  ;;  %v8576_v37 = vpop.f32.mrb[40].mxu1  ;;  %v9479_v31 = vpack.c.bf16 %v8340_v34, %v8329_v60  ;;  %v5493_v5 = vsel %vm4078_vm2, 1.0, %v9432_v17 }
 0x27d   :  { %v3748_v20 = vpop.permute.xlu1 %3747  ;;  %v8580_v63 = vpop.f32.mrb[56].mxu0 }
 0x27e   :  { %vm3758_vm4 = vcmp.eq.s32.totalorder %v3748_v20, %v6818_v51  ;;  %6216 = vmatpush3.bf16.msra.mxu0 %v7170_v24  ;;  %6177 = vmatprep.mubr.msk.bf16.mxu1 %vm414_vm3, %v3778_v0  ;;  %v8583_v39 = vpop.f32.mrb[41].mxu1  ;;  %v8589_v16 = vpop.f32.mrb[57].mxu0 }
 0x27f   :  { %v5471_v40 = vsel %vm3758_vm4, 1.0, %v9432_v17  ;;  %6217 = vmatprep.subr.bf16.mxu0 %v7175_v57  ;;  %650 = vrot.lane.b32.xlu1 %v9479_v31, %s6544_s1  ;;  %v5984_v59 = vpop.f32.mrb[42].mxu1  ;;  %v8596_v20 = vpop.f32.mrb[58].mxu0  ;;  %vm4081_vm4 = vcmp.eq.s32.totalorder %v8476_v61, %v6818_v51 }
 0x280   :  { %v3779_v22 = vpack.c.bf16 %v5472_v52, %v5471_v40  ;;  %v1935_v0 = vpack.c.bf16 %v5984_v59, %v8576_v37  ;;  %v8598_v33 = vpop.f32.mrb[43].mxu1  ;;  %1618 = vrot.lane.b32.xlu0 %v1610_v45, %s6549_s0  ;;  %v2421_v6 = vpack.c.bf16 %v8596_v20, %v8580_v63  ;;  %v8608_v34 = vpop.f32.mrb[59].mxu0  ;;  %v5482_v52 = vsel %vm3918_vm5, 1.0, %v9432_v17 }
 0x281   :  { %v1934_v60 = vpack.c.bf16 %v8598_v33, %v8583_v39  ;;  %v2420_v37 = vpack.c.bf16 %v8608_v34, %v8589_v16  ;;  %v8628_v59 = vpop.permute.xlu0 %4537  ;;  %v5496_v61 = vsel %vm4081_vm4, 1.0, %v9432_v17 }
 0x282   :  { %6218 = vmatpush3.bf16.msra.mxu0 %v7175_v57  ;;  %v3903_v40 = vpop.permute.xlu1 %3902  ;;  %6178 = vmatmul.mubr.msk.bf16.gmra.mrb[92].mxu1 %vm414_vm3, %v3779_v22 }
 0x283   :  { %vm3917_vm6 = vcmp.eq.s32.totalorder %v3903_v40, %v6818_v51  ;;  %6219 = vmatprep.subr.bf16.mxu0 %v7177_v62  ;;  %974 = vrot.lane.b32.xlu1 %v9480_v25, %s6546_s6 }
 0x284   :  { %v5481_v8 = vsel %vm3917_vm6, 1.0, %v9432_v17  ;;  %2104 = vrot.lane.b32.xlu0 %v2096_v58, %s6550_s2  ;;  %v8626_v31 = vpop.f32.mrb[44].mxu1 }
 0x285   :  { %v3939_v45 = vpack.c.bf16 %v5482_v52, %v5481_v8  ;;  %v8631_v40 = vpop.f32.mrb[60].mxu0  ;;  %v8637_v48 = vpop.f32.mrb[45].mxu1 }
 0x286   :  { %6220 = vmatpush3.bf16.msra.mxu0 %v7177_v62  ;;  %v3909_v22 = vpop.permute.xlu1 %3908  ;;  %v8634_v12 = vpop.f32.mrb[61].mxu0 }
 0x287   :  { %6245 = vmatprep.subr.bf16.mxu0 %v7168_v10  ;;  %6193 = vmatprep.mubr.msk.bf16.mxu0 %vm414_vm3, %v3939_v45  ;;  %v8643_v30 = vpop.f32.mrb[46].mxu1  ;;  %v8645_v58 = vpop.f32.mrb[62].mxu0  ;;  %vm3919_vm7 = vcmp.eq.s32.totalorder %v3909_v22, %v6818_v51 }
 0x288   :  { %1460 = vrot.lane.b32.xlu1 %v9481_v46, %s6547_s25  ;;  %1624 = vrot.lane.b32.xlu0 %v1613_v42, %s6549_s0  ;;  %v1937_v52 = vpack.c.bf16 %v8643_v30, %v8626_v31  ;;  %v8656_v8 = vpop.f32.mrb[47].mxu1  ;;  %v2408_v3 = vpop.f32.mrb[63].mxu0  ;;  %v5483_v41 = vsel %vm3919_vm7, 1.0, %v9432_v17  ;;  %v9482_v42 = vpack.c.bf16 %v8421_v50, %v8415_v54  ;;  %vm4240_vm7 = vcmp.eq.s32.totalorder %v8573_v44, %v6818_v51 }
 0x289   :  { %v1936_v26 = vpack.c.bf16 %v8656_v8, %v8637_v48  ;;  %v2422_v45 = vpack.c.bf16 %v2408_v3, %v8634_v12  ;;  %v8674_v3 = vpop.permute.xlu0 %4373 }
 0x28a   :  { %v3912_v46 = vpop.permute.xlu1 %3911 }
 0x28b   :  { %vm3920_vm8 = vcmp.eq.s32.totalorder %v3912_v46, %v6818_v51 }
 0x28c   :  { %v5484_v14 = vsel %vm3920_vm8, 1.0, %v9432_v17  ;;  %1782 = vrot.lane.b32.xlu1 %v9482_v42, %s6512_s27  ;;  %2108 = vrot.lane.b32.xlu0 %v2098_v9, %s6550_s2 }
 0x28d   :  { %v3940_v22 = vpack.c.bf16 %v5484_v14, %v5483_v41  ;;  %v6015_v12 = vpop.f32.mrb[48].mxu1  ;;  %v5492_v41 = vsel %vm4077_vm10, 1.0, %v9432_v17 }
 0x28e   :  { %v8678_v25 = vpop.f32.mrb[49].mxu1 }
 0x28f   :  { %v4055_v46 = vpop.permute.xlu1 %4054  ;;  %6194 = vmatmul.mubr.msk.bf16.gmra.mrb[100].mxu0 %vm414_vm3, %v3940_v22  ;;  %v6016_v50 = vpop.f32.mrb[50].mxu1 }
 0x290   :  { %vm4075_vm11 = vcmp.eq.s32.totalorder %v4055_v46, %v6818_v51  ;;  %1786 = vrot.lane.b32.xlu1 %v1775_v49, %s6512_s27  ;;  %1944 = vrot.lane.b32.xlu0 %v1935_v0, %s6551_s28  ;;  %v2259_v7 = vpack.c.bf16 %v6016_v50, %v6015_v12  ;;  %v8689_v32 = vpop.f32.mrb[51].mxu1  ;;  %v8707_v49 = vpop.permute.xlu0 %4382  ;;  %v9484_v12 = vpack.c.bf16 %v8498_v21, %v8485_v35 }
 0x291   :  { %v5490_v54 = vsel %vm4075_vm11, 1.0, %v9432_v17  ;;  %v2258_v36 = vpack.c.bf16 %v8689_v32, %v8678_v25  ;;  %vm4399_vm13 = vcmp.eq.s32.totalorder %v8707_v49, %v6818_v51 }
 0x292   :  { %v4098_v9 = vpack.c.bf16 %v5490_v54, %v5489_v55 }
 0x293   :  { %v4058_v14 = vpop.permute.xlu1 %4057 }
 0x294   :  { %vm4076_vm12 = vcmp.eq.s32.totalorder %v4058_v14, %v6818_v51  ;;  %1298 = vrot.lane.b32.xlu1 %v9483_v13, %s6548_s26  ;;  %6205 = vmatprep.mubr.msk.bf16.mxu1 %vm414_vm3, %v4098_v9  ;;  %v8738_v14 = vpop.permute.xlu0 %4385 }
 0x295   :  { %v5491_v28 = vsel %vm4076_vm12, 1.0, %v9432_v17  ;;  %2428 = vrot.lane.b32.xlu0 %v2420_v37, %s6552_s29  ;;  %v8709_v42 = vpop.f32.mrb[52].mxu1  ;;  %vm4396_vm12 = vcmp.eq.s32.totalorder %v8674_v3, %v6818_v51 }
 0x296   :  { %v4099_v0 = vpack.c.bf16 %v5492_v41, %v5491_v28  ;;  %v6063_v38 = vpop.f32.mrb[64].mxu0  ;;  %v8711_v4 = vpop.f32.mrb[53].mxu1  ;;  %v5513_v3 = vsel %vm4396_vm12, 1.0, %v9432_v17 }
 0x297   :  { %v8713_v22 = vpop.f32.mrb[65].mxu0  ;;  %v8720_v16 = vpop.f32.mrb[54].mxu1 }
 0x298   :  { %2106 = vrot.lane.b32.xlu1 %v9484_v12, %s6550_s2  ;;  %v4213_v55 = vpop.permute.xlu1 %4212  ;;  %6206 = vmatmul.mubr.msk.bf16.vlgmr.msra.gmra.mrb[96].mxu1 %vm414_vm3, %v4099_v0  ;;  %v2261_v34 = vpack.c.bf16 %v8720_v16, %v8709_v42  ;;  %v8727_v37 = vpop.f32.mrb[55].mxu1 }
 0x299   :  { %vm4235_vm14 = vcmp.eq.s32.totalorder %v4213_v55, %v6818_v51  ;;  %6230 = vmatpush3.bf16.msra.mxu1 %v7168_v10  ;;  %2432 = vrot.lane.b32.xlu0 %v2422_v45, %s6552_s29  ;;  %v6064_v46 = vpop.f32.mrb[66].mxu0  ;;  %v2260_v21 = vpack.c.bf16 %v8727_v37, %v8711_v4  ;;  %v9485_v45 = vpack.c.bf16 %v8547_v1, %v8528_v15  ;;  %v8759_v12 = vpop.permute.xlu0 %4394 }
 0x29a   :  { %v5501_v35 = vsel %vm4235_vm14, 1.0, %v9432_v17  ;;  %6231 = vmatprep.subr.bf16.mxu1 %v7170_v24  ;;  %v2745_v50 = vpack.c.bf16 %v6064_v46, %v6063_v38  ;;  %v8734_v54 = vpop.f32.mrb[67].mxu0 }
 0x29b   :  { %v4259_v9 = vpack.c.bf16 %v5502_v47, %v5501_v35  ;;  %v2744_v41 = vpack.c.bf16 %v8734_v54, %v8713_v22 }
 0x29c   :  { %1622 = vrot.lane.b32.xlu1 %v9485_v45, %s6549_s0  ;;  %v4219_v13 = vpop.permute.xlu1 %4218 }
 0x29d   :  { %6232 = vmatpush3.bf16.msra.mxu1 %v7170_v24  ;;  %6221 = vmatprep.mubr.msk.bf16.mxu0 %vm414_vm3, %v4259_v9  ;;  %v6047_v28 = vpop.f32.mrb[56].mxu1  ;;  %vm4237_vm15 = vcmp.eq.s32.totalorder %v4219_v13, %v6818_v51 }
 0x29e   :  { %6233 = vmatprep.subr.bf16.mxu1 %v7175_v57  ;;  %2268 = vrot.lane.b32.xlu0 %v2259_v7, %s6553_s30  ;;  %v8749_v0 = vpop.f32.mrb[57].mxu1  ;;  %v5503_v7 = vsel %vm4237_vm15, 1.0, %v9432_v17 }
 0x29f   :  { %v6048_v1 = vpop.f32.mrb[58].mxu1 }
 0x2a0   :  { %2430 = vrot.lane.b32.xlu1 %v2421_v6, %s6552_s29  ;;  %v4222_v15 = vpop.permute.xlu1 %4221  ;;  %v2583_v38 = vpack.c.bf16 %v6048_v1, %v6047_v28  ;;  %v8757_v47 = vpop.f32.mrb[59].mxu1 }
 0x2a1   :  { %vm4238_vm0 = vcmp.eq.s32.totalorder %v4222_v15, %v6818_v51  ;;  %6234 = vmatpush3.bf16.msra.mxu1 %v7175_v57  ;;  %v2582_v63 = vpack.c.bf16 %v8757_v47, %v8749_v0  ;;  %v5506_v15 = vsel %vm4240_vm7, 1.0, %v9432_v17 }
 0x2a2   :  { %v5504_v55 = vsel %vm4238_vm0, 1.0, %v9432_v17  ;;  %6235 = vmatprep.subr.bf16.mxu1 %v7177_v62  ;;  %2754 = vrot.lane.b32.xlu0 %v2745_v50, %s6554_s12  ;;  %vm4558_vm0 = vcmp.eq.s32.totalorder %v8628_v59, %v6818_v51 }
 0x2a3   :  { %v4260_v20 = vpack.c.bf16 %v5504_v55, %v5503_v7 }
 0x2a4   :  { %1942 = vrot.lane.b32.xlu1 %v1934_v60, %s6551_s28  ;;  %v8787_v60 = vpop.permute.xlu0 %4549 }
 0x2a5   :  { %6236 = vmatpush3.bf16.msra.mxu1 %v7177_v62  ;;  %v4067_v6 = vpop.permute.xlu1 %4066  ;;  %6222 = vmatmul.mubr.msk.bf16.vlgmr.msra.gmra.mrb[104].mxu0 %vm414_vm3, %v4260_v20  ;;  %v8780_v46 = vpop.f32.mrb[60].mxu1 }
 0x2a6   :  { %vm4079_vm5 = vcmp.eq.s32.totalorder %v4067_v6, %v6818_v51  ;;  %6246 = vmatpush3.bf16.msra.mxu0 %v7168_v10  ;;  %2592 = vrot.lane.b32.xlu0 %v2583_v38, %s6555_s13  ;;  %v8785_v39 = vpop.f32.mrb[61].mxu1 }
 0x2a7   :  { %v5494_v33 = vsel %vm4079_vm5, 1.0, %v9432_v17  ;;  %6247 = vmatprep.subr.bf16.mxu0 %v7170_v24  ;;  %v8793_v10 = vpop.f32.mrb[62].mxu1 }
 0x2a8   :  { %v4100_v35 = vpack.c.bf16 %v5494_v33, %v5493_v5  ;;  %1948 = vrot.lane.b32.xlu1 %v1937_v52, %s6551_s28  ;;  %v2585_v50 = vpack.c.bf16 %v8793_v10, %v8780_v46  ;;  %v8798_v45 = vpop.f32.mrb[63].mxu1  ;;  %v8815_v28 = vpop.permute.xlu0 %812 }
 0x2a9   :  { %v4070_v9 = vpop.permute.xlu1 %4069  ;;  %v2584_v13 = vpack.c.bf16 %v8798_v45, %v8785_v39 }
 0x2aa   :  { %vm4080_vm6 = vcmp.eq.s32.totalorder %v4070_v9, %v6818_v51  ;;  %6248 = vmatpush3.bf16.msra.mxu0 %v7170_v24  ;;  %6209 = vmatprep.mubr.msk.bf16.mxu1 %vm414_vm3, %v4100_v35  ;;  %v5516_v9 = vsel %vm4399_vm13, 1.0, %v9432_v17 }
 0x2ab   :  { %v5495_v31 = vsel %vm4080_vm6, 1.0, %v9432_v17  ;;  %6249 = vmatprep.subr.bf16.mxu0 %v7175_v57  ;;  %vm4400_vm6 = vcmp.eq.s32.totalorder %v8738_v14, %v6818_v51 }
 0x2ac   :  { %v4101_v30 = vpack.c.bf16 %v5496_v61, %v5495_v31  ;;  %1946 = vrot.lane.b32.xlu1 %v1936_v26, %s6551_s28  ;;  %v8813_v52 = vpop.f32.mrb[68].mxu0 }
 0x2ad   :  { %v2729_v24 = vpop.f32.mrb[69].mxu0 }
 0x2ae   :  { %6250 = vmatpush3.bf16.msra.mxu0 %v7175_v57  ;;  %v4225_v44 = vpop.permute.xlu1 %4224  ;;  %6210 = vmatmul.mubr.msk.bf16.gmra.mrb[100].mxu1 %vm414_vm3, %v4101_v30  ;;  %v8820_v1 = vpop.f32.mrb[70].mxu0 }
 0x2af   :  { %vm4239_vm8 = vcmp.eq.s32.totalorder %v4225_v44, %v6818_v51  ;;  %6251 = vmatprep.subr.bf16.mxu0 %v7177_v62  ;;  %v2747_v48 = vpack.c.bf16 %v8820_v1, %v8813_v52  ;;  %v2732_v8 = vpop.f32.mrb[71].mxu0 }
 0x2b0   :  { %v5505_v26 = vsel %vm4239_vm8, 1.0, %v9432_v17  ;;  %2266 = vrot.lane.b32.xlu1 %v2258_v36, %s6553_s30  ;;  %v2746_v57 = vpack.c.bf16 %v2732_v8, %v2729_v24  ;;  %v649_v7 = vpop.permute.xlu0 %648  ;;  %vm4403_vm8 = vcmp.eq.s32.totalorder %v8759_v12, %v6818_v51 }
 0x2b1   :  { %v4261_v38 = vpack.c.bf16 %v5506_v15, %v5505_v26  ;;  %660 = vst.msk [vmem:[#allocation2 + $0x10] sm:$0xff] %vm658_vm9, %v649_v7  ;;  %v5526_v15 = vsel %vm4558_vm0, 1.0, %v9432_v17  ;;  %vm982_vm0 = vcmask 261312  }
 0x2b2   :  { %6252 = vmatpush3.bf16.msra.mxu0 %v7177_v62  ;;  %v4231_v55 = vpop.permute.xlu1 %4230 }
 0x2b3   :  { %6225 = vmatprep.mubr.msk.bf16.mxu0 %vm414_vm3, %v4261_v38  ;;  %vm4241_vm10 = vcmp.eq.s32.totalorder %v4231_v55, %v6818_v51 }
 0x2b4   :  { %2752 = vrot.lane.b32.xlu1 %v2744_v41, %s6554_s12  ;;  %v647_v20 = vpop.permute.xlu0 %646  ;;  %v5507_v22 = vsel %vm4241_vm10, 1.0, %v9432_v17 }
 0x2b5   :  { %v8839_v25 = vpop.f32.mrb[64].mxu1  ;;  %659 = vst.msk [vmem:[#allocation2] sm:$0xff] %vm658_vm9, %v647_v20 }
 0x2b6   :  { %v4234_v32 = vpop.permute.xlu1 %4233  ;;  %v8842_v36 = vpop.f32.mrb[65].mxu1 }
 0x2b7   :  { %vm4242_vm11 = vcmp.eq.s32.totalorder %v4234_v32, %v6818_v51  ;;  %v8845_v62 = vpop.f32.mrb[66].mxu1 }
 0x2b8   :  { %v5508_v54 = vsel %vm4242_vm11, 1.0, %v9432_v17  ;;  %2270 = vrot.lane.b32.xlu1 %v2260_v21, %s6553_s30  ;;  %v2907_v41 = vpack.c.bf16 %v8845_v62, %v8839_v25  ;;  %v8857_v5 = vpop.f32.mrb[67].mxu1  ;;  %v653_v33 = vpop.permute.xlu0 %652  ;;  %vm4562_vm11 = vcmp.eq.s32.totalorder %v8787_v60, %v6818_v51 }
 0x2b9   :  { %v4262_v6 = vpack.c.bf16 %v5508_v54, %v5507_v22  ;;  %v2906_v35 = vpack.c.bf16 %v8857_v5, %v8842_v36  ;;  %662 = vst.msk [vmem:[#allocation2 + $0x30] sm:$0xff] %vm658_vm9, %v653_v33 }
 0x2bb   :  { %v4377_v61 = vpop.permute.xlu1 %4376  ;;  %6226 = vmatmul.mubr.msk.bf16.gmra.mrb[108].mxu0 %vm414_vm3, %v4262_v6 }
 0x2bc   :  { %vm4397_vm14 = vcmp.eq.s32.totalorder %v4377_v61, %v6818_v51  ;;  %2756 = vrot.lane.b32.xlu1 %v2746_v57, %s6554_s12  ;;  %v8869_v37 = vpop.permute.xlu0 %1136 }
 0x2bd   :  { %v5514_v4 = vsel %vm4397_vm14, 1.0, %v9432_v17 }
 0x2be   :  { %v4420_v21 = vpack.c.bf16 %v5514_v4, %v5513_v3  ;;  %v5517_v3 = vsel %vm4400_vm6, 1.0, %v9432_v17  ;;  %vm1954_vm6 = vcmask 654912  }
 0x2bf   :  { %v4380_v31 = vpop.permute.xlu1 %4379 }
 0x2c0   :  { %vm4398_vm15 = vcmp.eq.s32.totalorder %v4380_v31, %v6818_v51  ;;  %2590 = vrot.lane.b32.xlu1 %v2582_v63, %s6555_s13  ;;  %6237 = vmatprep.mubr.msk.bf16.mxu1 %vm414_vm3, %v4420_v21  ;;  %v8881_v30 = vpop.permute.xlu0 %972 }
 0x2c1   :  { %v5515_v49 = vsel %vm4398_vm15, 1.0, %v9432_v17  ;;  %vm820_vm15 = vcmask 195712  }
 0x2c2   :  { %v4421_v24 = vpack.c.bf16 %v5516_v9, %v5515_v49 }
 0x2c3   :  { %v6095_v0 = vpop.f32.mrb[72].mxu0 }
 0x2c4   :  { %2594 = vrot.lane.b32.xlu1 %v2584_v13, %s6555_s13  ;;  %v4535_v44 = vpop.permute.xlu1 %4534  ;;  %6238 = vmatmul.mubr.msk.bf16.vlgmr.msra.gmra.mrb[104].mxu1 %vm414_vm3, %v4421_v24  ;;  %v3037_v47 = vpop.f32.mrb[73].mxu0 }
 0x2c5   :  { %vm4557_vm2 = vcmp.eq.s32.totalorder %v4535_v44, %v6818_v51  ;;  %v8891_v63 = vpop.permute.xlu0 %1458  ;;  %v6096_v8 = vpop.f32.mrb[74].mxu0  ;;  %v5520_v44 = vsel %vm4403_vm8, 1.0, %v9432_v17  ;;  %vm2278_vm8 = vcmask 786112  }
 0x2c6   :  { %v5525_v59 = vsel %vm4557_vm2, 1.0, %v9432_v17  ;;  %v3069_v57 = vpack.c.bf16 %v6096_v8, %v6095_v0  ;;  %v3040_v38 = vpop.f32.mrb[75].mxu0  ;;  %vm1468_vm2 = vcmask 458112  }
 0x2c7   :  { %v4581_v26 = vpack.c.bf16 %v5526_v15, %v5525_v59  ;;  %v3068_v55 = vpack.c.bf16 %v3040_v38, %v3037_v47  ;;  %v5530_v59 = vsel %vm4562_vm11, 1.0, %v9432_v17  ;;  %vm2602_vm11 = vcmask 917312  }
 0x2c8   :  { %v4541_v7 = vpop.permute.xlu1 %4540  ;;  %3073 = vst.msk [vmem:[#allocation2 + $0x18] sm:$0xff] %vm496_vm1, %v3069_v57 }
 0x2c9   :  { %6253 = vmatprep.mubr.msk.bf16.mxu0 %vm414_vm3, %v4581_v26  ;;  %3072 = vst.msk [vmem:[#allocation2 + $0x8] sm:$0xff] %vm496_vm1, %v3068_v55  ;;  %v8896_v39 = vpop.permute.xlu0 %970  ;;  %vm4559_vm4 = vcmp.eq.s32.totalorder %v4541_v7, %v6818_v51 }
 0x2ca   :  { %v5527_v13 = vsel %vm4559_vm4, 1.0, %v9432_v17  ;;  %vm1630_vm4 = vcmask 523712  }
 0x2cc   :  { %v4544_v45 = vpop.permute.xlu1 %4543 }
 0x2cd   :  { %vm4560_vm5 = vcmp.eq.s32.totalorder %v4544_v45, %v6818_v51  ;;  %v8906_v22 = vpop.f32.mrb[68].mxu1 }
 0x2ce   :  { %v5528_v20 = vsel %vm4560_vm5, 1.0, %v9432_v17  ;;  %v8904_v32 = vpop.permute.xlu0 %1456  ;;  %v8908_v6 = vpop.f32.mrb[69].mxu1  ;;  %vm1792_vm5 = vcmask 589312  }
 0x2cf   :  { %v4582_v54 = vpack.c.bf16 %v5528_v20, %v5527_v13  ;;  %v8910_v33 = vpop.f32.mrb[70].mxu1 }
 0x2d0   :  { %v2909_v14 = vpack.c.bf16 %v8910_v33, %v8906_v22  ;;  %v8916_v4 = vpop.f32.mrb[71].mxu1 }
 0x2d1   :  { %v4389_v61 = vpop.permute.xlu1 %4388  ;;  %6254 = vmatmul.mubr.msk.bf16.vlgmr.msra.gmra.mrb[112].mxu0 %vm414_vm3, %v4582_v54  ;;  %v2908_v21 = vpack.c.bf16 %v8916_v4, %v8908_v6 }
 0x2d2   :  { %vm4401_vm7 = vcmp.eq.s32.totalorder %v4389_v61, %v6818_v51  ;;  %v977_v9 = vpop.permute.xlu0 %976 }
 0x2d3   :  { %v5518_v31 = vsel %vm4401_vm7, 1.0, %v9432_v17  ;;  %vm2116_vm7 = vcmask 720512  }
 0x2d4   :  { %v4422_v49 = vpack.c.bf16 %v5518_v31, %v5517_v3 }
 0x2d5   :  { %v4392_v24 = vpop.permute.xlu1 %4391 }
 0x2d6   :  { %vm4402_vm10 = vcmp.eq.s32.totalorder %v4392_v24, %v6818_v51  ;;  %6241 = vmatprep.mubr.msk.bf16.mxu1 %vm414_vm3, %v4422_v49  ;;  %v8926_v15 = vpop.permute.xlu0 %1462 }
 0x2d7   :  { %v5519_v0 = vsel %vm4402_vm10, 1.0, %v9432_v17  ;;  %vm2440_vm10 = vcmask 851712  }
 0x2d8   :  { %v4423_v47 = vpack.c.bf16 %v5520_v44, %v5519_v0 }
 0x2da   :  { %v4547_v8 = vpop.permute.xlu1 %4546  ;;  %6242 = vmatmul.mubr.msk.bf16.gmra.mrb[108].mxu1 %vm414_vm3, %v4423_v47  ;;  %v1297_v12 = vpop.permute.xlu0 %1296 }
 0x2db   :  { %vm4561_vm12 = vcmp.eq.s32.totalorder %v4547_v8, %v6818_v51  ;;  %v6099_v26 = vpop.f32.mrb[76].mxu0 }
 0x2dc   :  { %v5529_v57 = vsel %vm4561_vm12, 1.0, %v9432_v17  ;;  %v3053_v38 = vpop.f32.mrb[77].mxu0  ;;  %vm2764_vm12 = vcmask 982912  }
 0x2dd   :  { %v4583_v7 = vpack.c.bf16 %v5530_v59, %v5529_v57  ;;  %v6100_v55 = vpop.f32.mrb[78].mxu0 }
 0x2de   :  { %v4553_v45 = vpop.permute.xlu1 %4552  ;;  %v3071_v13 = vpack.c.bf16 %v6100_v55, %v6099_v26  ;;  %v3056_v60 = vpop.f32.mrb[79].mxu0 }
 0x2df   :  { %6257 = vmatprep.mubr.msk.bf16.mxu0 %vm414_vm3, %v4583_v7  ;;  %v3070_v20 = vpack.c.bf16 %v3056_v60, %v3053_v38  ;;  %v1295_v54 = vpop.permute.xlu0 %1294  ;;  %vm4563_vm13 = vcmp.eq.s32.totalorder %v4553_v45, %v6818_v51 }
 0x2e0   :  { %3075 = vst.msk [vmem:[#allocation2 + $0x38] sm:$0xff] %vm496_vm1, %v3071_v13  ;;  %v5531_v31 = vsel %vm4563_vm13, 1.0, %v9432_v17  ;;  %vm2926_vm13 = vcmask 1048512  }
 0x2e1   :  { %3074 = vst.msk [vmem:[#allocation2 + $0x28] sm:$0xff] %vm496_vm1, %v3070_v20  ;;  %vm1306_vm1 = vcmask 392512  }
 0x2e2   :  { %v4556_v3 = vpop.permute.xlu1 %4555 }
 0x2e3   :  { %vm4564_vm14 = vcmp.eq.s32.totalorder %v4556_v3, %v6818_v51  ;;  %v1781_v61 = vpop.permute.xlu0 %1780  ;;  %v8943_v24 = vpop.f32.mrb[72].mxu1 }
 0x2e4   :  { %v5532_v49 = vsel %vm4564_vm14, 1.0, %v9432_v17  ;;  %v8945_v0 = vpop.f32.mrb[73].mxu1 }
 0x2e5   :  { %v4584_v44 = vpack.c.bf16 %v5532_v49, %v5531_v31  ;;  %v8947_v59 = vpop.f32.mrb[74].mxu1 }
 0x2e6   :  { %v811_v47 = vpop.permute.xlu1 %810  ;;  %v3214_v8 = vpack.c.bf16 %v8947_v59, %v8943_v24  ;;  %v8953_v26 = vpop.f32.mrb[75].mxu1 }
 0x2e7   :  { %822 = vst.msk [vmem:[#allocation2 + $0x10] sm:$0xff] %vm820_vm15, %v811_v47  ;;  %6258 = vmatmul.mubr.msk.bf16.gmra.mrb[116].mxu0 %vm414_vm3, %v4584_v44  ;;  %v1301_v51 = vpop.permute.xlu0 %1300  ;;  %v3213_v17 = vpack.c.bf16 %v8953_v26, %v8945_v0  ;;  %vm1144_vm3 = vcmask 326912  }
 0x2e8   :  { %984 = vst.msk [vmem:[#allocation2 + $0x10] sm:$0xff] %vm982_vm0, %v8881_v30 }
 0x2ea   :  { %v809_v57 = vpop.permute.xlu1 %808 }
 0x2eb   :  { %821 = vst.msk [vmem:[#allocation2] sm:$0xff] %vm820_vm15, %v809_v57  ;;  %v8960_v38 = vpop.permute.xlu0 %1784 }
 0x2ec   :  { %983 = vst.msk [vmem:[#allocation2] sm:$0xff] %vm982_vm0, %v8896_v39 }
 0x2ee   :  { %v815_v7 = vpop.permute.xlu1 %814 }
 0x2ef   :  { %824 = vst.msk [vmem:[#allocation2 + $0x30] sm:$0xff] %vm820_vm15, %v815_v7  ;;  %v1621_v55 = vpop.permute.xlu0 %1620 }
 0x2f0   :  { %986 = vst.msk [vmem:[#allocation2 + $0x30] sm:$0xff] %vm982_vm0, %v977_v9 }
 0x2f2   :  { %v1135_v45 = vpop.permute.xlu1 %1134  ;;  %v6127_v30 = vpop.f32.mrb[80].mxu0 }
 0x2f3   :  { %1146 = vst.msk [vmem:[#allocation2 + $0x10] sm:$0xff] %vm1144_vm3, %v1135_v45  ;;  %v1619_v13 = vpop.permute.xlu0 %1618  ;;  %v3343_v60 = vpop.f32.mrb[81].mxu0 }
 0x2f4   :  { %1308 = vst.msk [vmem:[#allocation2 + $0x10] sm:$0xff] %vm1306_vm1, %v1297_v12  ;;  %v6128_v39 = vpop.f32.mrb[82].mxu0 }
 0x2f5   :  { %1470 = vst.msk [vmem:[#allocation2 + $0x10] sm:$0xff] %vm1468_vm2, %v8891_v63  ;;  %v3375_v3 = vpack.c.bf16 %v6128_v39, %v6127_v30  ;;  %v3346_v31 = vpop.f32.mrb[83].mxu0 }
 0x2f6   :  { %v1133_v20 = vpop.permute.xlu1 %1132  ;;  %1632 = vst.msk [vmem:[#allocation2 + $0x10] sm:$0xff] %vm1630_vm4, %v1621_v55  ;;  %v3374_v9 = vpack.c.bf16 %v3346_v31, %v3343_v60 }
 0x2f7   :  { %1145 = vst.msk [vmem:[#allocation2] sm:$0xff] %vm1144_vm3, %v1133_v20  ;;  %v8972_v49 = vpop.permute.xlu0 %2104  ;;  %3384 = vrot.lane.b32.xlu0 %v3375_v3, %s6543_s5 }
 0x2f8   :  { %1307 = vst.msk [vmem:[#allocation2] sm:$0xff] %vm1306_vm1, %v1295_v54  ;;  %3382 = vrot.lane.b32.xlu1 %v3374_v9, %s6543_s5 }
 0x2f9   :  { %1469 = vst.msk [vmem:[#allocation2] sm:$0xff] %vm1468_vm2, %v8904_v32 }
 0x2fa   :  { %v1139_v63 = vpop.permute.xlu1 %1138  ;;  %1631 = vst.msk [vmem:[#allocation2] sm:$0xff] %vm1630_vm4, %v1619_v13 }
 0x2fb   :  { %1148 = vst.msk [vmem:[#allocation2 + $0x30] sm:$0xff] %vm1144_vm3, %v1139_v63  ;;  %v1625_v12 = vpop.permute.xlu0 %1624  ;;  %2916 = vrot.lane.b32.xlu0 %v2907_v41, %s6556_s4  ;;  %v8987_v54 = vpop.f32.mrb[76].mxu1 }
 0x2fc   :  { %1793 = vst.msk [vmem:[#allocation2] sm:$0xff] %vm1792_vm5, %v1781_v61  ;;  %v8991_v32 = vpop.f32.mrb[77].mxu1  ;;  %2914 = vrot.lane.b32.xlu1 %v2906_v35, %s6556_s4 }
 0x2fd   :  { %1310 = vst.msk [vmem:[#allocation2 + $0x30] sm:$0xff] %vm1306_vm1, %v1301_v51  ;;  %v8998_v44 = vpop.f32.mrb[78].mxu1 }
 0x2fe   :  { %1472 = vst.msk [vmem:[#allocation2 + $0x30] sm:$0xff] %vm1468_vm2, %v8926_v15  ;;  %v651_v61 = vpop.permute.xlu1 %650  ;;  %v3216_v25 = vpack.c.bf16 %v8998_v44, %v8987_v54  ;;  %v9003_v62 = vpop.f32.mrb[79].mxu1 }
 0x2ff   :  { %1634 = vst.msk [vmem:[#allocation2 + $0x30] sm:$0xff] %vm1630_vm4, %v1625_v12  ;;  %v9005_v41 = vpop.permute.xlu0 %2108  ;;  %v3215_v36 = vpack.c.bf16 %v9003_v62, %v8991_v32 }
 0x300   :  { %661 = vst.msk [vmem:[#allocation2 + $0x20] sm:$0xff] %vm658_vm9, %v651_v61 }
 0x301   :  { %823 = vst.msk [vmem:[#allocation2 + $0x20] sm:$0xff] %vm820_vm15, %v8815_v28 }
 0x302   :  { %v975_v5 = vpop.permute.xlu1 %974 }
 0x303   :  { %985 = vst.msk [vmem:[#allocation2 + $0x20] sm:$0xff] %vm982_vm0, %v975_v5  ;;  %v1945_v35 = vpop.permute.xlu0 %1944 }
 0x304   :  { %1147 = vst.msk [vmem:[#allocation2 + $0x20] sm:$0xff] %vm1144_vm3, %v8869_v37 }
 0x306   :  { %v1461_v15 = vpop.permute.xlu1 %1460 }
 0x307   :  { %v9014_v47 = vpop.permute.xlu0 %2428 }
 0x308   :  { %v6131_v51 = vpop.f32.mrb[84].mxu0 }
 0x309   :  { %v3359_v7 = vpop.f32.mrb[85].mxu0 }
 0x30a   :  { %v1783_v57 = vpop.permute.xlu1 %1782  ;;  %v6132_v28 = vpop.f32.mrb[86].mxu0 }
 0x30b   :  { %1794 = vst.msk [vmem:[#allocation2 + $0x10] sm:$0xff] %vm1792_vm5, %v1783_v57  ;;  %v3377_v55 = vpack.c.bf16 %v6132_v28, %v6131_v51  ;;  %v3362_v45 = vpop.f32.mrb[87].mxu0  ;;  %v9018_v13 = vpop.permute.xlu0 %2432 }
 0x30c   :  { %1956 = vst.msk [vmem:[#allocation2 + $0x10] sm:$0xff] %vm1954_vm6, %v1945_v35  ;;  %v3376_v30 = vpack.c.bf16 %v3362_v45, %v3359_v7 }
 0x30d   :  { %3388 = vrot.lane.b32.xlu0 %v3377_v55, %s6543_s5 }
 0x30e   :  { %v1787_v60 = vpop.permute.xlu1 %1786  ;;  %3386 = vrot.lane.b32.xlu1 %v3376_v30, %s6543_s5 }
 0x30f   :  { %1796 = vst.msk [vmem:[#allocation2 + $0x30] sm:$0xff] %vm1792_vm5, %v1787_v60 }
 0x310   :  { %v2269_v20 = vpop.permute.xlu0 %2268 }
 0x311   :  { %3223 = vrot.lane.b32.xlu0 %v3214_v8, %s6544_s1  ;;  %v9027_v39 = vpop.f32.mrb[80].mxu1 }
 0x312   :  { %v1299_v37 = vpop.permute.xlu1 %1298  ;;  %v9030_v3 = vpop.f32.mrb[81].mxu1  ;;  %2918 = vrot.lane.b32.xlu1 %v2908_v21, %s6556_s4 }
 0x313   :  { %1309 = vst.msk [vmem:[#allocation2 + $0x20] sm:$0xff] %vm1306_vm1, %v1299_v37  ;;  %v9037_v31 = vpop.f32.mrb[82].mxu1 }
 0x314   :  { %1471 = vst.msk [vmem:[#allocation2 + $0x20] sm:$0xff] %vm1468_vm2, %v1461_v15  ;;  %v3536_v24 = vpack.c.bf16 %v9037_v31, %v9027_v39  ;;  %v9041_v59 = vpop.f32.mrb[83].mxu1  ;;  %v2755_v6 = vpop.permute.xlu0 %2754 }
 0x315   :  { %v3535_v8 = vpack.c.bf16 %v9041_v59, %v9030_v3 }
 0x316   :  { %v2107_v9 = vpop.permute.xlu1 %2106  ;;  %3221 = vrot.lane.b32.xlu1 %v3213_v17, %s6544_s1 }
 0x317   :  { %2118 = vst.msk [vmem:[#allocation2 + $0x10] sm:$0xff] %vm2116_vm7, %v2107_v9 }
 0x318   :  { %2280 = vst.msk [vmem:[#allocation2 + $0x10] sm:$0xff] %vm2278_vm8, %v2269_v20  ;;  %v2593_v63 = vpop.permute.xlu0 %2592 }
 0x31a   :  { %v1623_v4 = vpop.permute.xlu1 %1622 }
 0x31b   :  { %1633 = vst.msk [vmem:[#allocation2 + $0x20] sm:$0xff] %vm1630_vm4, %v1623_v4 }
 0x31c   :  { %1795 = vst.msk [vmem:[#allocation2 + $0x20] sm:$0xff] %vm1792_vm5, %v8960_v38 }
 0x31e   :  { %v2431_v21 = vpop.permute.xlu1 %2430 }
 0x31f   :  { %2442 = vst.msk [vmem:[#allocation2 + $0x10] sm:$0xff] %vm2440_vm10, %v2431_v21  ;;  %v6159_v0 = vpop.f32.mrb[88].mxu0 }
 0x320   :  { %2604 = vst.msk [vmem:[#allocation2 + $0x10] sm:$0xff] %vm2602_vm11, %v2593_v63  ;;  %v3665_v26 = vpop.f32.mrb[89].mxu0 }
 0x321   :  { %2766 = vst.msk [vmem:[#allocation2 + $0x10] sm:$0xff] %vm2764_vm12, %v2755_v6  ;;  %v6160_v17 = vpop.f32.mrb[90].mxu0 }
 0x322   :  { %v1943_v12 = vpop.permute.xlu1 %1942  ;;  %v3697_v61 = vpack.c.bf16 %v6160_v17, %v6159_v0  ;;  %v3668_v5 = vpop.f32.mrb[91].mxu0 }
 0x323   :  { %1955 = vst.msk [vmem:[#allocation2] sm:$0xff] %vm1954_vm6, %v1943_v12  ;;  %v3696_v38 = vpack.c.bf16 %v3668_v5, %v3665_v26 }
 0x324   :  { %2117 = vst.msk [vmem:[#allocation2] sm:$0xff] %vm2116_vm7, %v8972_v49  ;;  %3706 = vrot.lane.b32.xlu0 %v3697_v61, %s6545_s24 }
 0x325   :  { %3704 = vrot.lane.b32.xlu1 %v3696_v38, %s6545_s24 }
 0x326   :  { %v1949_v35 = vpop.permute.xlu1 %1948 }
 0x327   :  { %1958 = vst.msk [vmem:[#allocation2 + $0x30] sm:$0xff] %vm1954_vm6, %v1949_v35 }
 0x328   :  { %3227 = vrot.lane.b32.xlu0 %v3216_v25, %s6544_s1  ;;  %v6147_v15 = vpop.f32.mrb[84].mxu1 }
 0x329   :  { %3225 = vrot.lane.b32.xlu1 %v3215_v36, %s6544_s1  ;;  %v3520_v51 = vpop.f32.mrb[85].mxu1 }
 0x32a   :  { %v1947_v49 = vpop.permute.xlu1 %1946  ;;  %v6148_v57 = vpop.f32.mrb[86].mxu1 }
 0x32b   :  { %1957 = vst.msk [vmem:[#allocation2 + $0x20] sm:$0xff] %vm1954_vm6, %v1947_v49  ;;  %v3538_v7 = vpack.c.bf16 %v6148_v57, %v6147_v15  ;;  %v3523_v28 = vpop.f32.mrb[87].mxu1 }
 0x32c   :  { %2119 = vst.msk [vmem:[#allocation2 + $0x20] sm:$0xff] %vm2116_vm7, %v9005_v41  ;;  %v3537_v55 = vpack.c.bf16 %v3523_v28, %v3520_v51 }
 0x32e   :  { %v2267_v45 = vpop.permute.xlu1 %2266 }
 0x32f   :  { %2279 = vst.msk [vmem:[#allocation2] sm:$0xff] %vm2278_vm8, %v2267_v45 }
 0x330   :  { %2441 = vst.msk [vmem:[#allocation2] sm:$0xff] %vm2440_vm10, %v9014_v47 }
 0x332   :  { %v2753_v54 = vpop.permute.xlu1 %2752 }
 0x335   :  { %v6163_v32 = vpop.f32.mrb[92].mxu0 }
 0x336   :  { %v2271_v44 = vpop.permute.xlu1 %2270  ;;  %v3681_v25 = vpop.f32.mrb[93].mxu0 }
 0x337   :  { %2281 = vst.msk [vmem:[#allocation2 + $0x20] sm:$0xff] %vm2278_vm8, %v2271_v44  ;;  %v6164_v62 = vpop.f32.mrb[94].mxu0 }
 0x338   :  { %2443 = vst.msk [vmem:[#allocation2 + $0x20] sm:$0xff] %vm2440_vm10, %v9018_v13  ;;  %v3699_v41 = vpack.c.bf16 %v6164_v62, %v6163_v32  ;;  %v3684_v36 = vpop.f32.mrb[95].mxu0 }
 0x339   :  { %v3698_v30 = vpack.c.bf16 %v3684_v36, %v3681_v25 }
 0x33a   :  { %v2757_v60 = vpop.permute.xlu1 %2756  ;;  %3710 = vrot.lane.b32.xlu0 %v3699_v41, %s6545_s24 }
 0x33b   :  { %3708 = vrot.lane.b32.xlu1 %v3698_v30, %s6545_s24 }
 0x33e   :  { %v2591_v37 = vpop.permute.xlu1 %2590  ;;  %3545 = vrot.lane.b32.xlu0 %v3536_v24, %s6546_s6 }
 0x33f   :  { %2603 = vst.msk [vmem:[#allocation2] sm:$0xff] %vm2602_vm11, %v2591_v37  ;;  %v6175_v47 = vpop.f32.mrb[88].mxu1  ;;  %3543 = vrot.lane.b32.xlu1 %v3535_v8, %s6546_s6 }
 0x340   :  { %v3826_v39 = vpop.f32.mrb[89].mxu1  ;;  %2765 = vst.msk [vmem:[#allocation2] sm:$0xff] %vm2764_vm12, %v2753_v54 }
 0x341   :  { %v6176_v13 = vpop.f32.mrb[90].mxu1 }
 0x342   :  { %v3858_v20 = vpack.c.bf16 %v6176_v13, %v6175_v47  ;;  %v3829_v3 = vpop.f32.mrb[91].mxu1  ;;  %v2595_v31 = vpop.permute.xlu1 %2594 }
 0x343   :  { %v3857_v59 = vpack.c.bf16 %v3829_v3, %v3826_v39  ;;  %2605 = vst.msk [vmem:[#allocation2 + $0x20] sm:$0xff] %vm2602_vm11, %v2595_v31 }
 0x344   :  { %2767 = vst.msk [vmem:[#allocation2 + $0x20] sm:$0xff] %vm2764_vm12, %v2757_v60 }
 0x34c   :  { %v6191_v9 = vpop.f32.mrb[96].mxu0 }
 0x34d   :  { %v3987_v6 = vpop.f32.mrb[97].mxu0 }
 0x34e   :  { %v6192_v4 = vpop.f32.mrb[98].mxu0 }
 0x34f   :  { %v4019_v21 = vpack.c.bf16 %v6192_v4, %v6191_v9  ;;  %v3990_v24 = vpop.f32.mrb[99].mxu0 }
 0x350   :  { %v4018_v63 = vpack.c.bf16 %v3990_v24, %v3987_v6 }
 0x351   :  { %4028 = vrot.lane.b32.xlu0 %v4019_v21, %s6547_s25 }
 0x352   :  { %4026 = vrot.lane.b32.xlu1 %v4018_v63, %s6547_s25 }
 0x355   :  { %3549 = vrot.lane.b32.xlu0 %v3538_v7, %s6546_s6  ;;  %v6179_v8 = vpop.f32.mrb[92].mxu1 }
 0x356   :  { %v3842_v0 = vpop.f32.mrb[93].mxu1  ;;  %3547 = vrot.lane.b32.xlu1 %v3537_v55, %s6546_s6 }
 0x357   :  { %v6180_v26 = vpop.f32.mrb[94].mxu1 }
 0x358   :  { %v3860_v17 = vpack.c.bf16 %v6180_v26, %v6179_v8  ;;  %v3845_v12 = vpop.f32.mrb[95].mxu1 }
 0x359   :  { %v3859_v61 = vpack.c.bf16 %v3845_v12, %v3842_v0 }
 0x362   :  { %v9092_v5 = vpop.f32.mrb[100].mxu0 }
 0x363   :  { %v4003_v38 = vpop.f32.mrb[101].mxu0 }
 0x364   :  { %v9094_v35 = vpop.f32.mrb[102].mxu0 }
 0x365   :  { %v4021_v15 = vpack.c.bf16 %v9094_v35, %v9092_v5  ;;  %v4006_v49 = vpop.f32.mrb[103].mxu0 }
 0x366   :  { %v4020_v51 = vpack.c.bf16 %v4006_v49, %v4003_v38 }
 0x368   :  { %4030 = vrot.lane.b32.xlu1 %v4020_v51, %s6547_s25 }
 0x369   :  { %v3385_v57 = vpop.permute.xlu0 %3384 }
 0x36a   :  { %v3383_v28 = vpop.permute.xlu1 %3382 }
 0x36b   :  { %v6207_v7 = vpop.f32.mrb[96].mxu1 }
 0x36c   :  { %v9099_v55 = vpop.f32.mrb[97].mxu1  ;;  %3867 = vrot.lane.b32.xlu1 %v3858_v20, %s6548_s26 }
 0x36d   :  { %v6208_v45 = vpop.f32.mrb[98].mxu1  ;;  %v2917_v44 = vpop.permute.xlu0 %2916 }
 0x36e   :  { %v4180_v54 = vpack.c.bf16 %v6208_v45, %v6207_v7  ;;  %v9102_v32 = vpop.f32.mrb[99].mxu1  ;;  %2928 = vst.msk [vmem:[#allocation2 + $0x10] sm:$0xff] %vm2926_vm13, %v2917_v44  ;;  %v2915_v62 = vpop.permute.xlu1 %2914 }
 0x36f   :  { %v4179_v25 = vpack.c.bf16 %v9102_v32, %v9099_v55  ;;  %2927 = vst.msk [vmem:[#allocation2] sm:$0xff] %vm2926_vm13, %v2915_v62  ;;  %v6427_v32 = vld [vmem:[%s9341_s3 + $0x68] sm:$0xff]  }
 0x378   :  { %v6223_v41 = vpop.f32.mrb[104].mxu0 }
 0x379   :  { %v4309_v36 = vpop.f32.mrb[105].mxu0 }
 0x37a   :  { %v6224_v30 = vpop.f32.mrb[106].mxu0 }
 0x37b   :  { %v4341_v60 = vpack.c.bf16 %v6224_v30, %v6223_v41  ;;  %v4312_v37 = vpop.f32.mrb[107].mxu0  ;;  %v6418_v41 = vld [vmem:[%s9341_s3] sm:$0xff]  }
 0x37c   :  { %v4340_v47 = vpack.c.bf16 %v4312_v37, %v4309_v36  ;;  %v6420_v37 = vld [vmem:[%s9341_s3 + $0x8] sm:$0xff]  }
 0x37d   :  { %4350 = vrot.lane.b32.xlu0 %v4341_v60, %s6512_s27  ;;  %v6419_v60 = vld [vmem:[%s9341_s3 + $0x48] sm:$0xff]  }
 0x37e   :  { %4348 = vrot.lane.b32.xlu1 %v4340_v47, %s6512_s27 }
 0x37f   :  { %v3389_v39 = vpop.permute.xlu0 %3388 }
 0x380   :  { %v3387_v20 = vpop.permute.xlu1 %3386 }
 0x381   :  { %3865 = vrot.lane.b32.xlu0 %v3857_v59, %s6548_s26  ;;  %v9111_v13 = vpop.f32.mrb[100].mxu1 }
 0x382   :  { %v9113_v3 = vpop.f32.mrb[101].mxu1 }
 0x383   :  { %v9115_v31 = vpop.f32.mrb[102].mxu1  ;;  %v3224_v4 = vpop.permute.xlu0 %3223 }
 0x384   :  { %v4182_v9 = vpack.c.bf16 %v9115_v31, %v9111_v13  ;;  %v9119_v6 = vpop.f32.mrb[103].mxu1  ;;  %3234 = vst.msk [vmem:[#allocation2 + $0x18] sm:$0xff] %vm658_vm9, %v3224_v4  ;;  %v2919_v59 = vpop.permute.xlu1 %2918  ;;  %v9486_v31 = vpack.c.bf16 %v8545_v29, %v8526_v56 }
 0x385   :  { %v4181_v21 = vpack.c.bf16 %v9119_v6, %v9113_v3  ;;  %3871 = vrot.lane.b32.xlu0 %v3860_v17, %s6548_s26  ;;  %3395 = vst.msk [vmem:[#allocation2 + $0x18] sm:$0xff] %vm820_vm15, %v3385_v57  ;;  %v6429_v3 = vld [vmem:[%s9341_s3 + $0x70] sm:$0xff]  }
 0x386   :  { %2929 = vst.msk [vmem:[#allocation2 + $0x20] sm:$0xff] %vm2926_vm13, %v2919_v59  ;;  %v6421_v59 = vld [vmem:[%s9341_s3 + $0x50] sm:$0xff]  }
 0x387   :  { %v6430_v6 = vld [vmem:[%s9341_s3 + $0x30] sm:$0xff]  }
 0x388   :  { %v3222_v24 = vpop.permute.xlu1 %3221 }
 0x389   :  { %3869 = vrot.lane.b32.xlu0 %v3859_v61, %s6548_s26  ;;  %3233 = vst.msk [vmem:[#allocation2 + $0x8] sm:$0xff] %vm658_vm9, %v3222_v24  ;;  %v6422_v24 = vld [vmem:[%s9341_s3 + $0x10] sm:$0xff]  }
 0x38a   :  { %3394 = vst.msk [vmem:[#allocation2 + $0x8] sm:$0xff] %vm820_vm15, %v3383_v28 }
 0x38e   :  { %v9130_v63 = vpop.f32.mrb[108].mxu0 }
 0x38f   :  { %v4325_v8 = vpop.f32.mrb[109].mxu0 }
 0x390   :  { %v9132_v0 = vpop.f32.mrb[110].mxu0 }
 0x391   :  { %v4343_v26 = vpack.c.bf16 %v9132_v0, %v9130_v63  ;;  %v4328_v17 = vpop.f32.mrb[111].mxu0  ;;  %v9487_v63 = vpack.c.bf16 %v8645_v58, %v8631_v40 }
 0x392   :  { %v4342_v12 = vpack.c.bf16 %v4328_v17, %v4325_v8  ;;  %v6423_v8 = vld [vmem:[%s9341_s3 + $0x58] sm:$0xff]  }
 0x393   :  { %v6424_v17 = vld [vmem:[%s9341_s3 + $0x18] sm:$0xff]  }
 0x394   :  { %4352 = vrot.lane.b32.xlu1 %v4342_v12, %s6512_s27 }
 0x396   :  { %v3707_v38 = vpop.permute.xlu0 %3706 }
 0x397   :  { %v6239_v49 = vpop.f32.mrb[104].mxu1  ;;  %v3705_v51 = vpop.permute.xlu1 %3704 }
 0x398   :  { %v9137_v61 = vpop.f32.mrb[105].mxu1  ;;  %4189 = vrot.lane.b32.xlu1 %v4180_v54, %s6549_s0  ;;  %v6417_v54 = vld [vmem:[%s9341_s3 + $0x40] sm:$0xff]  }
 0x399   :  { %v6240_v57 = vpop.f32.mrb[106].mxu1  ;;  %5777 = vmatprep.subr.bf16.mxu1 %v6417_v54 }
 0x39a   :  { %v4502_v7 = vpack.c.bf16 %v6240_v57, %v6239_v49  ;;  %v9140_v28 = vpop.f32.mrb[107].mxu1  ;;  %v3228_v44 = vpop.permute.xlu0 %3227  ;;  %5778 = vmatpush3.bf16.msra.mxu1 %v6418_v41 }
 0x39b   :  { %v4501_v45 = vpack.c.bf16 %v9140_v28, %v9137_v61  ;;  %3236 = vst.msk [vmem:[#allocation2 + $0x38] sm:$0xff] %vm658_vm9, %v3228_v44  ;;  %v3226_v62 = vpop.permute.xlu1 %3225  ;;  %5779 = vmatprep.subr.bf16.mxu1 %v6419_v60 }
 0x39c   :  { %3397 = vst.msk [vmem:[#allocation2 + $0x38] sm:$0xff] %vm820_vm15, %v3389_v39 }
 0x39d   :  { %3235 = vst.msk [vmem:[#allocation2 + $0x28] sm:$0xff] %vm658_vm9, %v3226_v62 }
 0x39e   :  { %3396 = vst.msk [vmem:[#allocation2 + $0x28] sm:$0xff] %vm820_vm15, %v3387_v20  ;;  %5780 = vmatpush3.bf16.msra.mxu1 %v6420_v37 }
 0x39f   :  { %5781 = vmatprep.subr.bf16.mxu1 %v6421_v59 }
 0x3a2   :  { %5782 = vmatpush3.bf16.msra.mxu1 %v6422_v24 }
 0x3a3   :  { %5783 = vmatprep.subr.bf16.mxu1 %v6423_v8  ;;  %v4686_v8 = vld [vmem:[#allocation2] sm:$0xff] }
 0x3a4   :  { %v6255_v36 = vpop.f32.mrb[112].mxu0 }
 0x3a5   :  { %v4631_v30 = vpop.f32.mrb[113].mxu0 }
 0x3a6   :  { %v6256_v47 = vpop.f32.mrb[114].mxu0  ;;  %5784 = vmatpush3.bf16.msra.mxu1 %v6424_v17 }
 0x3a7   :  { %v4663_v39 = vpack.c.bf16 %v6256_v47, %v6255_v36  ;;  %v4634_v20 = vpop.f32.mrb[115].mxu0  ;;  %v6425_v36 = vld [vmem:[%s9341_s3 + $0x60] sm:$0xff]   ;;  %v6432_v47 = vld [vmem:[%s9341_s3 + $0x38] sm:$0xff]  }
 0x3a8   :  { %v4662_v4 = vpack.c.bf16 %v4634_v20, %v4631_v30  ;;  %v6426_v30 = vld [vmem:[%s9341_s3 + $0x20] sm:$0xff]   ;;  %5785 = vmatprep.subr.bf16.mxu1 %v6425_v36 }
 0x3a9   :  { %4672 = vrot.lane.b32.xlu0 %v4663_v39, %s6550_s2 }
 0x3aa   :  { %4670 = vrot.lane.b32.xlu1 %v4662_v4, %s6550_s2  ;;  %5786 = vmatpush3.bf16.msra.mxu1 %v6426_v30 }
 0x3ab   :  { %5787 = vmatprep.subr.bf16.mxu1 %v6427_v32  ;;  %v6435_v32 = vld [vmem:[#allocation3 + $0x10] sm:$0xff]  }
 0x3ac   :  { %v3711_v12 = vpop.permute.xlu0 %3710 }
 0x3ad   :  { %v6243_v49 = vpop.f32.mrb[108].mxu1  ;;  %4187 = vrot.lane.b32.xlu0 %v4179_v25, %s6549_s0  ;;  %v3709_v44 = vpop.permute.xlu1 %3708  ;;  %v6428_v25 = vld [vmem:[%s9341_s3 + $0x28] sm:$0xff]  }
 0x3ae   :  { %v4486_v57 = vpop.f32.mrb[109].mxu1  ;;  %5788 = vmatpush3.bf16.msra.mxu1 %v6428_v25  ;;  %v6436_v25 = vld [vmem:[#allocation3 + $0x18] sm:$0xff]  }
 0x3af   :  { %v6244_v62 = vpop.f32.mrb[110].mxu1  ;;  %5789 = vmatprep.subr.bf16.mxu1 %v6429_v3  ;;  %v6437_v3 = vld [vmem:[#allocation3 + $0x20] sm:$0xff]  }
 0x3b0   :  { %v4504_v54 = vpack.c.bf16 %v6244_v62, %v6243_v49  ;;  %v4489_v41 = vpop.f32.mrb[111].mxu1  ;;  %v3546_v37 = vpop.permute.xlu0 %3545 }
 0x3b1   :  { %v4503_v60 = vpack.c.bf16 %v4489_v41, %v4486_v57  ;;  %4191 = vrot.lane.b32.xlu0 %v4181_v21, %s6549_s0  ;;  %3556 = vst.msk [vmem:[#allocation2 + $0x18] sm:$0xff] %vm982_vm0, %v3546_v37  ;;  %v3544_v55 = vpop.permute.xlu1 %3543  ;;  %v4688_v57 = vld [vmem:[#allocation2 + $0x10] sm:$0xff]  ;;  %v4690_v41 = vld [vmem:[#allocation2 + $0x20] sm:$0xff] }
 0x3b2   :  { %3717 = vst.msk [vmem:[#allocation2 + $0x18] sm:$0xff] %vm1144_vm3, %v3707_v38  ;;  %5790 = vmatpush3.bf16.msra.mxu1 %v6430_v6  ;;  %v6433_v37 = vld [vmem:[#allocation3] sm:$0xff]   ;;  %v6438_v6 = vld [vmem:[#allocation3 + $0x28] sm:$0xff]  }
 0x3b3   :  { %3555 = vst.msk [vmem:[#allocation2 + $0x8] sm:$0xff] %vm982_vm0, %v3544_v55  ;;  %6261 = vmatprep.subr.bf16.mxu0 %v6433_v37  ;;  %v6434_v55 = vld [vmem:[#allocation3 + $0x8] sm:$0xff]  }
 0x3b4   :  { %3716 = vst.msk [vmem:[#allocation2 + $0x8] sm:$0xff] %vm1144_vm3, %v3705_v51  ;;  %6262 = vmatpush3.bf16.msra.mxu0 %v6433_v37 }
 0x3b5   :  { %4511 = vrot.lane.b32.xlu0 %v4502_v7, %s6551_s28  ;;  %v6431_v7 = vld [vmem:[%s9341_s3 + $0x78] sm:$0xff]   ;;  %6263 = vmatprep.subr.bf16.mxu0 %v6434_v55 }
 0x3b6   :  { %5791 = vmatprep.subr.bf16.mxu1 %v6431_v7 }
 0x3b7   :  { %5792 = vmatpush3.bf16.msra.mxu1 %v6432_v47 }
 0x3b8   :  { %6264 = vmatpush3.bf16.msra.mxu0 %v6434_v55 }
 0x3b9   :  { %4032 = vrot.lane.b32.xlu0 %v4021_v15, %s6547_s25  ;;  %6265 = vmatprep.subr.bf16.mxu0 %v6435_v32 }
 0x3ba   :  { %v6259_v21 = vpop.f32.mrb[116].mxu0 }
 0x3bb   :  { %v4647_v38 = vpop.f32.mrb[117].mxu0 }
 0x3bc   :  { %v6260_v51 = vpop.f32.mrb[118].mxu0  ;;  %6266 = vmatpush3.bf16.msra.mxu0 %v6435_v32 }
 0x3bd   :  { %v4665_v39 = vpack.c.bf16 %v6260_v51, %v6259_v21  ;;  %v4650_v20 = vpop.f32.mrb[119].mxu0  ;;  %4193 = vrot.lane.b32.xlu0 %v4182_v9, %s6549_s0  ;;  %6267 = vmatprep.subr.bf16.mxu0 %v6436_v25  ;;  %v6439_v21 = vld [vmem:[#allocation3 + $0x30] sm:$0xff]  }
 0x3be   :  { %v4664_v5 = vpack.c.bf16 %v4650_v20, %v4647_v38  ;;  %v6440_v38 = vld [vmem:[#allocation3 + $0x38] sm:$0xff]  }
 0x3c0   :  { %4674 = vrot.lane.b32.xlu1 %v4664_v5, %s6550_s2  ;;  %6268 = vmatpush3.bf16.msra.mxu0 %v6436_v25 }
 0x3c1   :  { %4354 = vrot.lane.b32.xlu0 %v4343_v26, %s6512_s27  ;;  %6269 = vmatprep.subr.bf16.mxu0 %v6437_v3 }
 0x3c3   :  { %v4029_v35 = vpop.permute.xlu0 %4028 }
 0x3c4   :  { %4509 = vrot.lane.b32.xlu1 %v4501_v45, %s6551_s28  ;;  %v4027_v15 = vpop.permute.xlu1 %4026  ;;  %6270 = vmatpush3.bf16.msra.mxu0 %v6437_v3 }
 0x3c5   :  { %4515 = vrot.lane.b32.xlu0 %v4504_v54, %s6551_s28  ;;  %6271 = vmatprep.subr.bf16.mxu0 %v6438_v6 }
 0x3c7   :  { %v3550_v13 = vpop.permute.xlu0 %3549 }
 0x3c8   :  { %3558 = vst.msk [vmem:[#allocation2 + $0x38] sm:$0xff] %vm982_vm0, %v3550_v13  ;;  %2110 = vrot.lane.b32.xlu1 %v9486_v31, %s6550_s2  ;;  %v3548_v9 = vpop.permute.xlu1 %3547  ;;  %6272 = vmatpush3.bf16.msra.mxu0 %v6438_v6 }
 0x3c9   :  { %3719 = vst.msk [vmem:[#allocation2 + $0x38] sm:$0xff] %vm1144_vm3, %v3711_v12  ;;  %4676 = vrot.lane.b32.xlu0 %v4665_v39, %s6550_s2  ;;  %6273 = vmatprep.subr.bf16.mxu0 %v6439_v21 }
 0x3ca   :  { %3557 = vst.msk [vmem:[#allocation2 + $0x28] sm:$0xff] %vm982_vm0, %v3548_v9 }
 0x3cb   :  { %3718 = vst.msk [vmem:[#allocation2 + $0x28] sm:$0xff] %vm1144_vm3, %v3709_v44 }
 0x3cc   :  { %2272 = vrot.lane.b32.xlu1 %v2261_v34, %s6553_s30  ;;  %6274 = vmatpush3.bf16.msra.mxu0 %v6439_v21 }
 0x3cd   :  { %6275 = vmatprep.subr.bf16.mxu0 %v6440_v38 }
 0x3d0   :  { %2434 = vrot.lane.b32.xlu1 %v9487_v63, %s6552_s29  ;;  %6276 = vmatpush3.bf16.msra.mxu0 %v6440_v38 }
 0x3d4   :  { %4513 = vrot.lane.b32.xlu1 %v4503_v60, %s6551_s28 }
 0x3d8   :  { %2596 = vrot.lane.b32.xlu1 %v2585_v50, %s6555_s13 }
 0x3da   :  { %v4031_v56 = vpop.permute.xlu1 %4030 }
 0x3dc   :  { %2758 = vrot.lane.b32.xlu1 %v2747_v48, %s6554_s12 }
 0x3de   :  { %v3868_v29 = vpop.permute.xlu1 %3867 }
 0x3df   :  { %3878 = vst.msk [vmem:[#allocation2 + $0x18] sm:$0xff] %vm1306_vm1, %v3868_v29 }
 0x3e0   :  { %4039 = vst.msk [vmem:[#allocation2 + $0x18] sm:$0xff] %vm1468_vm2, %v4029_v35  ;;  %2920 = vrot.lane.b32.xlu1 %v2909_v14, %s6556_s4 }
 0x3ef   :  { %v4351_v40 = vpop.permute.xlu0 %4350 }
 0x3f0   :  { %v4349_v34 = vpop.permute.xlu1 %4348 }
 0x3f3   :  { %v3866_v58 = vpop.permute.xlu0 %3865 }
 0x3f4   :  { %3877 = vst.msk [vmem:[#allocation2 + $0x8] sm:$0xff] %vm1306_vm1, %v3866_v58 }
 0x3f5   :  { %4038 = vst.msk [vmem:[#allocation2 + $0x8] sm:$0xff] %vm1468_vm2, %v4027_v15 }
 0x3f7   :  { %v3872_v42 = vpop.permute.xlu0 %3871 }
 0x3f8   :  { %3880 = vst.msk [vmem:[#allocation2 + $0x38] sm:$0xff] %vm1306_vm1, %v3872_v42 }
 0x3fb   :  { %v3870_v16 = vpop.permute.xlu0 %3869 }
 0x3fc   :  { %3879 = vst.msk [vmem:[#allocation2 + $0x28] sm:$0xff] %vm1306_vm1, %v3870_v16 }
 0x3fd   :  { %4040 = vst.msk [vmem:[#allocation2 + $0x28] sm:$0xff] %vm1468_vm2, %v4031_v56 }
 0x406   :  { %v4353_v46 = vpop.permute.xlu1 %4352 }
 0x40a   :  { %v4190_v10 = vpop.permute.xlu1 %4189 }
 0x40b   :  { %4200 = vst.msk [vmem:[#allocation2 + $0x18] sm:$0xff] %vm1630_vm4, %v4190_v10 }
 0x40c   :  { %4361 = vst.msk [vmem:[#allocation2 + $0x18] sm:$0xff] %vm1792_vm5, %v4351_v40 }
 0x41b   :  { %v4673_v50 = vpop.permute.xlu0 %4672 }
 0x41c   :  { %v4671_v33 = vpop.permute.xlu1 %4670 }
 0x41f   :  { %v4188_v52 = vpop.permute.xlu0 %4187 }
 0x420   :  { %4199 = vst.msk [vmem:[#allocation2 + $0x8] sm:$0xff] %vm1630_vm4, %v4188_v52 }
 0x421   :  { %4360 = vst.msk [vmem:[#allocation2 + $0x8] sm:$0xff] %vm1792_vm5, %v4349_v34 }
 0x423   :  { %v4192_v1 = vpop.permute.xlu0 %4191 }
 0x424   :  { %4201 = vst.msk [vmem:[#allocation2 + $0x28] sm:$0xff] %vm1630_vm4, %v4192_v1 }
 0x425   :  { %4362 = vst.msk [vmem:[#allocation2 + $0x28] sm:$0xff] %vm1792_vm5, %v4353_v46 }
 0x427   :  { %v4512_v48 = vpop.permute.xlu0 %4511 }
 0x428   :  { %4522 = vst.msk [vmem:[#allocation2 + $0x18] sm:$0xff] %vm1954_vm6, %v4512_v48 }
 0x429   :  { %4683 = vst.msk [vmem:[#allocation2 + $0x18] sm:$0xff] %vm2116_vm7, %v4673_v50 }
 0x42b   :  { %v4033_v22 = vpop.permute.xlu0 %4032 }
 0x42c   :  { %4041 = vst.msk [vmem:[#allocation2 + $0x38] sm:$0xff] %vm1468_vm2, %v4033_v22 }
 0x42f   :  { %v4194_v14 = vpop.permute.xlu0 %4193 }
 0x430   :  { %4202 = vst.msk [vmem:[#allocation2 + $0x38] sm:$0xff] %vm1630_vm4, %v4194_v14  ;;  %v4689_v17 = vld [vmem:[#allocation2 + $0x18] sm:$0xff] }
 0x432   :  { %v4675_v0 = vpop.permute.xlu1 %4674 }
 0x433   :  { %v4355_v26 = vpop.permute.xlu0 %4354 }
 0x434   :  { %4363 = vst.msk [vmem:[#allocation2 + $0x38] sm:$0xff] %vm1792_vm5, %v4355_v26 }
 0x436   :  { %v4510_v61 = vpop.permute.xlu1 %4509 }
 0x437   :  { %4521 = vst.msk [vmem:[#allocation2 + $0x8] sm:$0xff] %vm1954_vm6, %v4510_v61  ;;  %v4516_v28 = vpop.permute.xlu0 %4515 }
 0x438   :  { %4682 = vst.msk [vmem:[#allocation2 + $0x8] sm:$0xff] %vm2116_vm7, %v4671_v33 }
 0x439   :  { %4524 = vst.msk [vmem:[#allocation2 + $0x38] sm:$0xff] %vm1954_vm6, %v4516_v28 }
 0x43a   :  { %v2111_v45 = vpop.permute.xlu1 %2110 }
 0x43b   :  { %2120 = vst.msk [vmem:[#allocation2 + $0x30] sm:$0xff] %vm2116_vm7, %v2111_v45  ;;  %v4677_v4 = vpop.permute.xlu0 %4676 }
 0x43c   :  { %4685 = vst.msk [vmem:[#allocation2 + $0x38] sm:$0xff] %vm2116_vm7, %v4677_v4 }
 0x43e   :  { %v2273_v59 = vpop.permute.xlu1 %2272 }
 0x43f   :  { %2282 = vst.msk [vmem:[#allocation2 + $0x30] sm:$0xff] %vm2278_vm8, %v2273_v59  ;;  %v4687_v24 = vld [vmem:[#allocation2 + $0x8] sm:$0xff] }
 0x440   :  { %4854 = vmatprep.mubr.bf16.mxu1 %v4687_v24 }
 0x441   :  { %4855 = vmatmul.mubr.bf16.vlgmr.msra.gmra.mrb[112].mxu1 %v4686_v8 }
 0x442   :  { %4862 = vmatprep.mubr.bf16.mxu1 %v4689_v17  ;;  %v2435_v12 = vpop.permute.xlu1 %2434 }
 0x443   :  { %2444 = vst.msk [vmem:[#allocation2 + $0x30] sm:$0xff] %vm2440_vm10, %v2435_v12  ;;  %v4693_v36 = vld [vmem:[#allocation2 + $0x38] sm:$0xff] }
 0x446   :  { %v4514_v49 = vpop.permute.xlu1 %4513 }
 0x447   :  { %4523 = vst.msk [vmem:[#allocation2 + $0x28] sm:$0xff] %vm1954_vm6, %v4514_v49 }
 0x448   :  { %4684 = vst.msk [vmem:[#allocation2 + $0x28] sm:$0xff] %vm2116_vm7, %v4675_v0 }
 0x449   :  { %4863 = vmatmul.mubr.bf16.gmra.mrb[116].mxu1 %v4688_v57 }
 0x44a   :  { %v2597_v44 = vpop.permute.xlu1 %2596 }
 0x44b   :  { %2606 = vst.msk [vmem:[#allocation2 + $0x30] sm:$0xff] %vm2602_vm11, %v2597_v44 }
 0x44e   :  { %v2759_v62 = vpop.permute.xlu1 %2758 }
 0x44f   :  { %2768 = vst.msk [vmem:[#allocation2 + $0x30] sm:$0xff] %vm2764_vm12, %v2759_v62  ;;  %v4691_v54 = vld [vmem:[#allocation2 + $0x28] sm:$0xff] }
 0x450   :  { %4870 = vmatprep.mubr.bf16.mxu1 %v4691_v54 }
 0x451   :  { %4871 = vmatmul.mubr.bf16.gmra.mrb[120].mxu1 %v4690_v41 }
 0x452   :  { %v2921_v30 = vpop.permute.xlu1 %2920  ;;  %4878 = vmatprep.mubr.bf16.mxu1 %v4693_v36 }
 0x453   :  { %2930 = vst.msk [vmem:[#allocation2 + $0x30] sm:$0xff] %vm2926_vm13, %v2921_v30 }
 0x45a   :  { %v4692_v60 = vld [vmem:[#allocation2 + $0x30] sm:$0xff] }
 0x45b   :  { %4879 = vmatmul.mubr.bf16.gmra.mrb[124].mxu1 %v4692_v60 }
 0x514   :  { %v5793_v51 = vpop.f32.mrb[112].mxu1 }
 0x515   :  { %v5794_v7 = vpop.f32.mrb[113].mxu1 }
 0x516   :  { %v9289_v47 = vadd.f32 %v5794_v7, %v5793_v51  ;;  %v5796_v39 = vpop.f32.mrb[114].mxu1 }
 0x517   :  { %v5797_v20 = vpop.f32.mrb[115].mxu1 }
 0x518   :  { %v9291_v5 = vadd.f32 %v5797_v20, %v5796_v39  ;;  %v4902_v35 = vmul.f32 %v9289_v47, %v9289_v47 }
 0x51a   :  { %v4889_v15 = vadd.f32 %v9291_v5, %v9289_v47  ;;  %v4903_v13 = vmul.f32 %v9291_v5, %v9291_v5 }
 0x51c   :  { %v4910_v31 = vadd.f32 %v4903_v13, %v4902_v35  ;;  %v5799_v9 = vpop.f32.mrb[116].mxu1 }
 0x51d   :  { %v5800_v63 = vpop.f32.mrb[117].mxu1 }
 0x51e   :  { %v5801_v56 = vadd.f32 %v5800_v63, %v5799_v9  ;;  %v5802_v29 = vpop.f32.mrb[118].mxu1 }
 0x51f   :  { %v5803_v40 = vpop.f32.mrb[119].mxu1 }
 0x520   :  { %v4890_v58 = vadd.f32 %v5801_v56, %v4889_v15  ;;  %v4904_v42 = vmul.f32 %v5801_v56, %v5801_v56  ;;  %v5804_v16 = vadd.f32 %v5803_v40, %v5802_v29  ;;  %v4888_v29 = vld [vmem:[%s9346_s8] sm:$0x1] }
 0x522   :  { %v4911_v34 = vadd.f32 %v4910_v31, %v4904_v42  ;;  %v4891_v46 = vadd.f32 %v5804_v16, %v4890_v58  ;;  %v4905_v10 = vmul.f32 %v5804_v16, %v5804_v16  ;;  %v4887_v31 = vld [vmem:[%s9345_s7] sm:$0x1]  ;;  %v9488_v58 = vld [vmem:[#allocation42_spill] sm:$0xff] }
 0x524   :  { %v4912_v50 = vadd.f32 %v4911_v34, %v4905_v10  ;;  %v5805_v52 = vpop.f32.mrb[120].mxu1 }
 0x525   :  { %v5806_v1 = vpop.f32.mrb[121].mxu1 }
 0x526   :  { %v5807_v48 = vadd.f32 %v5806_v1, %v5805_v52  ;;  %v5808_v22 = vpop.f32.mrb[122].mxu1 }
 0x527   :  { %v5809_v33 = vpop.f32.mrb[123].mxu1 }
 0x528   :  { %v4892_v14 = vadd.f32 %v5807_v48, %v4891_v46  ;;  %v4906_v0 = vmul.f32 %v5807_v48, %v5807_v48  ;;  %v5810_v26 = vadd.f32 %v5809_v33, %v5808_v22 }
 0x52a   :  { %v4913_v61 = vadd.f32 %v4912_v50, %v4906_v0  ;;  %v4893_v28 = vadd.f32 %v5810_v26, %v4892_v14  ;;  %v4907_v45 = vmul.f32 %v5810_v26, %v5810_v26 }
 0x52c   :  { %v4914_v4 = vadd.f32 %v4913_v61, %v4907_v45 }
 0x52e   :  { %v5811_v59 = vpop.f32.mrb[124].mxu1 }
 0x52f   :  { %v5812_v24 = vpop.f32.mrb[125].mxu1 }
 0x530   :  { %v5813_v8 = vadd.f32 %v5812_v24, %v5811_v59  ;;  %v5814_v17 = vpop.f32.mrb[126].mxu1 }
 0x531   :  { %v5815_v12 = vpop.f32.mrb[127].mxu1 }
 0x532   :  { %v4894_v49 = vadd.f32 %v5813_v8, %v4893_v28  ;;  %v4908_v57 = vmul.f32 %v5813_v8, %v5813_v8  ;;  %v5816_v44 = vadd.f32 %v5815_v12, %v5814_v17 }
 0x534   :  { %v4915_v62 = vadd.f32 %v4914_v4, %v4908_v57  ;;  %v4895_v54 = vadd.f32 %v5816_v44, %v4894_v49  ;;  %v4909_v41 = vmul.f32 %v5816_v44, %v5816_v44 }
 0x536   :  { %v4896_v36 = vrot.slane %v4895_v54, 4  ;;  %v4916_v30 = vadd.f32 %v4915_v62, %v4909_v41 }
 0x538   :  { %v4897_v60 = vadd.f32 %v4896_v36, %v4895_v54  ;;  %v4917_v37 = vrot.slane %v4916_v30, 4 }
 0x53a   :  { %v4898_v55 = vrot.slane %v4897_v60, 2  ;;  %v4918_v32 = vadd.f32 %v4917_v37, %v4916_v30 }
 0x53c   :  { %v4899_v25 = vadd.f32 %v4898_v55, %v4897_v60  ;;  %v4919_v3 = vrot.slane %v4918_v32, 2 }
 0x53e   :  { %v4900_v6 = vrot.slane %v4899_v25, 1  ;;  %v4920_v21 = vadd.f32 %v4919_v3, %v4918_v32 }
 0x540   :  { %v4901_v38 = vadd.f32 %v4900_v6, %v4899_v25  ;;  %v4921_v51 = vrot.slane %v4920_v21, 1 }
 0x542   :  { %v4922_v7 = vadd.f32 %v4921_v51, %v4920_v21  ;;  %v4923_v39 = vmul.f32 0.015625, %v4901_v38 }
 0x544   :  { %v4924_v20 = vmul.f32 0.015625, %v4922_v7  ;;  %v4925_v35 = vmul.f32 %v4923_v39, %v4923_v39 }
 0x546   :  { %v4926_v15 = vsub.f32 %v4924_v20, %v4925_v35 }
 0x548   :  { %v4927_v13 = vadd.f32 1e-05, %v4926_v15 }
 0x54a   :  { %6445 = vrsqrt.f32 %v4927_v13 }
 0x554   :  { %v6446_v9 = vpop.eup %6445 }
 0x555   :  { %v4929_v63 = vmul.f32 %v6446_v9, %v4887_v31 }
 0x557   :  { %v4930_v40 = vmul.f32 %v4929_v63, %v4923_v39  ;;  %v4936_v42 = vrot.slane %v4929_v63, %v9488_v58 }
 0x559   :  { %v4931_v34 = vsub.f32 %v4888_v29, %v4930_v40  ;;  %v4945_v46 = vmul.f32 %v5816_v44, %v4936_v42  ;;  %v4938_v10 = vmul.f32 %v9289_v47, %v4936_v42  ;;  %v4939_v50 = vmul.f32 %v9291_v5, %v4936_v42 }
 0x55a   :  { %v4940_v52 = vmul.f32 %v5801_v56, %v4936_v42  ;;  %v4941_v1 = vmul.f32 %v5804_v16, %v4936_v42  ;;  %v4942_v22 = vmul.f32 %v5807_v48, %v4936_v42  ;;  %v4943_v33 = vmul.f32 %v5810_v26, %v4936_v42 }
 0x55b   :  { %v4950_v14 = vrot.slane %v4931_v34, %v9488_v58  ;;  %v4944_v0 = vmul.f32 %v5813_v8, %v4936_v42 }
 0x55d   :  { %v4952_v61 = vadd.f32 %v4950_v14, %v4938_v10  ;;  %v4953_v28 = vadd.f32 %v4950_v14, %v4939_v50  ;;  %v4954_v45 = vadd.f32 %v4950_v14, %v4940_v52  ;;  %v4955_v4 = vadd.f32 %v4950_v14, %v4941_v1 }
 0x55e   :  { %v4956_v59 = vadd.f32 %v4950_v14, %v4942_v22  ;;  %v4957_v24 = vadd.f32 %v4950_v14, %v4943_v33  ;;  %v4958_v17 = vadd.f32 %v4950_v14, %v4944_v0  ;;  %v4959_v12 = vadd.f32 %v4950_v14, %v4945_v46 }
 0x55f   :  { %v4960_v49 = vpack.c.bf16 %v4953_v28, %v4952_v61  ;;  %v4961_v57 = vpack.c.bf16 %v4955_v4, %v4954_v45 }
 0x560   :  { %v4962_v47 = vpack.c.bf16 %v4957_v24, %v4956_v59  ;;  %v4963_v44 = vpack.c.bf16 %v4959_v12, %v4958_v17  ;;  %v5093_v59 = vld [vmem:[%s9347_s9] sm:$0x1]  ;;  %s6557_s9 = smov [#allocation6]  }
 0x561   :  { %6277 = vmatprep.mubr.bf16.mxu0 %v4960_v49  ;;  %v5094_v12 = vld [vmem:[%s9348_s10] sm:$0x1]  ;;  %s5195_s10 = sshll.u32 %s6557_s9, 4  ;;  %s5196_s10 = int_to_ptr.vmem [resolvable:$true] %s5195_s10 }
 0x562   :  { %6278 = vmatmul.mubr.bf16.vlgmr.msra.gmra.mrb[120].mxu0 %v4961_v57  ;;  %s6485_s29 = scalar_lea.vmem %s5196_s10, 1024  ;;  %p6490_p9 = scmp.lt.s32.totalorder %s5196_s10, %s5196_s10 }
 0x563   :  { %6281 = vmatprep.mubr.bf16.mxu0 %v4962_v47  ;;  %p6486_p8 = scmp.ne.s32.totalorder %s5196_s10, %s6485_s29  ;;  %p6491_p10 = scmp.lt.s32.totalorder %s6485_s29, %s6485_s29 }
 0x565   :  { %p6492_p11 = por %p6491_p10, %p6490_p9 }
 0x567   :  { %p6493_p12 = pnand %p6492_p11, %p6486_p8 }
 0x56a   :  { %6282 = vmatmul.mubr.bf16.gmra.mrb[124].mxu0 %v4963_v44 }
 0x635   :  { %v6279_v5 = vpop.f32.mrb[120].mxu0 }
 0x636   :  { %v5062_v56 = vpop.f32.mrb[121].mxu0  ;;  %v5110_v54 = vmul.f32 %v6279_v5, %v6279_v5 }
 0x637   :  { %v6280_v16 = vpop.f32.mrb[122].mxu0  ;;  %v5108_v26 = vmul.f32 %v5062_v56, %v5062_v56 }
 0x638   :  { %v5065_v48 = vpop.f32.mrb[123].mxu0  ;;  %v5111_v30 = vmul.f32 %v6280_v16, %v6280_v16 }
 0x639   :  { %v5095_v8 = vadd.f32 %v5065_v48, %v5062_v56  ;;  %v5109_v62 = vmul.f32 %v5065_v48, %v5065_v48 }
 0x63b   :  { %v5096_v41 = vadd.f32 %v6279_v5, %v5095_v8  ;;  %v5116_v36 = vadd.f32 %v5109_v62, %v5108_v26 }
 0x63d   :  { %v5117_v60 = vadd.f32 %v5116_v36, %v5110_v54  ;;  %v6283_v37 = vpop.f32.mrb[124].mxu0  ;;  %v5097_v55 = vadd.f32 %v6280_v16, %v5096_v41 }
 0x63e   :  { %v5078_v32 = vpop.f32.mrb[125].mxu0  ;;  %v5114_v20 = vmul.f32 %v6283_v37, %v6283_v37 }
 0x63f   :  { %v5098_v25 = vadd.f32 %v5097_v55, %v5078_v32  ;;  %v5112_v3 = vmul.f32 %v5078_v32, %v5078_v32  ;;  %v5118_v6 = vadd.f32 %v5117_v60, %v5111_v30  ;;  %v6284_v21 = vpop.f32.mrb[126].mxu0 }
 0x640   :  { %v5081_v38 = vpop.f32.mrb[127].mxu0  ;;  %v5115_v13 = vmul.f32 %v6284_v21, %v6284_v21 }
 0x641   :  { %v5119_v51 = vadd.f32 %v5118_v6, %v5112_v3  ;;  %v5099_v7 = vadd.f32 %v5098_v25, %v5081_v38  ;;  %v5113_v39 = vmul.f32 %v5081_v38, %v5081_v38 }
 0x643   :  { %v5100_v35 = vadd.f32 %v6283_v37, %v5099_v7  ;;  %v5120_v15 = vadd.f32 %v5119_v51, %v5113_v39 }
 0x645   :  { %v5101_v31 = vadd.f32 %v6284_v21, %v5100_v35  ;;  %v5121_v9 = vadd.f32 %v5120_v15, %v5114_v20 }
 0x647   :  { %v5102_v63 = vrot.slane %v5101_v31, 4  ;;  %v5122_v29 = vadd.f32 %v5121_v9, %v5115_v13 }
 0x649   :  { %v5103_v40 = vadd.f32 %v5102_v63, %v5101_v31  ;;  %v5123_v42 = vrot.slane %v5122_v29, 4 }
 0x64b   :  { %v5104_v34 = vrot.slane %v5103_v40, 2  ;;  %v5124_v46 = vadd.f32 %v5123_v42, %v5122_v29 }
 0x64d   :  { %v5105_v10 = vadd.f32 %v5104_v34, %v5103_v40  ;;  %v5125_v50 = vrot.slane %v5124_v46, 2 }
 0x64f   :  { %v5106_v52 = vrot.slane %v5105_v10, 1  ;;  %v5126_v1 = vadd.f32 %v5125_v50, %v5124_v46 }
 0x651   :  { %v5107_v22 = vadd.f32 %v5106_v52, %v5105_v10  ;;  %v5127_v33 = vrot.slane %v5126_v1, 1 }
 0x653   :  { %v5128_v14 = vadd.f32 %v5127_v33, %v5126_v1  ;;  %v5129_v0 = vmul.f32 0.015625, %v5107_v22 }
 0x655   :  { %v5130_v61 = vmul.f32 0.015625, %v5128_v14  ;;  %v5131_v28 = vmul.f32 %v5129_v0, %v5129_v0 }
 0x657   :  { %v5132_v45 = vsub.f32 %v5130_v61, %v5131_v28 }
 0x659   :  { %v5133_v4 = vadd.f32 1e-05, %v5132_v45 }
 0x65b   :  { %6447 = vrsqrt.f32 %v5133_v4 }
 0x665   :  { %v6448_v24 = vpop.eup %6447 }
 0x666   :  { %v5135_v17 = vmul.f32 %v6448_v24, %v5093_v59 }
 0x668   :  { %v5136_v49 = vmul.f32 %v5135_v17, %v5129_v0  ;;  %v5142_v57 = vrot.slane %v5135_v17, %v9488_v58 }
 0x66a   :  { %v5137_v47 = vsub.f32 %v5094_v12, %v5136_v49  ;;  %v5149_v44 = vmul.f32 %v5142_v57, %v5081_v38  ;;  %v5144_v26 = vmul.f32 %v5142_v57, %v5062_v56  ;;  %v5145_v8 = vmul.f32 %v5142_v57, %v5065_v48 }
 0x66b   :  { %v5146_v62 = vmul.f32 %v6279_v5, %v5142_v57  ;;  %v5147_v54 = vmul.f32 %v6280_v16, %v5142_v57  ;;  %v5148_v41 = vmul.f32 %v5142_v57, %v5078_v32  ;;  %v5150_v36 = vmul.f32 %v6283_v37, %v5142_v57 }
 0x66c   :  { %v5156_v30 = vrot.slane %v5137_v47, %v9488_v58  ;;  %v5151_v60 = vmul.f32 %v6284_v21, %v5142_v57 }
 0x66e   :  { %v5163_v55 = vadd.f32 %v5156_v30, %v5149_v44  ;;  %v5158_v25 = vadd.f32 %v5156_v30, %v5144_v26  ;;  %v5159_v3 = vadd.f32 %v5156_v30, %v5145_v8  ;;  %v5160_v6 = vadd.f32 %v5156_v30, %v5146_v62 }
 0x66f   :  { %v5161_v51 = vadd.f32 %v5156_v30, %v5147_v54  ;;  %v5162_v7 = vadd.f32 %v5156_v30, %v5148_v41  ;;  %v5164_v39 = vadd.f32 %v5156_v30, %v5150_v36  ;;  %v5165_v20 = vadd.f32 %v5156_v30, %v5151_v60 }
 0x670   :  { %v5171_v35 = vadd.f32 %v5163_v55, %v7208_v27  ;;  %v5166_v56 = vadd.f32 %v5158_v25, %v7185_v43  ;;  %v5167_v5 = vadd.f32 %v5159_v3, %v7188_v2  ;;  %v5168_v16 = vadd.f32 %v5160_v6, %v7193_v23 }
 0x671   :  { %v5169_v58 = vadd.f32 %v5161_v51, %v7202_v11  ;;  %v5170_v48 = vadd.f32 %v5162_v7, %v7211_v18  ;;  %v5172_v37 = vadd.f32 %v5164_v39, %v7270_v19  ;;  %v5173_v32 = vadd.f32 %v5165_v20, %v7166_v53 }
 0x672   :  { %v5179_v21 = vmax.f32 %v5171_v35, 0.0  ;;  %v5174_v38 = vmax.f32 %v5166_v56, 0.0  ;;  %v5175_v15 = vmax.f32 %v5167_v5, 0.0  ;;  %v5176_v27 = vmax.f32 %v5168_v16, 0.0 }
 0x673   :  { %v5177_v13 = vmax.f32 %v5169_v58, 0.0  ;;  %v5178_v43 = vmax.f32 %v5170_v48, 0.0  ;;  %v5180_v31 = vmax.f32 %v5172_v37, 0.0  ;;  %v5181_v2 = vmax.f32 %v5173_v32, 0.0 }
 0x674   :  { %5187 = vst [vmem:[#allocation6 + $0x28] sm:$0xff] %v5179_v21  ;;  %5182 = vst [vmem:[#allocation6] sm:$0xff] %v5174_v38 }
 0x675   :  { %5183 = vst [vmem:[#allocation6 + $0x8] sm:$0xff] %v5175_v15  ;;  %5184 = vst [vmem:[#allocation6 + $0x10] sm:$0xff] %v5176_v27 }
 0x676   :  { %5185 = vst [vmem:[#allocation6 + $0x18] sm:$0xff] %v5177_v13  ;;  %5186 = vst [vmem:[#allocation6 + $0x20] sm:$0xff] %v5178_v43 }
 0x677   :  { %5188 = vst [vmem:[#allocation6 + $0x30] sm:$0xff] %v5180_v31  ;;  %5189 = vst [vmem:[#allocation6 + $0x38] sm:$0xff] %v5181_v2 }
 0x678   :  { %6496 = shalt.err (!%p6493_p12)
}
 0x679   :  { %s6497_s13 = scalar_lea.hbm %s9349_s11, 1024 }
 0x67a   :  { %p6498_p13 = scmp.ne.s32.totalorder %s9349_s11, %s6497_s13  ;;  %p6501_p0 = scmp.lt.u32.totalorder %s6497_s13, %s9349_s11 }
 0x67c   :  { %p6503_p1 = pnand %p6501_p0, %p6498_p13 }
 0x67e   :  { %6506 = shalt.err (!%p6503_p1)
}
 0x67f   :  { %s6558_s21 = smov 128  }
 0x680   :  { %5201 = dma.vmem_to_hbm [thread:$0]  %s5196_s10, 1024, %s9349_s11, [#allocation5], %s6558_s21, %s6558_s21, %s6544_s1  }
 0x681   :  { %6509 = dma.done.wait [#allocation5], 1024  }
 0x682   :  { %6510 = vsyncadd [#allocation5], 4294966272 }
 0x683   :  { %5205 = vsyncpa [#allocation4], 1 }
 0x684   :  { %5206 = vsyncpa [#allocation5], 1 }

</bundles_post_ra>
